<compile_context>
chip_gen: v7x
topology: tpu7x:2x2x1
jax: 0.10.0
libtpu: 0.0.40
codegen_flags: <defaults>
</compile_context>

<pallas_src>
import numpy as np

import jax
import jax.numpy as jnp
from jax.experimental import pallas as pl


# ---------------------------------------------------------------------------
# The single fused kernel
# ---------------------------------------------------------------------------
def _qnet_kernel(x_ref,
                 c1_gw, c1_gh, c1_w, c1_b,
                 c2_gw, c2_gh, c2_w, c2_b,
                 c3_gw, c3_gh, c3_w, c3_b,
                 fc1_w, fc1_b, fc2_w, fc2_b, q_w, q_b,
                 o_ref):
    """Fused conv1+conv2+conv3+fc1+fc2+q_out.

    Activation layout between conv layers: 2-D (B*H, W*C), rows ordered
    (b, h), lanes ordered (w, c) with c minor.  Each conv layer is:
        u = x  @ gw        # width im2col  (0/1 gather, lanes -> (j, dw, c))
        v = gh @ u         # height im2col (0/1 gather, rows  -> (dh, ., .))
        y = sum_dh v[dh-block] @ w_blockdiag[dh]   # conv contraction
        y = relu(y + bias_row)
    gw/gh/w_blockdiag are precomputed constants (prepare_params).
    """
    f32 = jnp.float32

    def conv_layer(x, gw_ref, gh_ref, wb_ref, bias_ref):
        k = wb_ref.shape[0]                                   # kernel height
        u = jnp.dot(x, gw_ref[...], preferred_element_type=f32)
        v = jnp.dot(gh_ref[...], u, preferred_element_type=f32)
        rows = v.shape[0] // k                                # = B * H_out
        acc = jnp.dot(v[0:rows, :], wb_ref[0], preferred_element_type=f32)
        for dh in range(1, k):                                # static unroll
            acc = acc + jnp.dot(v[dh * rows:(dh + 1) * rows, :], wb_ref[dh],
                                preferred_element_type=f32)
        return jnp.maximum(acc + bias_ref[...], 0.0)

    a1 = conv_layer(x_ref[...], c1_gw, c1_gh, c1_w, c1_b)    # (B*16, 16*16)
    a2 = conv_layer(a1, c2_gw, c2_gh, c2_w, c2_b)            # (B*7,  7*32)
    # conv3's height-gather orders rows (i, b) so the fc1 stage below can
    # contract the spatial-row index with static contiguous row slices.
    a3 = conv_layer(a2, c3_gw, c3_gh, c3_w, c3_b)            # (3*B,  3*64)

    B = o_ref.shape[0]
    h_rows = fc1_w.shape[0]                                   # = conv3 H_out
    h = jnp.dot(a3[0:B, :], fc1_w[0], preferred_element_type=f32)
    for i in range(1, h_rows):                                # static unroll
        h = h + jnp.dot(a3[i * B:(i + 1) * B, :], fc1_w[i],
                        preferred_element_type=f32)
    h = jnp.maximum(h + fc1_b[...], 0.0)                      # (B, 256)
    h = jnp.maximum(jnp.dot(h, fc2_w[...], preferred_element_type=f32)
                    + fc2_b[...], 0.0)                        # (B, 128)
    q = jnp.dot(h, q_w[...], preferred_element_type=f32) + q_b[...]
    o_ref[...] = q.astype(o_ref.dtype)


# ---------------------------------------------------------------------------
# Forward wrapper: one pallas_call, everything VMEM-resident, grid-less.
# ---------------------------------------------------------------------------
def qnetwork_forward(kparams, state):
    """state: (B, 1, H, W) f32 (NCHW, as PyTorch) -> (B, num_actions)."""
    B, C, H, W = state.shape
    x2d = state.reshape(B * H, W)                             # drop C=1, merge B,H
    num_actions = kparams["q_b"].shape[1]
    return pl.pallas_call(
        _qnet_kernel,
        out_shape=jax.ShapeDtypeStruct((B, num_actions), jnp.float32),
    )(x2d,
      kparams["c1_gw"], kparams["c1_gh"], kparams["c1_w"], kparams["c1_b"],
      kparams["c2_gw"], kparams["c2_gh"], kparams["c2_w"], kparams["c2_b"],
      kparams["c3_gw"], kparams["c3_gh"], kparams["c3_w"], kparams["c3_b"],
      kparams["fc1_w"], kparams["fc1_b"], kparams["fc2_w"], kparams["fc2_b"],
      kparams["q_w"], kparams["q_b"])


# ---------------------------------------------------------------------------
# Parameters: torch-layout init + one-time kernel-ready layout conversion
# ---------------------------------------------------------------------------
def _conv_out(n, k, s):
    return (n - k) // s + 1


def _conv_stack_dims(input_shape):
    H, W = input_shape
    h1, w1 = _conv_out(H, 5, 2), _conv_out(W, 5, 2)
    h2, w2 = _conv_out(h1, 3, 2), _conv_out(w1, 3, 2)
    h3, w3 = _conv_out(h2, 3, 2), _conv_out(w2, 3, 2)
    return (h1, w1), (h2, w2), (h3, w3)


def _width_gather(W_in, W_out, k, s, C_in):
    """(W_in*C_in, W_out*k*C_in) 0/1 matrix: lanes (w,c) -> (j,dw,c)."""
    S = np.zeros((W_in, W_out * k), np.float32)
    for j in range(W_out):
        for dw in range(k):
            S[s * j + dw, j * k + dw] = 1.0
    return np.kron(S, np.eye(C_in, dtype=np.float32))


def _height_gather(H_in, H_out, k, s, B, i_major):
    """(k*B*H_out, B*H_in) 0/1 matrix: rows (b,h) -> (dh, b,i) or (dh, i,b)."""
    G = np.zeros((k * B * H_out, B * H_in), np.float32)
    for dh in range(k):
        for b in range(B):
            for i in range(H_out):
                if i_major:
                    r = (dh * H_out + i) * B + b
                else:
                    r = (dh * B + b) * H_out + i
                G[r, b * H_in + s * i + dh] = 1.0
    return G


def _conv_weight_blockdiag(w, W_out):
    """torch (C_out,C_in,kh,kw) -> (kh, W_out*kw*C_in, W_out*C_out), block-diag
    over the output column index j, matching the gathered lane order (j,dw,c)."""
    C_out, C_in, kh, kw = w.shape
    eye = jnp.eye(W_out, dtype=w.dtype)
    wt = jnp.transpose(w, (2, 3, 1, 0)).reshape(kh, kw * C_in, C_out)
    big = jnp.einsum("jJ,dmn->djmJn", eye, wt)
    return big.reshape(kh, W_out * kw * C_in, W_out * C_out)


def init_params(key, input_shape=(35, 35), num_actions=4):
    (_, _), (_, _), (h3, w3) = _conv_stack_dims(input_shape)
    conv_out_size = 64 * h3 * w3
    ks = jax.random.split(key, 12)
    s = 0.05
    return {
        "conv1_w": jax.random.normal(ks[0], (16, 1, 5, 5), jnp.float32) * s,
        "conv1_b": jax.random.normal(ks[1], (16,), jnp.float32) * s,
        "conv2_w": jax.random.normal(ks[2], (32, 16, 3, 3), jnp.float32) * s,
        "conv2_b": jax.random.normal(ks[3], (32,), jnp.float32) * s,
        "conv3_w": jax.random.normal(ks[4], (64, 32, 3, 3), jnp.float32) * s,
        "conv3_b": jax.random.normal(ks[5], (64,), jnp.float32) * s,
        "fc1_w": jax.random.normal(ks[6], (256, conv_out_size), jnp.float32) * s,
        "fc1_b": jax.random.normal(ks[7], (256,), jnp.float32) * s,
        "fc2_w": jax.random.normal(ks[8], (128, 256), jnp.float32) * s,
        "fc2_b": jax.random.normal(ks[9], (128,), jnp.float32) * s,
        "q_w": jax.random.normal(ks[10], (num_actions, 128), jnp.float32) * s,
        "q_b": jax.random.normal(ks[11], (num_actions,), jnp.float32) * s,
    }


def prepare_params(params, input_shape=(35, 35), batch_size=2):
    """One-time conversion of torch-layout weights to kernel-ready layouts."""
    H, W = input_shape
    (h1, w1), (h2, w2), (h3, w3) = _conv_stack_dims(input_shape)
    B = batch_size
    c1 = params["conv1_w"].shape[0]          # 16
    c2 = params["conv2_w"].shape[0]          # 32
    c3 = params["conv3_w"].shape[0]          # 64
    n1 = params["fc1_w"].shape[0]            # 256

    def bias_row(b):
        return b.reshape(1, -1)

    def conv_bias_row(b, W_out):
        return jnp.tile(b, W_out).reshape(1, -1)

    # torch fc1 consumes the NCHW flatten (c, h, w).  The kernel's conv3 output
    # has rows (i, b) and lanes (j*64 + c), so permute fc1's input axis to
    # (i, (j, c)) and expose the spatial-row index i as a leading axis.
    fc1 = params["fc1_w"].reshape(n1, c3, h3, w3)
    fc1 = jnp.transpose(fc1, (2, 3, 1, 0)).reshape(h3, w3 * c3, n1)

    return {
        # conv1: 1 -> 16, k=5, s=2
        "c1_gw": jnp.asarray(_width_gather(W, w1, 5, 2, 1)),
        "c1_gh": jnp.asarray(_height_gather(H, h1, 5, 2, B, i_major=False)),
        "c1_w": _conv_weight_blockdiag(params["conv1_w"], w1),
        "c1_b": conv_bias_row(params["conv1_b"], w1),
        # conv2: 16 -> 32, k=3, s=2
        "c2_gw": jnp.asarray(_width_gather(w1, w2, 3, 2, c1)),
        "c2_gh": jnp.asarray(_height_gather(h1, h2, 3, 2, B, i_major=False)),
        "c2_w": _conv_weight_blockdiag(params["conv2_w"], w2),
        "c2_b": conv_bias_row(params["conv2_b"], w2),
        # conv3: 32 -> 64, k=3, s=2  (rows ordered (i, b) for the fc1 stage)
        "c3_gw": jnp.asarray(_width_gather(w2, w3, 3, 2, c2)),
        "c3_gh": jnp.asarray(_height_gather(h2, h3, 3, 2, B, i_major=True)),
        "c3_w": _conv_weight_blockdiag(params["conv3_w"], w3),
        "c3_b": conv_bias_row(params["conv3_b"], w3),
        # fc head
        "fc1_w": fc1, "fc1_b": bias_row(params["fc1_b"]),
        "fc2_w": params["fc2_w"].T, "fc2_b": bias_row(params["fc2_b"]),
        "q_w": params["q_w"].T, "q_b": bias_row(params["q_b"]),
    }


# ---------------------------------------------------------------------------
# Pure-JAX reference (torch-layout params, NCHW) for correctness check
# ---------------------------------------------------------------------------
def qnetwork_reference(params, state):
    dn = ("NCHW", "OIHW", "NCHW")

    def conv(x, w, b):
        y = jax.lax.conv_general_dilated(
            x, w, window_strides=(2, 2), padding="VALID", dimension_numbers=dn)
        return jnp.maximum(y + b[None, :, None, None], 0.0)

    x = conv(state, params["conv1_w"], params["conv1_b"])
    x = conv(x, params["conv2_w"], params["conv2_b"])
    x = conv(x, params["conv3_w"], params["conv3_b"])
    x = x.reshape(x.shape[0], -1)
    x = jnp.maximum(x @ params["fc1_w"].T + params["fc1_b"], 0.0)
    x = jnp.maximum(x @ params["fc2_w"].T + params["fc2_b"], 0.0)
    return x @ params["q_w"].T + params["q_b"]


if __name__ == "__main__":
    key = jax.random.PRNGKey(0)
    k_param, k_in = jax.random.split(key)

    input_shape = (35, 35)       # small but consistent: conv stack -> 3x3x64
    num_actions = 4
    batch = 2

    params = init_params(k_param, input_shape=input_shape, num_actions=num_actions)
    kparams = prepare_params(params, input_shape=input_shape, batch_size=batch)
    state = jax.random.normal(k_in, (batch, 1, *input_shape), jnp.float32)

    fwd = jax.jit(qnetwork_forward)
    q = jax.block_until_ready(fwd(kparams, state))

    q_ref = jax.block_until_ready(qnetwork_reference(params, state))
    assert q.shape == (batch, num_actions)
    # Tolerance leaves margin for MXU f32 matmul rounding; real layout bugs
    # would show up as O(1) relative errors.
    assert jnp.allclose(q, q_ref, atol=2e-3, rtol=2e-3), "mismatch vs reference"

    print("KERNEL_OK")
</pallas_src>

<mosaic_0001>
module attributes {stable_mosaic.version = 11 : i64} {
  func.func @_qnet_kernel(%arg0: memref<70x35xf32, #tpu.memory_space<vmem>>, %arg1: memref<35x80xf32, #tpu.memory_space<vmem>>, %arg2: memref<160x70xf32, #tpu.memory_space<vmem>>, %arg3: memref<5x80x256xf32, #tpu.memory_space<vmem>>, %arg4: memref<1x256xf32, #tpu.memory_space<vmem>>, %arg5: memref<256x336xf32, #tpu.memory_space<vmem>>, %arg6: memref<42x32xf32, #tpu.memory_space<vmem>>, %arg7: memref<3x336x224xf32, #tpu.memory_space<vmem>>, %arg8: memref<1x224xf32, #tpu.memory_space<vmem>>, %arg9: memref<224x288xf32, #tpu.memory_space<vmem>>, %arg10: memref<18x14xf32, #tpu.memory_space<vmem>>, %arg11: memref<3x288x192xf32, #tpu.memory_space<vmem>>, %arg12: memref<1x192xf32, #tpu.memory_space<vmem>>, %arg13: memref<3x192x256xf32, #tpu.memory_space<vmem>>, %arg14: memref<1x256xf32, #tpu.memory_space<vmem>>, %arg15: memref<256x128xf32, #tpu.memory_space<vmem>>, %arg16: memref<1x128xf32, #tpu.memory_space<vmem>>, %arg17: memref<128x4xf32, #tpu.memory_space<vmem>>, %arg18: memref<1x4xf32, #tpu.memory_space<vmem>>, %arg19: memref<2x4xf32, #tpu.memory_space<vmem>>) attributes {dimension_semantics = [], scalar_prefetch = 0 : i64, scratch_operands = 0 : i64, tpu.core_type = #tpu.core_type<tc>} {
    %c0 = arith.constant 0 : index
    %c0_0 = arith.constant 0 : index
    %0 = vector.load %arg0[%c0, %c0_0] : memref<70x35xf32, #tpu.memory_space<vmem>>, vector<70x35xf32>
    %c0_1 = arith.constant 0 : index
    %c0_2 = arith.constant 0 : index
    %1 = vector.load %arg1[%c0_1, %c0_2] : memref<35x80xf32, #tpu.memory_space<vmem>>, vector<35x80xf32>
    %cst = arith.constant dense<0.000000e+00> : vector<70x80xf32>
    %2 = tpu.matmul %0, %1, %cst {dimension_numbers = #tpu.dot_dimension_numbers<[1], [0], [0], [1], [0, 0, 1, 1], [], []>} : vector<70x35xf32>, vector<35x80xf32>, vector<70x80xf32> -> vector<70x80xf32>
    %c0_3 = arith.constant 0 : index
    %c0_4 = arith.constant 0 : index
    %3 = vector.load %arg2[%c0_3, %c0_4] : memref<160x70xf32, #tpu.memory_space<vmem>>, vector<160x70xf32>
    %cst_5 = arith.constant dense<0.000000e+00> : vector<160x80xf32>
    %4 = tpu.matmul %3, %2, %cst_5 {dimension_numbers = #tpu.dot_dimension_numbers<[1], [0], [0], [1], [0, 0, 1, 1], [], []>} : vector<160x70xf32>, vector<70x80xf32>, vector<160x80xf32> -> vector<160x80xf32>
    %5 = vector.extract_strided_slice %4 {offsets = [0, 0], sizes = [32, 80], strides = [1, 1]} : vector<160x80xf32> to vector<32x80xf32>
    %c0_6 = arith.constant 0 : index
    %c0_7 = arith.constant 0 : index
    %c0_8 = arith.constant 0 : index
    %6 = vector.load %arg3[%c0_6, %c0_7, %c0_8] : memref<5x80x256xf32, #tpu.memory_space<vmem>>, vector<1x80x256xf32>
    %7 = vector.shape_cast %6 : vector<1x80x256xf32> to vector<80x256xf32>
    %cst_9 = arith.constant dense<0.000000e+00> : vector<32x256xf32>
    %8 = tpu.matmul %5, %7, %cst_9 {dimension_numbers = #tpu.dot_dimension_numbers<[1], [0], [0], [1], [0, 0, 1, 1], [], []>} : vector<32x80xf32>, vector<80x256xf32>, vector<32x256xf32> -> vector<32x256xf32>
    %9 = vector.extract_strided_slice %4 {offsets = [32, 0], sizes = [32, 80], strides = [1, 1]} : vector<160x80xf32> to vector<32x80xf32>
    %c1 = arith.constant 1 : index
    %c0_10 = arith.constant 0 : index
    %c0_11 = arith.constant 0 : index
    %10 = vector.load %arg3[%c1, %c0_10, %c0_11] : memref<5x80x256xf32, #tpu.memory_space<vmem>>, vector<1x80x256xf32>
    %11 = vector.shape_cast %10 : vector<1x80x256xf32> to vector<80x256xf32>
    %cst_12 = arith.constant dense<0.000000e+00> : vector<32x256xf32>
    %12 = tpu.matmul %9, %11, %cst_12 {dimension_numbers = #tpu.dot_dimension_numbers<[1], [0], [0], [1], [0, 0, 1, 1], [], []>} : vector<32x80xf32>, vector<80x256xf32>, vector<32x256xf32> -> vector<32x256xf32>
    %13 = arith.addf %8, %12 : vector<32x256xf32>
    %14 = vector.extract_strided_slice %4 {offsets = [64, 0], sizes = [32, 80], strides = [1, 1]} : vector<160x80xf32> to vector<32x80xf32>
    %c2 = arith.constant 2 : index
    %c0_13 = arith.constant 0 : index
    %c0_14 = arith.constant 0 : index
    %15 = vector.load %arg3[%c2, %c0_13, %c0_14] : memref<5x80x256xf32, #tpu.memory_space<vmem>>, vector<1x80x256xf32>
    %16 = vector.shape_cast %15 : vector<1x80x256xf32> to vector<80x256xf32>
    %cst_15 = arith.constant dense<0.000000e+00> : vector<32x256xf32>
    %17 = tpu.matmul %14, %16, %cst_15 {dimension_numbers = #tpu.dot_dimension_numbers<[1], [0], [0], [1], [0, 0, 1, 1], [], []>} : vector<32x80xf32>, vector<80x256xf32>, vector<32x256xf32> -> vector<32x256xf32>
    %18 = arith.addf %13, %17 : vector<32x256xf32>
    %19 = vector.extract_strided_slice %4 {offsets = [96, 0], sizes = [32, 80], strides = [1, 1]} : vector<160x80xf32> to vector<32x80xf32>
    %c3 = arith.constant 3 : index
    %c0_16 = arith.constant 0 : index
    %c0_17 = arith.constant 0 : index
    %20 = vector.load %arg3[%c3, %c0_16, %c0_17] : memref<5x80x256xf32, #tpu.memory_space<vmem>>, vector<1x80x256xf32>
    %21 = vector.shape_cast %20 : vector<1x80x256xf32> to vector<80x256xf32>
    %cst_18 = arith.constant dense<0.000000e+00> : vector<32x256xf32>
    %22 = tpu.matmul %19, %21, %cst_18 {dimension_numbers = #tpu.dot_dimension_numbers<[1], [0], [0], [1], [0, 0, 1, 1], [], []>} : vector<32x80xf32>, vector<80x256xf32>, vector<32x256xf32> -> vector<32x256xf32>
    %23 = arith.addf %18, %22 : vector<32x256xf32>
    %24 = vector.extract_strided_slice %4 {offsets = [128, 0], sizes = [32, 80], strides = [1, 1]} : vector<160x80xf32> to vector<32x80xf32>
    %c4 = arith.constant 4 : index
    %c0_19 = arith.constant 0 : index
    %c0_20 = arith.constant 0 : index
    %25 = vector.load %arg3[%c4, %c0_19, %c0_20] : memref<5x80x256xf32, #tpu.memory_space<vmem>>, vector<1x80x256xf32>
    %26 = vector.shape_cast %25 : vector<1x80x256xf32> to vector<80x256xf32>
    %cst_21 = arith.constant dense<0.000000e+00> : vector<32x256xf32>
    %27 = tpu.matmul %24, %26, %cst_21 {dimension_numbers = #tpu.dot_dimension_numbers<[1], [0], [0], [1], [0, 0, 1, 1], [], []>} : vector<32x80xf32>, vector<80x256xf32>, vector<32x256xf32> -> vector<32x256xf32>
    %28 = arith.addf %23, %27 : vector<32x256xf32>
    %c0_22 = arith.constant 0 : index
    %c0_23 = arith.constant 0 : index
    %29 = vector.load %arg4[%c0_22, %c0_23] : memref<1x256xf32, #tpu.memory_space<vmem>>, vector<1x256xf32>
    %30 = vector.broadcast %29 : vector<1x256xf32> to vector<32x256xf32>
    %31 = arith.addf %28, %30 : vector<32x256xf32>
    %cst_24 = arith.constant 0.000000e+00 : f32
    %32 = vector.broadcast %cst_24 : f32 to vector<32x256xf32>
    %33 = arith.maximumf %31, %32 : vector<32x256xf32>
    %c0_25 = arith.constant 0 : index
    %c0_26 = arith.constant 0 : index
    %34 = vector.load %arg5[%c0_25, %c0_26] : memref<256x336xf32, #tpu.memory_space<vmem>>, vector<256x336xf32>
    %cst_27 = arith.constant dense<0.000000e+00> : vector<32x336xf32>
    %35 = tpu.matmul %33, %34, %cst_27 {dimension_numbers = #tpu.dot_dimension_numbers<[1], [0], [0], [1], [0, 0, 1, 1], [], []>} : vector<32x256xf32>, vector<256x336xf32>, vector<32x336xf32> -> vector<32x336xf32>
    %c0_28 = arith.constant 0 : index
    %c0_29 = arith.constant 0 : index
    %36 = vector.load %arg6[%c0_28, %c0_29] : memref<42x32xf32, #tpu.memory_space<vmem>>, vector<42x32xf32>
    %cst_30 = arith.constant dense<0.000000e+00> : vector<42x336xf32>
    %37 = tpu.matmul %36, %35, %cst_30 {dimension_numbers = #tpu.dot_dimension_numbers<[1], [0], [0], [1], [0, 0, 1, 1], [], []>} : vector<42x32xf32>, vector<32x336xf32>, vector<42x336xf32> -> vector<42x336xf32>
    %38 = vector.extract_strided_slice %37 {offsets = [0, 0], sizes = [14, 336], strides = [1, 1]} : vector<42x336xf32> to vector<14x336xf32>
    %c0_31 = arith.constant 0 : index
    %c0_32 = arith.constant 0 : index
    %c0_33 = arith.constant 0 : index
    %39 = vector.load %arg7[%c0_31, %c0_32, %c0_33] : memref<3x336x224xf32, #tpu.memory_space<vmem>>, vector<1x336x224xf32>
    %40 = vector.shape_cast %39 : vector<1x336x224xf32> to vector<336x224xf32>
    %cst_34 = arith.constant dense<0.000000e+00> : vector<14x224xf32>
    %41 = tpu.matmul %38, %40, %cst_34 {dimension_numbers = #tpu.dot_dimension_numbers<[1], [0], [0], [1], [0, 0, 1, 1], [], []>} : vector<14x336xf32>, vector<336x224xf32>, vector<14x224xf32> -> vector<14x224xf32>
    %42 = vector.extract_strided_slice %37 {offsets = [14, 0], sizes = [14, 336], strides = [1, 1]} : vector<42x336xf32> to vector<14x336xf32>
    %c1_35 = arith.constant 1 : index
    %c0_36 = arith.constant 0 : index
    %c0_37 = arith.constant 0 : index
    %43 = vector.load %arg7[%c1_35, %c0_36, %c0_37] : memref<3x336x224xf32, #tpu.memory_space<vmem>>, vector<1x336x224xf32>
    %44 = vector.shape_cast %43 : vector<1x336x224xf32> to vector<336x224xf32>
    %cst_38 = arith.constant dense<0.000000e+00> : vector<14x224xf32>
    %45 = tpu.matmul %42, %44, %cst_38 {dimension_numbers = #tpu.dot_dimension_numbers<[1], [0], [0], [1], [0, 0, 1, 1], [], []>} : vector<14x336xf32>, vector<336x224xf32>, vector<14x224xf32> -> vector<14x224xf32>
    %46 = arith.addf %41, %45 : vector<14x224xf32>
    %47 = vector.extract_strided_slice %37 {offsets = [28, 0], sizes = [14, 336], strides = [1, 1]} : vector<42x336xf32> to vector<14x336xf32>
    %c2_39 = arith.constant 2 : index
    %c0_40 = arith.constant 0 : index
    %c0_41 = arith.constant 0 : index
    %48 = vector.load %arg7[%c2_39, %c0_40, %c0_41] : memref<3x336x224xf32, #tpu.memory_space<vmem>>, vector<1x336x224xf32>
    %49 = vector.shape_cast %48 : vector<1x336x224xf32> to vector<336x224xf32>
    %cst_42 = arith.constant dense<0.000000e+00> : vector<14x224xf32>
    %50 = tpu.matmul %47, %49, %cst_42 {dimension_numbers = #tpu.dot_dimension_numbers<[1], [0], [0], [1], [0, 0, 1, 1], [], []>} : vector<14x336xf32>, vector<336x224xf32>, vector<14x224xf32> -> vector<14x224xf32>
    %51 = arith.addf %46, %50 : vector<14x224xf32>
    %c0_43 = arith.constant 0 : index
    %c0_44 = arith.constant 0 : index
    %52 = vector.load %arg8[%c0_43, %c0_44] : memref<1x224xf32, #tpu.memory_space<vmem>>, vector<1x224xf32>
    %53 = vector.broadcast %52 : vector<1x224xf32> to vector<14x224xf32>
    %54 = arith.addf %51, %53 : vector<14x224xf32>
    %cst_45 = arith.constant 0.000000e+00 : f32
    %55 = vector.broadcast %cst_45 : f32 to vector<14x224xf32>
    %56 = arith.maximumf %54, %55 : vector<14x224xf32>
    %c0_46 = arith.constant 0 : index
    %c0_47 = arith.constant 0 : index
    %57 = vector.load %arg9[%c0_46, %c0_47] : memref<224x288xf32, #tpu.memory_space<vmem>>, vector<224x288xf32>
    %cst_48 = arith.constant dense<0.000000e+00> : vector<14x288xf32>
    %58 = tpu.matmul %56, %57, %cst_48 {dimension_numbers = #tpu.dot_dimension_numbers<[1], [0], [0], [1], [0, 0, 1, 1], [], []>} : vector<14x224xf32>, vector<224x288xf32>, vector<14x288xf32> -> vector<14x288xf32>
    %c0_49 = arith.constant 0 : index
    %c0_50 = arith.constant 0 : index
    %59 = vector.load %arg10[%c0_49, %c0_50] : memref<18x14xf32, #tpu.memory_space<vmem>>, vector<18x14xf32>
    %cst_51 = arith.constant dense<0.000000e+00> : vector<18x288xf32>
    %60 = tpu.matmul %59, %58, %cst_51 {dimension_numbers = #tpu.dot_dimension_numbers<[1], [0], [0], [1], [0, 0, 1, 1], [], []>} : vector<18x14xf32>, vector<14x288xf32>, vector<18x288xf32> -> vector<18x288xf32>
    %61 = vector.extract_strided_slice %60 {offsets = [0, 0], sizes = [6, 288], strides = [1, 1]} : vector<18x288xf32> to vector<6x288xf32>
    %c0_52 = arith.constant 0 : index
    %c0_53 = arith.constant 0 : index
    %c0_54 = arith.constant 0 : index
    %62 = vector.load %arg11[%c0_52, %c0_53, %c0_54] : memref<3x288x192xf32, #tpu.memory_space<vmem>>, vector<1x288x192xf32>
    %63 = vector.shape_cast %62 : vector<1x288x192xf32> to vector<288x192xf32>
    %cst_55 = arith.constant dense<0.000000e+00> : vector<6x192xf32>
    %64 = tpu.matmul %61, %63, %cst_55 {dimension_numbers = #tpu.dot_dimension_numbers<[1], [0], [0], [1], [0, 0, 1, 1], [], []>} : vector<6x288xf32>, vector<288x192xf32>, vector<6x192xf32> -> vector<6x192xf32>
    %65 = vector.extract_strided_slice %60 {offsets = [6, 0], sizes = [6, 288], strides = [1, 1]} : vector<18x288xf32> to vector<6x288xf32>
    %c1_56 = arith.constant 1 : index
    %c0_57 = arith.constant 0 : index
    %c0_58 = arith.constant 0 : index
    %66 = vector.load %arg11[%c1_56, %c0_57, %c0_58] : memref<3x288x192xf32, #tpu.memory_space<vmem>>, vector<1x288x192xf32>
    %67 = vector.shape_cast %66 : vector<1x288x192xf32> to vector<288x192xf32>
    %cst_59 = arith.constant dense<0.000000e+00> : vector<6x192xf32>
    %68 = tpu.matmul %65, %67, %cst_59 {dimension_numbers = #tpu.dot_dimension_numbers<[1], [0], [0], [1], [0, 0, 1, 1], [], []>} : vector<6x288xf32>, vector<288x192xf32>, vector<6x192xf32> -> vector<6x192xf32>
    %69 = arith.addf %64, %68 : vector<6x192xf32>
    %70 = vector.extract_strided_slice %60 {offsets = [12, 0], sizes = [6, 288], strides = [1, 1]} : vector<18x288xf32> to vector<6x288xf32>
    %c2_60 = arith.constant 2 : index
    %c0_61 = arith.constant 0 : index
    %c0_62 = arith.constant 0 : index
    %71 = vector.load %arg11[%c2_60, %c0_61, %c0_62] : memref<3x288x192xf32, #tpu.memory_space<vmem>>, vector<1x288x192xf32>
    %72 = vector.shape_cast %71 : vector<1x288x192xf32> to vector<288x192xf32>
    %cst_63 = arith.constant dense<0.000000e+00> : vector<6x192xf32>
    %73 = tpu.matmul %70, %72, %cst_63 {dimension_numbers = #tpu.dot_dimension_numbers<[1], [0], [0], [1], [0, 0, 1, 1], [], []>} : vector<6x288xf32>, vector<288x192xf32>, vector<6x192xf32> -> vector<6x192xf32>
    %74 = arith.addf %69, %73 : vector<6x192xf32>
    %c0_64 = arith.constant 0 : index
    %c0_65 = arith.constant 0 : index
    %75 = vector.load %arg12[%c0_64, %c0_65] : memref<1x192xf32, #tpu.memory_space<vmem>>, vector<1x192xf32>
    %76 = vector.broadcast %75 : vector<1x192xf32> to vector<6x192xf32>
    %77 = arith.addf %74, %76 : vector<6x192xf32>
    %cst_66 = arith.constant 0.000000e+00 : f32
    %78 = vector.broadcast %cst_66 : f32 to vector<6x192xf32>
    %79 = arith.maximumf %77, %78 : vector<6x192xf32>
    %80 = vector.extract_strided_slice %79 {offsets = [0, 0], sizes = [2, 192], strides = [1, 1]} : vector<6x192xf32> to vector<2x192xf32>
    %c0_67 = arith.constant 0 : index
    %c0_68 = arith.constant 0 : index
    %c0_69 = arith.constant 0 : index
    %81 = vector.load %arg13[%c0_67, %c0_68, %c0_69] : memref<3x192x256xf32, #tpu.memory_space<vmem>>, vector<1x192x256xf32>
    %82 = vector.shape_cast %81 : vector<1x192x256xf32> to vector<192x256xf32>
    %cst_70 = arith.constant dense<0.000000e+00> : vector<2x256xf32>
    %83 = tpu.matmul %80, %82, %cst_70 {dimension_numbers = #tpu.dot_dimension_numbers<[1], [0], [0], [1], [0, 0, 1, 1], [], []>} : vector<2x192xf32>, vector<192x256xf32>, vector<2x256xf32> -> vector<2x256xf32>
    %84 = vector.extract_strided_slice %79 {offsets = [2, 0], sizes = [2, 192], strides = [1, 1]} : vector<6x192xf32> to vector<2x192xf32>
    %c1_71 = arith.constant 1 : index
    %c0_72 = arith.constant 0 : index
    %c0_73 = arith.constant 0 : index
    %85 = vector.load %arg13[%c1_71, %c0_72, %c0_73] : memref<3x192x256xf32, #tpu.memory_space<vmem>>, vector<1x192x256xf32>
    %86 = vector.shape_cast %85 : vector<1x192x256xf32> to vector<192x256xf32>
    %cst_74 = arith.constant dense<0.000000e+00> : vector<2x256xf32>
    %87 = tpu.matmul %84, %86, %cst_74 {dimension_numbers = #tpu.dot_dimension_numbers<[1], [0], [0], [1], [0, 0, 1, 1], [], []>} : vector<2x192xf32>, vector<192x256xf32>, vector<2x256xf32> -> vector<2x256xf32>
    %88 = arith.addf %83, %87 : vector<2x256xf32>
    %89 = vector.extract_strided_slice %79 {offsets = [4, 0], sizes = [2, 192], strides = [1, 1]} : vector<6x192xf32> to vector<2x192xf32>
    %c2_75 = arith.constant 2 : index
    %c0_76 = arith.constant 0 : index
    %c0_77 = arith.constant 0 : index
    %90 = vector.load %arg13[%c2_75, %c0_76, %c0_77] : memref<3x192x256xf32, #tpu.memory_space<vmem>>, vector<1x192x256xf32>
    %91 = vector.shape_cast %90 : vector<1x192x256xf32> to vector<192x256xf32>
    %cst_78 = arith.constant dense<0.000000e+00> : vector<2x256xf32>
    %92 = tpu.matmul %89, %91, %cst_78 {dimension_numbers = #tpu.dot_dimension_numbers<[1], [0], [0], [1], [0, 0, 1, 1], [], []>} : vector<2x192xf32>, vector<192x256xf32>, vector<2x256xf32> -> vector<2x256xf32>
    %93 = arith.addf %88, %92 : vector<2x256xf32>
    %c0_79 = arith.constant 0 : index
    %c0_80 = arith.constant 0 : index
    %94 = vector.load %arg14[%c0_79, %c0_80] : memref<1x256xf32, #tpu.memory_space<vmem>>, vector<1x256xf32>
    %95 = vector.broadcast %94 : vector<1x256xf32> to vector<2x256xf32>
    %96 = arith.addf %93, %95 : vector<2x256xf32>
    %cst_81 = arith.constant 0.000000e+00 : f32
    %97 = vector.broadcast %cst_81 : f32 to vector<2x256xf32>
    %98 = arith.maximumf %96, %97 : vector<2x256xf32>
    %c0_82 = arith.constant 0 : index
    %c0_83 = arith.constant 0 : index
    %99 = vector.load %arg15[%c0_82, %c0_83] : memref<256x128xf32, #tpu.memory_space<vmem>>, vector<256x128xf32>
    %cst_84 = arith.constant dense<0.000000e+00> : vector<2x128xf32>
    %100 = tpu.matmul %98, %99, %cst_84 {dimension_numbers = #tpu.dot_dimension_numbers<[1], [0], [0], [1], [0, 0, 1, 1], [], []>} : vector<2x256xf32>, vector<256x128xf32>, vector<2x128xf32> -> vector<2x128xf32>
    %c0_85 = arith.constant 0 : index
    %c0_86 = arith.constant 0 : index
    %101 = vector.load %arg16[%c0_85, %c0_86] : memref<1x128xf32, #tpu.memory_space<vmem>>, vector<1x128xf32>
    %102 = vector.broadcast %101 : vector<1x128xf32> to vector<2x128xf32>
    %103 = arith.addf %100, %102 : vector<2x128xf32>
    %cst_87 = arith.constant 0.000000e+00 : f32
    %104 = vector.broadcast %cst_87 : f32 to vector<2x128xf32>
    %105 = arith.maximumf %103, %104 : vector<2x128xf32>
    %c0_88 = arith.constant 0 : index
    %c0_89 = arith.constant 0 : index
    %106 = vector.load %arg17[%c0_88, %c0_89] : memref<128x4xf32, #tpu.memory_space<vmem>>, vector<128x4xf32>
    %cst_90 = arith.constant dense<0.000000e+00> : vector<2x4xf32>
    %107 = tpu.matmul %105, %106, %cst_90 {dimension_numbers = #tpu.dot_dimension_numbers<[1], [0], [0], [1], [0, 0, 1, 1], [], []>} : vector<2x128xf32>, vector<128x4xf32>, vector<2x4xf32> -> vector<2x4xf32>
    %c0_91 = arith.constant 0 : index
    %c0_92 = arith.constant 0 : index
    %108 = vector.load %arg18[%c0_91, %c0_92] : memref<1x4xf32, #tpu.memory_space<vmem>>, vector<1x4xf32>
    %109 = vector.broadcast %108 : vector<1x4xf32> to vector<2x4xf32>
    %110 = arith.addf %107, %109 : vector<2x4xf32>
    %c0_93 = arith.constant 0 : index
    %c0_94 = arith.constant 0 : index
    %111 = vector.load %arg19[%c0_93, %c0_94] : memref<2x4xf32, #tpu.memory_space<vmem>>, vector<2x4xf32>
    tpu.vector_store %arg19[%c0_93, %c0_94], %110 {strides = array<i32>} : memref<2x4xf32, #tpu.memory_space<vmem>>, vector<2x4xf32>,
    return
  }
}

</mosaic_0001>

<bundles_post_ra>
// kernel: qnetwork_forward.1
= control target key start
LH: loop header
LB: loop body
LE: loop exit
PB: predicated region body
PF: predicated region fallthrough
CT: control target
= control target key end

     0   :  { %s8604_s0 = inlined_call_operand.vmem [shape: f32[70,35], index: 0, kind: input, shape index: {}]   ;;  %s8605_s1 = inlined_call_operand.vmem [shape: f32[35,80], index: 1, kind: input, shape index: {}]   ;;  %s8606_s2 = inlined_call_operand.vmem [shape: f32[160,70], index: 2, kind: input, shape index: {}]   ;;  %s8607_s3 = inlined_call_operand.hbm [shape: f32[5,80,256], index: 3, kind: input, shape index: {}]   ;;  %s8608_s4 = inlined_call_operand.vmem [shape: f32[1,256], index: 4, kind: input, shape index: {}]   ;;  %s8609_s5 = inlined_call_operand.vmem [shape: f32[256,336], index: 5, kind: input, shape index: {}]   ;;  %s8610_s6 = inlined_call_operand.vmem [shape: f32[42,32], index: 6, kind: input, shape index: {}]   ;;  %s8611_s7 = inlined_call_operand.vmem [shape: f32[3,336,224], index: 7, kind: input, shape index: {}]   ;;  %s8612_s8 = inlined_call_operand.vmem [shape: f32[1,224], index: 8, kind: input, shape index: {}]   ;;  %s8613_s9 = inlined_call_operand.vmem [shape: f32[224,288], index: 9, kind: input, shape index: {}]   ;;  %s8614_s10 = inlined_call_operand.vmem [shape: f32[18,14], index: 10, kind: input, shape index: {}]   ;;  %s8615_s11 = inlined_call_operand.hbm [shape: f32[3,288,192], index: 11, kind: input, shape index: {}]   ;;  %s8616_s12 = inlined_call_operand.vmem [shape: f32[1,192], index: 12, kind: input, shape index: {}]   ;;  %s8617_s13 = inlined_call_operand.vmem [shape: f32[3,192,256], index: 13, kind: input, shape index: {}]   ;;  %s8618_s14 = inlined_call_operand.vmem [shape: f32[1,256], index: 14, kind: input, shape index: {}]   ;;  %s8619_s15 = inlined_call_operand.vmem [shape: f32[256,128], index: 15, kind: input, shape index: {}]   ;;  %s8620_s16 = inlined_call_operand.vmem [shape: f32[1,128], index: 16, kind: input, shape index: {}]   ;;  %s8621_s17 = inlined_call_operand.vmem [shape: f32[128,4], index: 17, kind: input, shape index: {}]   ;;  %s8622_s18 = inlined_call_operand.vmem [shape: f32[1,4], index: 18, kind: input, shape index: {}]   ;;  %s8623_s19 = inlined_call_operand.hbm [shape: f32[2,4], index: 19, kind: output, shape index: {}]  }
   0x1   :  { %8629 = sst [smem:[#allocation11_spill]] %s8604_s0 }
   0x2   :  { %8630 = sst [smem:[#allocation12_spill]] %s8605_s1 }
   0x3   :  { %8631 = sst [smem:[#allocation13_spill]] %s8606_s2 }
   0x4   :  { %8632 = sst [smem:[#allocation14_spill]] %s8607_s3 }
   0x5   :  { %8633 = sst [smem:[#allocation15_spill]] %s8623_s19 }
   0x6   :  { %24 = vsyncpa [#allocation3], 0 }
   0x7   :  { %25 = vsyncpa [#allocation6], 0 }
   0x8   :  { %26 = vsyncpa [#allocation4], 0  ;;  %s6019_s0 = smov [#allocation2]   ;;  %s8634_s1 = sld [smem:[#allocation14_spill]] }
   0x9   :  { %s38_s30 = sshll.u32 %s6019_s0, 4  ;;  %s39_s30 = int_to_ptr.vmem [resolvable:$true] %s38_s30 }
   0xe   :  { %s5947_s22 = scalar_lea.hbm %s8634_s1, 12800 }
   0xf   :  { %p5948_p0 = scmp.ne.s32.totalorder %s8634_s1, %s5947_s22  ;;  %p5951_p1 = scmp.lt.u32.totalorder %s5947_s22, %s8634_s1 }
  0x11   :  { %p5953_p2 = pnand %p5951_p1, %p5948_p0 }
  0x13   :  { %5956 = shalt.err (!%p5953_p2)
}
  0x14   :  { %s5957_s3 = scalar_lea.vmem %s39_s30, 12800  ;;  %p5962_p4 = scmp.lt.s32.totalorder %s39_s30, %s39_s30 }
  0x15   :  { %p5958_p3 = scmp.ne.s32.totalorder %s39_s30, %s5957_s3  ;;  %p5963_p5 = scmp.lt.s32.totalorder %s5957_s3, %s5957_s3 }
  0x17   :  { %p5964_p6 = por %p5963_p5, %p5962_p4 }
  0x19   :  { %p5965_p7 = pnand %p5964_p6, %p5958_p3 }
  0x1b   :  { %5968 = shalt.err (!%p5965_p7)
}
  0x1c   :  { %s6020_s26 = smov 256   ;;  %s6021_s27 = smov 16  }
  0x1d   :  { %44 = dma.hbm_to_vmem [thread:$0]  %s8634_s1, 12800, %s39_s30, [#allocation3], %s6020_s26, %s6020_s26, %s6021_s27  }
  0x1e   :  { %s6022_s0 = smov [#allocation5]   ;;  %s5969_s2 = scalar_lea.hbm %s8615_s11, 27648 }
  0x1f   :  { %s64_s20 = sshll.u32 %s6022_s0, 4  ;;  %p5970_p8 = scmp.ne.s32.totalorder %s8615_s11, %s5969_s2  ;;  %s65_s20 = int_to_ptr.vmem [resolvable:$true] %s64_s20 }
  0x20   :  { %p5973_p9 = scmp.lt.u32.totalorder %s5969_s2, %s8615_s11 }
  0x22   :  { %p5975_p10 = pnand %p5973_p9, %p5970_p8 }
  0x24   :  { %5978 = shalt.err (!%p5975_p10)
}
  0x25   :  { %s5979_s19 = scalar_lea.vmem %s65_s20, 27648  ;;  %p5984_p12 = scmp.lt.s32.totalorder %s65_s20, %s65_s20 }
  0x26   :  { %p5980_p11 = scmp.ne.s32.totalorder %s65_s20, %s5979_s19  ;;  %p5985_p13 = scmp.lt.s32.totalorder %s5979_s19, %s5979_s19 }
  0x28   :  { %p5986_p0 = por %p5985_p13, %p5984_p12 }
  0x2a   :  { %p5987_p1 = pnand %p5986_p0, %p5980_p11 }
  0x2c   :  { %5990 = shalt.err (!%p5987_p1)
}
  0x2d   :  { %70 = dma.hbm_to_vmem [thread:$0]  %s8615_s11, 27648, %s65_s20, [#allocation6], %s6020_s26, %s6020_s26, %s6021_s27  }
  0x2e   :  { %6013 = dma.done.wait [#allocation3], 12800  }
  0x2f   :  { %6014 = vsyncadd [#allocation3], 4294954496 }
  0x30   :  { %6015 = dma.done.wait [#allocation6], 27648  }
  0x31   :  { %6016 = vsyncadd [#allocation6], 4294939648  ;;  %v6023_v0 = vmov 0.0|0.0   ;;  %vm6024_vm0 = vmmov 0   ;;  %v6025_v1 = vmov 0.0   ;;  %s8635_s11 = sld [smem:[#allocation12_spill]] }
  0x32   :  { %4856 = vmatprep.subr.bf16.mxu0 %v6023_v0  ;;  %5866 = vmatprep.subr.bf16.mxu1 %v6023_v0  ;;  %vm133_vm1 = vcmask 1042432   ;;  %s8636_s25 = sld [smem:[#allocation11_spill]]  ;;  %vm105_vm2 = vcmask 285696   ;;  %s8637_s1 = sld [smem:[#allocation13_spill]]  ;;  %vm267_vm3 = vcmask 572416   ;;  %v519_v19 = vld [vmem:[#allocation2 + $0xa8] sm:$0xff] }
  0x33   :  { %4716 = vmatprep.mubr.msk.f32.mxu0 %vm6024_vm0, %v6025_v1  ;;  %4731 = vmatprep.mubr.msk.f32.mxu1 %vm6024_vm0, %v6025_v1  ;;  %v521_v20 = vld [vmem:[#allocation2 + $0xb8] sm:$0xff]  ;;  %v518_v21 = vld [vmem:[#allocation2 + $0xa0] sm:$0xff]  ;;  %v520_v23 = vld [vmem:[#allocation2 + $0xb0] sm:$0xff]  ;;  %vm328_vm4 = vcmask 1045504   ;;  %vm538_vm5 = vcmask 654336   ;;  %vm1435_vm6 = vcmask 261120  }
  0x34   :  { %v4878_v22 = vpack.c.bf16 %v521_v20, %v519_v19  ;;  %v523_v24 = vld [vmem:[#allocation2 + $0xc8] sm:$0xff]  ;;  %v525_v25 = vld [vmem:[#allocation2 + $0xd8] sm:$0xff]  ;;  %v4880_v26 = vpack.c.bf16 %v520_v23, %v518_v21  ;;  %v522_v28 = vld [vmem:[#allocation2 + $0xc0] sm:$0xff]  ;;  %vm1828_vm7 = vcmask 1041408   ;;  %vm2256_vm8 = vcmask 1043456   ;;  %s6027_s20 = smov [#allocation7]  }
  0x35   :  { %v4882_v27 = vpack.c.bf16 %v525_v25, %v523_v24  ;;  %v524_v29 = vld [vmem:[#allocation2 + $0xd0] sm:$0xff]  ;;  %v527_v30 = vld [vmem:[#allocation2 + $0xe8] sm:$0xff]  ;;  %v529_v31 = vld [vmem:[#allocation2 + $0xf8] sm:$0xff]  ;;  %vm2542_vm9 = vcmask 785408   ;;  %vm6026_vm10 = vmmov 1   ;;  %vm2704_vm12 = vcmask 113664  }
  0x36   :  { %v4884_v32 = vpack.c.bf16 %v524_v29, %v522_v28  ;;  %v4886_v33 = vpack.c.bf16 %v529_v31, %v527_v30  ;;  %v526_v34 = vld [vmem:[#allocation2 + $0xe0] sm:$0xff]  ;;  %v528_v35 = vld [vmem:[#allocation2 + $0xf0] sm:$0xff]  ;;  %v537_v23 = vld [vmem:[#allocation2 + $0x138] sm:$0xff]  ;;  %vm3687_vm13 = vcmask 523264   ;;  %s4188_s21 = sshll.u32 %s6027_s20, 4  ;;  %vm4180_vm14 = vcmask 25600   ;;  %s4189_s21 = int_to_ptr.vmem [resolvable:$true] %s4188_s21 }
  0x37   :  { %v100_v2 = vld [vmem:[%s8635_s11] sm:$0xff]  ;;  %v101_v3 = vld [vmem:[%s8635_s11 + $0x8] sm:$0xff]  ;;  %v102_v4 = vld [vmem:[%s8635_s11 + $0x10] sm:$0xff]  ;;  %v4888_v36 = vpack.c.bf16 %v528_v35, %v526_v34  ;;  %p5996_p3 = scmp.lt.s32.totalorder %s4189_s21, %s4189_s21 }
  0x38   :  { %v4857_v5 = vpack.c.bf16 %v101_v3, %v100_v2  ;;  %v103_v6 = vld [vmem:[%s8635_s11 + $0x18] sm:$0xff]  ;;  %v104_v8 = vld [vmem:[%s8635_s11 + $0x20] sm:$0x7]  ;;  %v96_v10 = vld [vmem:[%s8636_s25 + $0x28] sm:$0xff] }
  0x39   :  { %v4860_v7 = vpack.c.bf16 %v103_v6, %v102_v4  ;;  %v91_v9 = vld [vmem:[%s8636_s25] sm:$0xff]  ;;  %v92_v11 = vld [vmem:[%s8636_s25 + $0x8] sm:$0xff]  ;;  %v97_v12 = vld [vmem:[%s8636_s25 + $0x30] sm:$0xff] }
  0x3a   :  { %4858 = vmatpush3.bf16.msra.mxu0 %v4857_v5  ;;  %5869 = vmatpush3.bf16.msra.mxu1 %v4857_v5  ;;  %v93_v13 = vld [vmem:[%s8636_s25 + $0x10] sm:$0xff]  ;;  %v98_v14 = vld [vmem:[%s8636_s25 + $0x38] sm:$0xff]  ;;  %v99_v16 = vld [vmem:[%s8636_s25 + $0x40] sm:$0x3f] }
  0x3b   :  { %4859 = vmatprep.subr.bf16.mxu0 %v6023_v0  ;;  %5867 = vmatprep.subr.bf16.mxu1 %v6023_v0  ;;  %v94_v15 = vld [vmem:[%s8636_s25 + $0x18] sm:$0xff]  ;;  %v95_v17 = vld [vmem:[%s8636_s25 + $0x20] sm:$0xff]  ;;  %v248_v59 = vld [vmem:[%s8637_s1 + $0x8] sm:$0xff] }
  0x3c   :  { %v247_v18 = vld [vmem:[%s8637_s1] sm:$0xff]  ;;  %v249_v60 = vld [vmem:[%s8637_s1 + $0x10] sm:$0xff]  ;;  %v250_v61 = vld [vmem:[%s8637_s1 + $0x18] sm:$0xff] }
  0x3d   :  { %v251_v62 = vld [vmem:[%s8637_s1 + $0x20] sm:$0xff]  ;;  %v252_v63 = vld [vmem:[%s8637_s1 + $0x28] sm:$0xff]  ;;  %v253_v2 = vld [vmem:[%s8637_s1 + $0x30] sm:$0xff] }
  0x3e   :  { %4861 = vmatpush3.bf16.msra.mxu0 %v4860_v7  ;;  %5870 = vmatpush3.bf16.msra.mxu1 %v4860_v7  ;;  %v254_v3 = vld [vmem:[%s8637_s1 + $0x38] sm:$0xff]  ;;  %v255_v4 = vld [vmem:[%s8637_s1 + $0x40] sm:$0xff]  ;;  %v256_v5 = vld [vmem:[%s8637_s1 + $0x48] sm:$0xff] }
  0x3f   :  { %4714 = vmatprep.subr.mxu0 %v6025_v1  ;;  %5868 = vmatprep.subr.mxu1 %v6025_v1  ;;  %v257_v6 = vld [vmem:[%s8637_s1 + $0x50] sm:$0xff]  ;;  %v258_v7 = vld [vmem:[%s8637_s1 + $0x58] sm:$0xff]  ;;  %v530_v19 = vld [vmem:[#allocation2 + $0x100] sm:$0xff] }
  0x40   :  { %v532_v20 = vld [vmem:[#allocation2 + $0x110] sm:$0xff]  ;;  %v534_v25 = vld [vmem:[#allocation2 + $0x120] sm:$0xff]  ;;  %v498_v28 = vld [vmem:[#allocation2 + $0x8] sm:$0xff] }
  0x41   :  { %v4892_v21 = vpack.c.bf16 %v532_v20, %v530_v19  ;;  %v500_v29 = vld [vmem:[#allocation2 + $0x18] sm:$0xff]  ;;  %v1160_v31 = vld [vmem:[%s8609_s5 + $0x8] sm:$0xff]  ;;  %vm7914_vm11 = vmpackc.low %vm328_vm4, %vm6026_vm10 }
  0x42   :  { %4715 = vmatpush3.msk.msra.mxu0 %vm133_vm1, %v104_v8  ;;  %5871 = vmatpush3.msk.msra.mxu1 %vm133_vm1, %v104_v8  ;;  %v259_v8 = vld [vmem:[%s8637_s1 + $0x60] sm:$0xff]  ;;  %v4898_v30 = vpack.c.bf16 %v500_v29, %v498_v28  ;;  %v1162_v35 = vld [vmem:[%s8609_s5 + $0x18] sm:$0xff] }
  0x43   :  { %4717 = vmatmul.mubr.msk.f32.vlgmr.msra.gmra.mrb[0].mxu0 %vm105_vm2, %v91_v9  ;;  %4732 = vmatmul.mubr.msk.f32.vlgmr.msra.gmra.mrb[0].mxu1 %vm105_vm2, %v96_v10  ;;  %v260_v9 = vld [vmem:[%s8637_s1 + $0x68] sm:$0xff]  ;;  %v261_v10 = vld [vmem:[%s8637_s1 + $0x70] sm:$0xff]  ;;  %v504_v29 = vld [vmem:[#allocation2 + $0x38] sm:$0xff] }
  0x44   :  { %4719 = vmatprep.mubr.msk.f32.mxu0 %vm6024_vm0, %v6025_v1  ;;  %4734 = vmatprep.mubr.msk.f32.mxu1 %vm6024_vm0, %v6025_v1 }
  0x45   :  { %4879 = vmatprep.subr.bf16.mxu0 %v4878_v22  ;;  %v535_v22 = vld [vmem:[#allocation2 + $0x128] sm:$0xff] }
  0x46   :  { %4881 = vmatpush1.bf16.msra.mxu0 %v4880_v26  ;;  %v4894_v24 = vpack.c.bf16 %v537_v23, %v535_v22  ;;  %v536_v26 = vld [vmem:[#allocation2 + $0x130] sm:$0xff]  ;;  %v1207_v22 = vld [vmem:[%s8609_s5 + $0x180] sm:$0xff]  ;;  %v1210_v23 = vld [vmem:[%s8609_s5 + $0x198] sm:$0xff] }
  0x47   :  { %4720 = vmatmul.mubr.msk.f32.gmra.mrb[2].mxu0 %vm105_vm2, %v92_v11  ;;  %4735 = vmatmul.mubr.msk.f32.gmra.mrb[2].mxu1 %vm105_vm2, %v97_v12  ;;  %v262_v11 = vld [vmem:[%s8637_s1 + $0x78] sm:$0xff]  ;;  %v263_v12 = vld [vmem:[%s8637_s1 + $0x80] sm:$0xff] }
  0x48   :  { %4722 = vmatprep.mubr.msk.f32.mxu0 %vm6024_vm0, %v6025_v1  ;;  %4737 = vmatprep.mubr.msk.f32.mxu1 %vm6024_vm0, %v6025_v1 }
  0x49   :  { %4883 = vmatprep.subr.bf16.mxu0 %v4882_v27  ;;  %v4896_v27 = vpack.c.bf16 %v536_v26, %v534_v25  ;;  %v497_v25 = vld [vmem:[#allocation2] sm:$0xff]  ;;  %v499_v26 = vld [vmem:[#allocation2 + $0x10] sm:$0xff] }
  0x4a   :  { %4885 = vmatpush1.bf16.msra.mxu0 %v4884_v32  ;;  %v1163_v32 = vld [vmem:[%s8609_s5 + $0x20] sm:$0xff] }
  0x4b   :  { %4723 = vmatmul.mubr.msk.f32.gmra.mrb[4].mxu0 %vm105_vm2, %v93_v13  ;;  %4738 = vmatmul.mubr.msk.f32.gmra.mrb[4].mxu1 %vm105_vm2, %v98_v14  ;;  %v264_v13 = vld [vmem:[%s8637_s1 + $0x88] sm:$0xff]  ;;  %v265_v14 = vld [vmem:[%s8637_s1 + $0x90] sm:$0xff]  ;;  %v4978_v34 = vpack.c.bf16 %v1163_v32, %v1160_v31  ;;  %v5012_v32 = vpack.c.bf16 %v1210_v23, %v1207_v22  ;;  %v1238_v23 = vld [vmem:[%s8609_s5 + $0x278] sm:$0xff] }
  0x4c   :  { %4725 = vmatprep.mubr.msk.f32.mxu0 %vm6024_vm0, %v6025_v1  ;;  %4740 = vmatprep.mubr.msk.f32.mxu1 %vm6024_vm0, %v6025_v1  ;;  %v1217_v31 = vld [vmem:[%s8609_s5 + $0x1d0] sm:$0xff] }
  0x4d   :  { %4887 = vmatprep.subr.bf16.mxu0 %v4886_v33  ;;  %v1159_v33 = vld [vmem:[%s8609_s5] sm:$0xff] }
  0x4e   :  { %4889 = vmatpush1.bf16.msra.mxu0 %v4888_v36  ;;  %v1166_v36 = vld [vmem:[%s8609_s5 + $0x38] sm:$0xff] }
  0x4f   :  { %4726 = vmatmul.mubr.msk.f32.gmra.mrb[6].mxu0 %vm105_vm2, %v94_v15  ;;  %4741 = vmatmul.mubr.msk.f32.gmra.mrb[6].mxu1 %vm105_vm2, %v99_v16  ;;  %v266_v15 = vld [vmem:[%s8637_s1 + $0x98] sm:$0xff]  ;;  %v531_v16 = vld [vmem:[#allocation2 + $0x108] sm:$0xff] }
  0x50   :  { %4728 = vmatprep.mubr.msk.f32.mxu0 %vm6024_vm0, %v6025_v1  ;;  %4761 = vmatprep.mubr.msk.f32.mxu1 %vm267_vm3, %v247_v18 }
  0x53   :  { %4729 = vmatmul.mubr.msk.f32.gmra.mrb[8].mxu0 %vm105_vm2, %v95_v17  ;;  %v533_v17 = vld [vmem:[#allocation2 + $0x118] sm:$0xff] }
  0x54   :  { %615 = vmatprep.mubr.f32.mxu0 %v6025_v1  ;;  %v4890_v18 = vpack.c.bf16 %v533_v17, %v531_v16  ;;  %v1208_v17 = vld [vmem:[%s8609_s5 + $0x188] sm:$0xff] }
  0x56   :  { %4891 = vmatprep.subr.bf16.mxu0 %v4890_v18  ;;  %v1211_v18 = vld [vmem:[%s8609_s5 + $0x1a0] sm:$0xff] }
  0x57   :  { %4893 = vmatpush1.bf16.msra.mxu0 %v4892_v21  ;;  %v5010_v21 = vpack.c.bf16 %v1211_v18, %v1208_v17  ;;  %v1234_v17 = vld [vmem:[%s8609_s5 + $0x258] sm:$0xff] }
  0x58   :  { %4895 = vmatprep.subr.bf16.mxu0 %v4894_v24 }
  0x5b   :  { %4897 = vmatpush1.bf16.msra.mxu0 %v4896_v27  ;;  %v502_v27 = vld [vmem:[#allocation2 + $0x28] sm:$0xff] }
  0x5c   :  { %4899 = vmatprep.subr.bf16.mxu0 %v4898_v30  ;;  %v1214_v30 = vld [vmem:[%s8609_s5 + $0x1b8] sm:$0xff] }
 0x116   :  { %v203_v37 = vpop.f32.mrb[0].mxu0  ;;  %v228_v38 = vpop.f32.mrb[0].mxu1 }
 0x117   :  { %v4718_v39 = vpop.f32.mrb[1].mxu0  ;;  %v4733_v40 = vpop.f32.mrb[1].mxu1 }
 0x118   :  { %v1165_v40 = vld [vmem:[%s8609_s5 + $0x30] sm:$0xff] }
 0x11a   :  { %v208_v41 = vpop.f32.mrb[2].mxu0  ;;  %v233_v42 = vpop.f32.mrb[2].mxu1 }
 0x11b   :  { %v4862_v43 = vpack.c.bf16 %v208_v41, %v203_v37  ;;  %v4721_v44 = vpop.f32.mrb[3].mxu0  ;;  %v4736_v45 = vpop.f32.mrb[3].mxu1  ;;  %v1169_v37 = vld [vmem:[%s8609_s5 + $0x50] sm:$0xff]  ;;  %v1168_v41 = vld [vmem:[%s8609_s5 + $0x48] sm:$0xff] }
 0x11c   :  { %v4982_v39 = vpack.c.bf16 %v1169_v37, %v1166_v36  ;;  %v4984_v44 = vpack.c.bf16 %v1168_v41, %v1165_v40  ;;  %v4902_v37 = vpack.c.bf16 %v504_v29, %v502_v27  ;;  %v506_v40 = vld [vmem:[#allocation2 + $0x48] sm:$0xff]  ;;  %v5014_v41 = vpack.c.bf16 %v1217_v31, %v1214_v30  ;;  %v745_v27 = vld [vmem:[#allocation2 + $0x158] sm:$0xff] }
 0x11d   :  { %4863 = vmatprep.subr.bf16.mxu1 %v4862_v43 }
 0x11e   :  { %v213_v46 = vpop.f32.mrb[4].mxu0  ;;  %4865 = vmatpush3.bf16.msra.mxu1 %v4862_v43  ;;  %v238_v47 = vpop.f32.mrb[4].mxu1  ;;  %v1175_v43 = vld [vmem:[%s8609_s5 + $0x80] sm:$0xff] }
 0x11f   :  { %v4724_v48 = vpop.f32.mrb[5].mxu0  ;;  %v4874_v49 = vpack.c.bf16 %v238_v47, %v233_v42  ;;  %v4739_v50 = vpop.f32.mrb[5].mxu1  ;;  %v1172_v42 = vld [vmem:[%s8609_s5 + $0x68] sm:$0xff]  ;;  %v1174_v47 = vld [vmem:[%s8609_s5 + $0x78] sm:$0xff] }
 0x120   :  { %v4986_v45 = vpack.c.bf16 %v1175_v43, %v1172_v42  ;;  %v1178_v48 = vld [vmem:[%s8609_s5 + $0x98] sm:$0xff] }
 0x121   :  { %v508_v43 = vld [vmem:[#allocation2 + $0x58] sm:$0xff] }
 0x122   :  { %v218_v51 = vpop.f32.mrb[6].mxu0  ;;  %v243_v52 = vpop.f32.mrb[6].mxu1 }
 0x123   :  { %v4866_v53 = vpack.c.bf16 %v218_v51, %v213_v46  ;;  %v4727_v54 = vpop.f32.mrb[7].mxu0  ;;  %v4742_v55 = vpop.f32.mrb[7].mxu1  ;;  %v1171_v46 = vld [vmem:[%s8609_s5 + $0x60] sm:$0xff] }
 0x124   :  { %v4988_v50 = vpack.c.bf16 %v1174_v47, %v1171_v46  ;;  %v1184_v54 = vld [vmem:[%s8609_s5 + $0xc8] sm:$0xff]  ;;  %v1187_v55 = vld [vmem:[%s8609_s5 + $0xe0] sm:$0xff] }
 0x125   :  { %4867 = vmatprep.subr.bf16.mxu1 %v4866_v53 }
 0x126   :  { %v223_v56 = vpop.f32.mrb[8].mxu0  ;;  %4869 = vmatpush3.bf16.msra.mxu1 %v4866_v53  ;;  %v1180_v53 = vld [vmem:[%s8609_s5 + $0xa8] sm:$0xff] }
 0x127   :  { %v4870_v57 = vpack.c.bf16 %v228_v38, %v223_v56  ;;  %v4730_v58 = vpop.f32.mrb[9].mxu0  ;;  %v4980_v38 = vpack.c.bf16 %v1162_v35, %v1159_v33  ;;  %v4900_v33 = vpack.c.bf16 %v499_v26, %v497_v25  ;;  %v1216_v35 = vld [vmem:[%s8609_s5 + $0x1c8] sm:$0xff]  ;;  %v1241_v25 = vld [vmem:[%s8609_s5 + $0x290] sm:$0xff] }
 0x128   :  { %v1183_v58 = vld [vmem:[%s8609_s5 + $0xc0] sm:$0xff]  ;;  %v743_v26 = vld [vmem:[#allocation2 + $0x148] sm:$0xff] }
 0x129   :  { %4871 = vmatprep.subr.bf16.mxu1 %v4870_v57 }
 0x12a   :  { %4873 = vmatpush3.bf16.msra.mxu1 %v4870_v57  ;;  %v4994_v57 = vpack.c.bf16 %v1187_v55, %v1184_v54  ;;  %v510_v54 = vld [vmem:[#allocation2 + $0x68] sm:$0xff] }
 0x12b   :  { %4875 = vmatprep.subr.bf16.mxu1 %v4874_v49 }
 0x12e   :  { %4877 = vmatpush3.bf16.msra.mxu1 %v4874_v49  ;;  %v1181_v49 = vld [vmem:[%s8609_s5 + $0xb0] sm:$0xff] }
 0x12f   :  { %4759 = vmatprep.subr.msk.mxu1 %vm328_vm4, %v243_v52  ;;  %v4990_v51 = vpack.c.bf16 %v1181_v49, %v1178_v48  ;;  %v1219_v48 = vld [vmem:[%s8609_s5 + $0x1e0] sm:$0xff]  ;;  %v1222_v49 = vld [vmem:[%s8609_s5 + $0x1f8] sm:$0xff] }
 0x132   :  { %4760 = vmatpush3.msk.msra.mxu1 %vm328_vm4, %v243_v52  ;;  %v1177_v52 = vld [vmem:[%s8609_s5 + $0x90] sm:$0xff] }
 0x133   :  { %4762 = vmatmul.mubr.msk.f32.vlgmr.msra.gmra.mrb[8].mxu1 %vm267_vm3, %v248_v59  ;;  %4979 = vmatprep.subr.bf16.mxu1 %v4978_v34  ;;  %v4992_v56 = vpack.c.bf16 %v1180_v53, %v1177_v52  ;;  %v1186_v59 = vld [vmem:[%s8609_s5 + $0xd8] sm:$0xff]  ;;  %v1213_v34 = vld [vmem:[%s8609_s5 + $0x1b0] sm:$0xff]  ;;  %v505_v52 = vld [vmem:[#allocation2 + $0x40] sm:$0xff] }
 0x134   :  { %4764 = vmatprep.mubr.msk.f32.mxu1 %vm267_vm3, %v249_v60  ;;  %4981 = vmatpush1.bf16.msra.mxu1 %v4980_v38  ;;  %v1190_v60 = vld [vmem:[%s8609_s5 + $0xf8] sm:$0xff]  ;;  %v501_v38 = vld [vmem:[#allocation2 + $0x20] sm:$0xff]  ;;  %v5016_v46 = vpack.c.bf16 %v1216_v35, %v1213_v34  ;;  %v507_v53 = vld [vmem:[#allocation2 + $0x50] sm:$0xff]  ;;  %v4918_v35 = vpack.c.bf16 %v745_v27, %v743_v26 }
 0x135   :  { %4983 = vmatprep.subr.bf16.mxu1 %v4982_v39  ;;  %v503_v39 = vld [vmem:[#allocation2 + $0x30] sm:$0xff]  ;;  %v1240_v34 = vld [vmem:[%s8609_s5 + $0x288] sm:$0xff] }
 0x136   :  { %v4904_v47 = vpack.c.bf16 %v503_v39, %v501_v38  ;;  %v747_v38 = vld [vmem:[#allocation2 + $0x168] sm:$0xff] }
 0x137   :  { %4765 = vmatmul.mubr.msk.f32.gmra.mrb[10].mxu1 %vm267_vm3, %v250_v61  ;;  %v1193_v61 = vld [vmem:[%s8609_s5 + $0x110] sm:$0xff] }
 0x138   :  { %4767 = vmatprep.mubr.msk.f32.mxu1 %vm267_vm3, %v251_v62  ;;  %4985 = vmatpush1.bf16.msra.mxu1 %v4984_v44  ;;  %v4996_v62 = vpack.c.bf16 %v1186_v59, %v1183_v58  ;;  %v1220_v44 = vld [vmem:[%s8609_s5 + $0x1e8] sm:$0xff]  ;;  %v1226_v58 = vld [vmem:[%s8609_s5 + $0x218] sm:$0xff]  ;;  %v1229_v59 = vld [vmem:[%s8609_s5 + $0x230] sm:$0xff] }
 0x139   :  { %4987 = vmatprep.subr.bf16.mxu1 %v4986_v45  ;;  %v1223_v45 = vld [vmem:[%s8609_s5 + $0x200] sm:$0xff] }
 0x13a   :  { %v5018_v55 = vpack.c.bf16 %v1223_v45, %v1220_v44 }
 0x13b   :  { %4768 = vmatmul.mubr.msk.f32.gmra.mrb[12].mxu1 %vm267_vm3, %v252_v63  ;;  %v4998_v63 = vpack.c.bf16 %v1193_v61, %v1190_v60  ;;  %v5020_v60 = vpack.c.bf16 %v1222_v49, %v1219_v48  ;;  %v4908_v61 = vpack.c.bf16 %v507_v53, %v505_v52  ;;  %v746_v49 = vld [vmem:[#allocation2 + $0x160] sm:$0xff]  ;;  %v751_v53 = vld [vmem:[#allocation2 + $0x188] sm:$0xff] }
 0x13c   :  { %4770 = vmatprep.mubr.msk.f32.mxu1 %vm267_vm3, %v253_v2  ;;  %4989 = vmatpush1.bf16.msra.mxu1 %v4988_v50  ;;  %v1189_v2 = vld [vmem:[%s8609_s5 + $0xf0] sm:$0xff] }
 0x13d   :  { %4991 = vmatprep.subr.bf16.mxu1 %v4990_v51  ;;  %v4906_v51 = vpack.c.bf16 %v508_v43, %v506_v40  ;;  %v749_v40 = vld [vmem:[#allocation2 + $0x178] sm:$0xff]  ;;  %v1247_v43 = vld [vmem:[%s8609_s5 + $0x2c0] sm:$0xff] }
 0x13e   :  { %v4922_v48 = vpack.c.bf16 %v749_v40, %v747_v38  ;;  %v887_v38 = vld [vmem:[#allocation2 + $0x258] sm:$0xff] }
 0x13f   :  { %4771 = vmatmul.mubr.msk.f32.gmra.mrb[14].mxu1 %vm267_vm3, %v254_v3  ;;  %v1192_v3 = vld [vmem:[%s8609_s5 + $0x108] sm:$0xff] }
 0x140   :  { %4773 = vmatprep.mubr.msk.f32.mxu1 %vm267_vm3, %v255_v4  ;;  %4993 = vmatpush1.bf16.msra.mxu1 %v4992_v56  ;;  %v1196_v4 = vld [vmem:[%s8609_s5 + $0x128] sm:$0xff] }
 0x141   :  { %4995 = vmatprep.subr.bf16.mxu1 %v4994_v57  ;;  %v512_v57 = vld [vmem:[#allocation2 + $0x78] sm:$0xff] }
 0x143   :  { %4774 = vmatmul.mubr.msk.f32.gmra.mrb[16].mxu1 %vm267_vm3, %v256_v5  ;;  %v1199_v5 = vld [vmem:[%s8609_s5 + $0x140] sm:$0xff] }
 0x144   :  { %4776 = vmatprep.mubr.msk.f32.mxu1 %vm267_vm3, %v257_v6  ;;  %4997 = vmatpush1.bf16.msra.mxu1 %v4996_v62  ;;  %v5000_v6 = vpack.c.bf16 %v1192_v3, %v1189_v2  ;;  %v1225_v62 = vld [vmem:[%s8609_s5 + $0x210] sm:$0xff]  ;;  %v4910_v2 = vpack.c.bf16 %v512_v57, %v510_v54  ;;  %v509_v3 = vld [vmem:[#allocation2 + $0x60] sm:$0xff]  ;;  %v753_v54 = vld [vmem:[#allocation2 + $0x198] sm:$0xff] }
 0x145   :  { %4999 = vmatprep.subr.bf16.mxu1 %v4998_v63  ;;  %v1228_v63 = vld [vmem:[%s8609_s5 + $0x228] sm:$0xff] }
 0x147   :  { %4777 = vmatmul.mubr.msk.f32.gmra.mrb[18].mxu1 %vm267_vm3, %v258_v7  ;;  %v5002_v7 = vpack.c.bf16 %v1199_v5, %v1196_v4  ;;  %v511_v4 = vld [vmem:[#allocation2 + $0x70] sm:$0xff]  ;;  %v514_v5 = vld [vmem:[#allocation2 + $0x88] sm:$0xff] }
 0x148   :  { %4779 = vmatprep.mubr.msk.f32.mxu1 %vm267_vm3, %v259_v8  ;;  %v1195_v8 = vld [vmem:[%s8609_s5 + $0x120] sm:$0xff]  ;;  %5001 = vmatpush1.bf16.msra.mxu1 %v5000_v6 }
 0x149   :  { %5003 = vmatprep.subr.bf16.mxu1 %v5002_v7  ;;  %v5022_v7 = vpack.c.bf16 %v1229_v59, %v1226_v58  ;;  %v4926_v58 = vpack.c.bf16 %v753_v54, %v751_v53  ;;  %v750_v59 = vld [vmem:[#allocation2 + $0x180] sm:$0xff]  ;;  %v1004_v54 = vld [vmem:[#allocation2 + $0x290] sm:$0xff] }
 0x14b   :  { %4780 = vmatmul.mubr.msk.f32.gmra.mrb[20].mxu1 %vm267_vm3, %v260_v9  ;;  %v1198_v9 = vld [vmem:[%s8609_s5 + $0x138] sm:$0xff] }
 0x14c   :  { %4782 = vmatprep.mubr.msk.f32.mxu1 %vm267_vm3, %v261_v10  ;;  %v1202_v10 = vld [vmem:[%s8609_s5 + $0x158] sm:$0xff] }
 0x14f   :  { %4783 = vmatmul.mubr.msk.f32.gmra.mrb[22].mxu1 %vm267_vm3, %v262_v11  ;;  %v1205_v11 = vld [vmem:[%s8609_s5 + $0x170] sm:$0xff] }
 0x150   :  { %4785 = vmatprep.mubr.msk.f32.mxu1 %vm267_vm3, %v263_v12  ;;  %v5004_v12 = vpack.c.bf16 %v1198_v9, %v1195_v8  ;;  %v516_v8 = vld [vmem:[#allocation2 + $0x98] sm:$0xff] }
 0x151   :  { %v4914_v18 = vpack.c.bf16 %v516_v8, %v514_v5  ;;  %v756_v5 = vld [vmem:[#allocation2 + $0x1b0] sm:$0xff]  ;;  %v759_v8 = vld [vmem:[#allocation2 + $0x1c8] sm:$0xff] }
 0x152   :  { %5005 = vmatpush1.bf16.msra.mxu1 %v5004_v12  ;;  %v5024_v12 = vpack.c.bf16 %v1228_v63, %v1225_v62  ;;  %v755_v62 = vld [vmem:[#allocation2 + $0x1a8] sm:$0xff]  ;;  %v757_v63 = vld [vmem:[#allocation2 + $0x1b8] sm:$0xff] }
 0x153   :  { %4786 = vmatmul.mubr.msk.f32.gmra.mrb[24].mxu1 %vm267_vm3, %v264_v13  ;;  %v5006_v13 = vpack.c.bf16 %v1205_v11, %v1202_v10  ;;  %v1232_v10 = vld [vmem:[%s8609_s5 + $0x248] sm:$0xff]  ;;  %v1235_v11 = vld [vmem:[%s8609_s5 + $0x260] sm:$0xff] }
 0x154   :  { %4788 = vmatprep.mubr.msk.f32.mxu1 %vm267_vm3, %v265_v14  ;;  %v1201_v14 = vld [vmem:[%s8609_s5 + $0x150] sm:$0xff]  ;;  %v5026_v22 = vpack.c.bf16 %v1235_v11, %v1232_v10  ;;  %v761_v10 = vld [vmem:[#allocation2 + $0x1d8] sm:$0xff] }
 0x155   :  { %5007 = vmatprep.subr.bf16.mxu1 %v5006_v13  ;;  %v4912_v13 = vpack.c.bf16 %v511_v4, %v509_v3  ;;  %v4930_v3 = vpack.c.bf16 %v757_v63, %v755_v62  ;;  %v754_v4 = vld [vmem:[#allocation2 + $0x1a0] sm:$0xff]  ;;  %v1008_v62 = vld [vmem:[#allocation2 + $0x2b0] sm:$0xff]  ;;  %v1011_v63 = vld [vmem:[#allocation2 + $0x2c8] sm:$0xff] }
 0x157   :  { %4789 = vmatmul.mubr.msk.f32.gmra.mrb[26].mxu1 %vm267_vm3, %v266_v15  ;;  %v1204_v15 = vld [vmem:[%s8609_s5 + $0x168] sm:$0xff] }
 0x158   :  { %v5008_v20 = vpack.c.bf16 %v1204_v15, %v1201_v14  ;;  %v513_v14 = vld [vmem:[#allocation2 + $0x80] sm:$0xff] }
 0x159   :  { %v1231_v15 = vld [vmem:[%s8609_s5 + $0x240] sm:$0xff] }
 0x15a   :  { %5009 = vmatpush1.bf16.msra.mxu1 %v5008_v20  ;;  %v515_v20 = vld [vmem:[#allocation2 + $0x90] sm:$0xff]  ;;  %v5028_v30 = vpack.c.bf16 %v1234_v17, %v1231_v15  ;;  %v873_v15 = vld [vmem:[#allocation2 + $0x1e8] sm:$0xff]  ;;  %v875_v17 = vld [vmem:[#allocation2 + $0x1f8] sm:$0xff] }
 0x15b   :  { %5011 = vmatprep.subr.bf16.mxu1 %v5010_v21  ;;  %v4916_v31 = vpack.c.bf16 %v515_v20, %v513_v14  ;;  %v760_v14 = vld [vmem:[#allocation2 + $0x1d0] sm:$0xff]  ;;  %v4938_v20 = vpack.c.bf16 %v875_v17, %v873_v15  ;;  %v1021_v15 = vld [vmem:[#allocation2 + $0x318] sm:$0xff] }
 0x15e   :  { %5013 = vmatpush1.bf16.msra.mxu1 %v5012_v32  ;;  %v5030_v32 = vpack.c.bf16 %v1241_v25, %v1238_v23  ;;  %v877_v23 = vld [vmem:[#allocation2 + $0x208] sm:$0xff]  ;;  %v879_v25 = vld [vmem:[#allocation2 + $0x218] sm:$0xff] }
 0x15f   :  { %5015 = vmatprep.subr.bf16.mxu1 %v5014_v41  ;;  %v4942_v27 = vpack.c.bf16 %v879_v25, %v877_v23  ;;  %v1212_v23 = vld [vmem:[%s8609_s5 + $0x1a8] sm:$0xff] }
 0x162   :  { %5017 = vmatpush1.bf16.msra.mxu1 %v5016_v46  ;;  %v1243_v46 = vld [vmem:[%s8609_s5 + $0x2a0] sm:$0xff] }
 0x163   :  { %5019 = vmatprep.subr.bf16.mxu1 %v5018_v55 }
 0x166   :  { %5021 = vmatpush1.bf16.msra.mxu1 %v5020_v60  ;;  %v752_v60 = vld [vmem:[#allocation2 + $0x190] sm:$0xff] }
 0x167   :  { %5023 = vmatprep.subr.bf16.mxu1 %v5022_v7 }
 0x16a   :  { %5025 = vmatpush1.bf16.msra.mxu1 %v5024_v12  ;;  %v4934_v12 = vpack.c.bf16 %v761_v10, %v759_v8  ;;  %v1015_v8 = vld [vmem:[#allocation2 + $0x2e8] sm:$0xff]  ;;  %v1017_v10 = vld [vmem:[#allocation2 + $0x2f8] sm:$0xff] }
 0x16b   :  { %5027 = vmatprep.subr.bf16.mxu1 %v5026_v22  ;;  %v874_v22 = vld [vmem:[#allocation2 + $0x1f0] sm:$0xff] }
 0x16e   :  { %5029 = vmatpush1.bf16.msra.mxu1 %v5028_v30  ;;  %v876_v30 = vld [vmem:[#allocation2 + $0x200] sm:$0xff] }
 0x16f   :  { %5031 = vmatprep.subr.bf16.mxu1 %v5030_v32  ;;  %v881_v32 = vld [vmem:[#allocation2 + $0x228] sm:$0xff] }
 0x206   :  { %v6406_v16 = vpop.f32.mrb[8].mxu1 }
 0x207   :  { %v6414_v19 = vpop.f32.mrb[9].mxu1 }
 0x20a   :  { %v6422_v24 = vpop.f32.mrb[10].mxu1 }
 0x20b   :  { %v6424_v28 = vpop.f32.mrb[11].mxu1 }
 0x20e   :  { %v4769_v36 = vpop.f32.mrb[12].mxu1 }
 0x20f   :  { %v418_v42 = vpop.f32.mrb[13].mxu1 }
 0x210   :  { %4229 = vmatmul.mubr.msk.f32.vlgmr.msra.gmra.mrb[10].mxu0 %vm538_vm5, %v418_v42  ;;  %v1244_v42 = vld [vmem:[%s8609_s5 + $0x2a8] sm:$0xff] }
 0x211   :  { %4901 = vmatpush1.bf16.msra.mxu0 %v4900_v33  ;;  %621 = vmatprep.mubr.f32.mxu0 %v6025_v1  ;;  %v1237_v33 = vld [vmem:[%s8609_s5 + $0x270] sm:$0xff]  ;;  %v5034_v52 = vpack.c.bf16 %v1247_v43, %v1244_v42 }
 0x212   :  { %4903 = vmatprep.subr.bf16.mxu0 %v4902_v37  ;;  %v4772_v50 = vpop.f32.mrb[14].mxu1  ;;  %v744_v37 = vld [vmem:[#allocation2 + $0x150] sm:$0xff]  ;;  %v5032_v44 = vpack.c.bf16 %v1240_v34, %v1237_v33  ;;  %v883_v33 = vld [vmem:[#allocation2 + $0x238] sm:$0xff] }
 0x213   :  { %v428_v56 = vpop.f32.mrb[15].mxu1  ;;  %v4946_v34 = vpack.c.bf16 %v883_v33, %v881_v32  ;;  %v886_v43 = vld [vmem:[#allocation2 + $0x250] sm:$0xff] }
 0x214   :  { %4230 = vmatmul.mubr.msk.f32.gmra.mrb[12].mxu0 %vm538_vm5, %v4769_v36  ;;  %v742_v36 = vld [vmem:[#allocation2 + $0x140] sm:$0xff]  ;;  %5033 = vmatpush1.bf16.msra.mxu1 %v5032_v44  ;;  %v889_v44 = vld [vmem:[#allocation2 + $0x268] sm:$0xff] }
 0x215   :  { %4905 = vmatpush1.bf16.msra.mxu0 %v4904_v47  ;;  %627 = vmatprep.mubr.f32.mxu0 %v6025_v1  ;;  %v4920_v45 = vpack.c.bf16 %v744_v37, %v742_v36  ;;  %v1246_v47 = vld [vmem:[%s8609_s5 + $0x2b8] sm:$0xff]  ;;  %v882_v36 = vld [vmem:[#allocation2 + $0x230] sm:$0xff]  ;;  %v885_v37 = vld [vmem:[#allocation2 + $0x248] sm:$0xff] }
 0x216   :  { %4907 = vmatprep.subr.bf16.mxu0 %v4906_v51  ;;  %v6466_v6 = vpop.f32.mrb[16].mxu1  ;;  %5035 = vmatprep.subr.bf16.mxu1 %v5034_v52  ;;  %v4950_v42 = vpack.c.bf16 %v887_v38, %v885_v37  ;;  %v1161_v37 = vld [vmem:[%s8609_s5 + $0x10] sm:$0xff]  ;;  %v1164_v38 = vld [vmem:[%s8609_s5 + $0x28] sm:$0xff] }
 0x217   :  { %v6468_v9 = vpop.f32.mrb[17].mxu1 }
 0x218   :  { %4231 = vmatmul.mubr.msk.f32.gmra.mrb[14].mxu0 %vm538_vm5, %v428_v56  ;;  %v5036_v56 = vpack.c.bf16 %v1246_v47, %v1243_v46 }
 0x219   :  { %4909 = vmatpush1.bf16.msra.mxu0 %v4908_v61  ;;  %633 = vmatprep.mubr.f32.mxu0 %v6025_v1 }
 0x21a   :  { %4911 = vmatprep.subr.bf16.mxu0 %v4910_v2  ;;  %v6484_v21 = vpop.f32.mrb[18].mxu1  ;;  %5037 = vmatpush1.bf16.msra.mxu1 %v5036_v56  ;;  %v1007_v56 = vld [vmem:[#allocation2 + $0x2a8] sm:$0xff] }
 0x21b   :  { %v6492_v29 = vpop.f32.mrb[19].mxu1 }
 0x21c   :  { %4232 = vmatmul.mubr.msk.f32.gmra.mrb[16].mxu0 %vm538_vm5, %v4772_v50  ;;  %v748_v50 = vld [vmem:[#allocation2 + $0x170] sm:$0xff] }
 0x21d   :  { %4913 = vmatpush1.bf16.msra.mxu0 %v4912_v13  ;;  %716 = vmatprep.mubr.f32.mxu0 %v6025_v1  ;;  %v4924_v57 = vpack.c.bf16 %v748_v50, %v746_v49  ;;  %v758_v13 = vld [vmem:[#allocation2 + $0x1c0] sm:$0xff]  ;;  %v1003_v49 = vld [vmem:[#allocation2 + $0x288] sm:$0xff]  ;;  %v1005_v50 = vld [vmem:[#allocation2 + $0x298] sm:$0xff] }
 0x21e   :  { %4915 = vmatprep.subr.bf16.mxu0 %v4914_v18  ;;  %v6502_v39 = vpop.f32.mrb[20].mxu1  ;;  %v4936_v18 = vpack.c.bf16 %v760_v14, %v758_v13  ;;  %v4958_v53 = vpack.c.bf16 %v1005_v50, %v1003_v49  ;;  %v1016_v13 = vld [vmem:[#allocation2 + $0x2f0] sm:$0xff]  ;;  %v1019_v14 = vld [vmem:[#allocation2 + $0x308] sm:$0xff]  ;;  %v1167_v49 = vld [vmem:[%s8609_s5 + $0x40] sm:$0xff] }
 0x21f   :  { %v6504_v41 = vpop.f32.mrb[21].mxu1  ;;  %v1170_v50 = vld [vmem:[%s8609_s5 + $0x58] sm:$0xff] }
 0x221   :  { %4917 = vmatpush1.bf16.msra.mxu0 %v4916_v31  ;;  %v878_v31 = vld [vmem:[#allocation2 + $0x210] sm:$0xff] }
 0x222   :  { %4919 = vmatprep.subr.bf16.mxu0 %v4918_v35  ;;  %v6518_v51 = vpop.f32.mrb[22].mxu1  ;;  %v880_v35 = vld [vmem:[#allocation2 + $0x220] sm:$0xff] }
 0x223   :  { %v6520_v55 = vpop.f32.mrb[23].mxu1  ;;  %v4948_v40 = vpack.c.bf16 %v882_v36, %v880_v35 }
 0x224   :  { %4233 = vmatmul.mubr.msk.f32.vlgmr.msra.gmra.mrb[10].mxu0 %vm538_vm5, %v6414_v19  ;;  %v4928_v19 = vpack.c.bf16 %v752_v60, %v750_v59  ;;  %v1006_v60 = vld [vmem:[#allocation2 + $0x2a0] sm:$0xff] }
 0x225   :  { %4921 = vmatpush1.bf16.msra.mxu0 %v4920_v45  ;;  %722 = vmatprep.mubr.f32.mxu0 %v6025_v1  ;;  %v891_v45 = vld [vmem:[#allocation2 + $0x278] sm:$0xff] }
 0x226   :  { %4923 = vmatprep.subr.bf16.mxu0 %v4922_v48  ;;  %v6525_v61 = vpop.f32.mrb[24].mxu1  ;;  %v4954_v47 = vpack.c.bf16 %v891_v45, %v889_v44  ;;  %v890_v48 = vld [vmem:[#allocation2 + $0x270] sm:$0xff]  ;;  %v5044_v45 = vpack.c.bf16 %v1164_v38, %v1161_v37  ;;  %v1251_v37 = vld [vmem:[%s8609_s5 + $0x2e0] sm:$0xff]  ;;  %v1254_v38 = vld [vmem:[%s8609_s5 + $0x2f8] sm:$0xff] }
 0x227   :  { %v6527_v2 = vpop.f32.mrb[25].mxu1 }
 0x228   :  { %4234 = vmatmul.mubr.msk.f32.gmra.mrb[12].mxu0 %vm538_vm5, %v6406_v16  ;;  %v4932_v16 = vpack.c.bf16 %v756_v5, %v754_v4  ;;  %v1010_v4 = vld [vmem:[#allocation2 + $0x2c0] sm:$0xff]  ;;  %v1012_v5 = vld [vmem:[#allocation2 + $0x2d0] sm:$0xff] }
 0x229   :  { %4925 = vmatpush1.bf16.msra.mxu0 %v4924_v57  ;;  %728 = vmatprep.mubr.f32.mxu0 %v6025_v1  ;;  %v1009_v57 = vld [vmem:[#allocation2 + $0x2b8] sm:$0xff] }
 0x22a   :  { %4927 = vmatprep.subr.bf16.mxu0 %v4926_v58  ;;  %v6532_v7 = vpop.f32.mrb[26].mxu1  ;;  %v4962_v59 = vpack.c.bf16 %v1009_v57, %v1007_v56  ;;  %v5048_v57 = vpack.c.bf16 %v1170_v50, %v1167_v49 }
 0x22b   :  { %v6534_v11 = vpop.f32.mrb[27].mxu1 }
 0x22c   :  { %4235 = vmatmul.mubr.msk.f32.gmra.mrb[14].mxu0 %vm538_vm5, %v6424_v28  ;;  %v872_v28 = vld [vmem:[#allocation2 + $0x1e0] sm:$0xff] }
 0x22d   :  { %4929 = vmatpush1.bf16.msra.mxu0 %v4928_v19  ;;  %734 = vmatprep.mubr.f32.mxu0 %v6025_v1  ;;  %v4940_v26 = vpack.c.bf16 %v874_v22, %v872_v28  ;;  %v1013_v19 = vld [vmem:[#allocation2 + $0x2d8] sm:$0xff] }
 0x22e   :  { %4931 = vmatprep.subr.bf16.mxu0 %v4930_v3  ;;  %v4966_v3 = vpack.c.bf16 %v1013_v19, %v1011_v63  ;;  %v1173_v63 = vld [vmem:[%s8609_s5 + $0x70] sm:$0xff]  ;;  %v1176_v19 = vld [vmem:[%s8609_s5 + $0x88] sm:$0xff] }
 0x230   :  { %4236 = vmatmul.mubr.msk.f32.gmra.mrb[16].mxu0 %vm538_vm5, %v6422_v24  ;;  %v4944_v24 = vpack.c.bf16 %v878_v31, %v876_v30  ;;  %v1131_v31 = vld [vmem:[%s8608_s4] sm:$0x3] }
 0x231   :  { %4933 = vmatpush1.bf16.msra.mxu0 %v4932_v16  ;;  %838 = vmatprep.mubr.f32.mxu0 %v6025_v1  ;;  %v4968_v16 = vpack.c.bf16 %v1012_v5, %v1010_v4  ;;  %v1230_v4 = vld [vmem:[%s8609_s5 + $0x238] sm:$0xff] }
 0x232   :  { %4935 = vmatprep.subr.bf16.mxu0 %v4934_v12  ;;  %v4970_v12 = vpack.c.bf16 %v1017_v10, %v1015_v8  ;;  %v5052_v10 = vpack.c.bf16 %v1176_v19, %v1173_v63  ;;  %v4266_v63 = vld [vmem:[%s8611_s7 + $0x2c8] sm:$0xff]  ;;  %v4268_v19 = vld [vmem:[%s8611_s7 + $0x2d8] sm:$0xff] }
 0x235   :  { %4937 = vmatpush1.bf16.msra.mxu0 %v4936_v18  ;;  %v4974_v18 = vpack.c.bf16 %v1021_v15, %v1019_v14  ;;  %v1179_v14 = vld [vmem:[%s8609_s5 + $0xa0] sm:$0xff]  ;;  %v1182_v15 = vld [vmem:[%s8609_s5 + $0xb8] sm:$0xff] }
 0x236   :  { %4939 = vmatprep.subr.bf16.mxu0 %v4938_v20  ;;  %v1020_v20 = vld [vmem:[#allocation2 + $0x310] sm:$0xff] }
 0x238   :  { %4237 = vmatmul.mubr.msk.f32.vlgmr.msra.gmra.mrb[10].mxu0 %vm538_vm5, %v6468_v9  ;;  %v884_v9 = vld [vmem:[#allocation2 + $0x240] sm:$0xff] }
 0x239   :  { %4941 = vmatpush1.bf16.msra.mxu0 %v4940_v26  ;;  %844 = vmatprep.mubr.f32.mxu0 %v6025_v1  ;;  %v4952_v46 = vpack.c.bf16 %v886_v43, %v884_v9  ;;  %v1133_v26 = vlaneseq  ;;  %v1218_v9 = vld [vmem:[%s8609_s5 + $0x1d8] sm:$0xff] }
 0x23a   :  { %4943 = vmatprep.subr.bf16.mxu0 %v4942_v27 }
 0x23b   :  { %v1134_v27 = vshrl.u32 %v1133_v26, 7  ;;  %v1194_v26 = vld [vmem:[%s8609_s5 + $0x118] sm:$0xff] }
 0x23c   :  { %4238 = vmatmul.mubr.msk.f32.gmra.mrb[12].mxu0 %vm538_vm5, %v6466_v6  ;;  %v888_v6 = vld [vmem:[#allocation2 + $0x260] sm:$0xff] }
 0x23d   :  { %4945 = vmatpush1.bf16.msra.mxu0 %v4944_v24  ;;  %850 = vmatprep.mubr.f32.mxu0 %v6025_v1  ;;  %v4956_v52 = vpack.c.bf16 %v890_v48, %v888_v6  ;;  %v6595_v30 = vsub.s32 0, %v1134_v27  ;;  %v6600_v32 = vsub.s32 1, %v1134_v27  ;;  %v1245_v27 = vld [vmem:[%s8609_s5 + $0x2b0] sm:$0xff] }
 0x23e   :  { %4947 = vmatprep.subr.bf16.mxu0 %v4946_v34 }
 0x23f   :  { %v1136_v33 = vrot.slane %v1131_v31, %v6595_v30  ;;  %v1140_v24 = vrot.slane %v1131_v31, %v6600_v32  ;;  %v1248_v31 = vld [vmem:[%s8609_s5 + $0x2c8] sm:$0xff] }
 0x240   :  { %4239 = vmatmul.mubr.msk.f32.gmra.mrb[14].mxu0 %vm538_vm5, %v6492_v29  ;;  %v1002_v29 = vld [vmem:[#allocation2 + $0x280] sm:$0xff] }
 0x241   :  { %4949 = vmatpush1.bf16.msra.mxu0 %v4948_v40  ;;  %856 = vmatprep.mubr.f32.mxu0 %v6025_v1  ;;  %v4960_v58 = vpack.c.bf16 %v1004_v54, %v1002_v29  ;;  %v1224_v29 = vld [vmem:[%s8609_s5 + $0x208] sm:$0xff] }
 0x242   :  { %4951 = vmatprep.subr.bf16.mxu0 %v4950_v42  ;;  %v1215_v42 = vld [vmem:[%s8609_s5 + $0x1c0] sm:$0xff] }
 0x243   :  { %v5046_v48 = vpack.c.bf16 %v1218_v9, %v1215_v42  ;;  %v5070_v42 = vpack.c.bf16 %v1254_v38, %v1251_v37  ;;  %v1203_v9 = vld [vmem:[%s8609_s5 + $0x160] sm:$0xff]  ;;  %v4283_v38 = vld [vmem:[%s8611_s7 + $0x350] sm:$0xff] }
 0x244   :  { %4240 = vmatmul.mubr.msk.f32.gmra.mrb[16].mxu0 %vm538_vm5, %v6484_v21  ;;  %v4964_v21 = vpack.c.bf16 %v1008_v62, %v1006_v60  ;;  %v4281_v37 = vld [vmem:[%s8611_s7 + $0x340] sm:$0xff] }
 0x245   :  { %4953 = vmatpush1.bf16.msra.mxu0 %v4952_v46  ;;  %968 = vmatprep.mubr.f32.mxu0 %v6025_v1 }
 0x246   :  { %4955 = vmatprep.subr.bf16.mxu0 %v4954_v47 }
 0x249   :  { %4957 = vmatpush1.bf16.msra.mxu0 %v4956_v52 }
 0x24a   :  { %4959 = vmatprep.subr.bf16.mxu0 %v4958_v53  ;;  %v1221_v53 = vld [vmem:[%s8609_s5 + $0x1f0] sm:$0xff] }
 0x24b   :  { %v5050_v62 = vpack.c.bf16 %v1224_v29, %v1221_v53  ;;  %v4262_v53 = vld [vmem:[%s8611_s7 + $0x2a8] sm:$0xff]  ;;  %v4264_v29 = vld [vmem:[%s8611_s7 + $0x2b8] sm:$0xff] }
 0x24c   :  { %4241 = vmatmul.mubr.msk.f32.vlgmr.msra.gmra.mrb[10].mxu0 %vm538_vm5, %v6504_v41  ;;  %v1014_v41 = vld [vmem:[#allocation2 + $0x2e0] sm:$0xff] }
 0x24d   :  { %4961 = vmatpush1.bf16.msra.mxu0 %v4960_v58  ;;  %974 = vmatprep.mubr.f32.mxu0 %v6025_v1  ;;  %v4972_v17 = vpack.c.bf16 %v1016_v13, %v1014_v41 }
 0x24e   :  { %4963 = vmatprep.subr.bf16.mxu0 %v4962_v59 }
 0x250   :  { %4242 = vmatmul.mubr.msk.f32.gmra.mrb[12].mxu0 %vm538_vm5, %v6502_v39  ;;  %v1018_v39 = vld [vmem:[#allocation2 + $0x300] sm:$0xff] }
 0x251   :  { %4965 = vmatpush1.bf16.msra.mxu0 %v4964_v21  ;;  %980 = vmatprep.mubr.f32.mxu0 %v6025_v1  ;;  %v4976_v28 = vpack.c.bf16 %v1020_v20, %v1018_v39  ;;  %v1236_v39 = vld [vmem:[%s8609_s5 + $0x268] sm:$0xff] }
 0x252   :  { %4967 = vmatprep.subr.bf16.mxu0 %v4966_v3  ;;  %v1227_v3 = vld [vmem:[%s8609_s5 + $0x220] sm:$0xff] }
 0x253   :  { %v5054_v13 = vpack.c.bf16 %v1230_v4, %v1227_v3  ;;  %v5094_v3 = vpack.c.bf16 %v4268_v19, %v4266_v63  ;;  %v4265_v4 = vld [vmem:[%s8611_s7 + $0x2c0] sm:$0xff] }
 0x254   :  { %4243 = vmatmul.mubr.msk.f32.gmra.mrb[14].mxu0 %vm538_vm5, %v6520_v55  ;;  %v1253_v55 = vld [vmem:[%s8609_s5 + $0x2f0] sm:$0xff] }
 0x255   :  { %4969 = vmatpush1.bf16.msra.mxu0 %v4968_v16  ;;  %986 = vmatprep.mubr.f32.mxu0 %v6025_v1 }
 0x256   :  { %4971 = vmatprep.subr.bf16.mxu0 %v4970_v12 }
 0x258   :  { %4244 = vmatmul.mubr.msk.f32.gmra.mrb[16].mxu0 %vm538_vm5, %v6518_v51  ;;  %v1250_v51 = vld [vmem:[%s8609_s5 + $0x2d8] sm:$0xff] }
 0x259   :  { %4973 = vmatpush1.bf16.msra.mxu0 %v4972_v17  ;;  %1098 = vmatprep.mubr.f32.mxu0 %v6025_v1 }
 0x25a   :  { %4975 = vmatprep.subr.bf16.mxu0 %v4974_v18  ;;  %v1233_v18 = vld [vmem:[%s8609_s5 + $0x250] sm:$0xff] }
 0x25d   :  { %4977 = vmatpush1.bf16.msra.mxu0 %v4976_v28  ;;  %v5056_v28 = vpack.c.bf16 %v1182_v15, %v1179_v14  ;;  %v4271_v14 = vld [vmem:[%s8611_s7 + $0x2f0] sm:$0xff]  ;;  %v4274_v15 = vld [vmem:[%s8611_s7 + $0x308] sm:$0xff] }
 0x260   :  { %4245 = vmatmul.mubr.msk.f32.vlgmr.msra.gmra.mrb[10].mxu0 %vm538_vm5, %v6527_v2  ;;  %v5038_v2 = vpack.c.bf16 %v1253_v55, %v1250_v51  ;;  %v5058_v55 = vpack.c.bf16 %v1236_v39, %v1233_v18  ;;  %v6781_v18 = vld [vmem:[%s8610_s6 + $0x10] sm:$0xff] }
 0x261   :  { %1104 = vmatprep.mubr.f32.mxu0 %v6025_v1 }
 0x262   :  { %5039 = vmatprep.subr.bf16.mxu1 %v5038_v2  ;;  %v1185_v2 = vld [vmem:[%s8609_s5 + $0xd0] sm:$0xff] }
 0x264   :  { %4246 = vmatmul.mubr.msk.f32.gmra.mrb[12].mxu0 %vm538_vm5, %v6525_v61  ;;  %v1249_v61 = vld [vmem:[%s8609_s5 + $0x2d0] sm:$0xff] }
 0x265   :  { %1110 = vmatprep.mubr.f32.mxu0 %v6025_v1 }
 0x268   :  { %4247 = vmatmul.mubr.msk.f32.gmra.mrb[14].mxu0 %vm538_vm5, %v6534_v11  ;;  %v1252_v11 = vld [vmem:[%s8609_s5 + $0x2e8] sm:$0xff] }
 0x269   :  { %1116 = vmatprep.mubr.f32.mxu0 %v6025_v1  ;;  %v5040_v22 = vpack.c.bf16 %v1252_v11, %v1249_v61  ;;  %v1188_v61 = vld [vmem:[%s8609_s5 + $0xe8] sm:$0xff]  ;;  %v1239_v11 = vld [vmem:[%s8609_s5 + $0x280] sm:$0xff] }
 0x26b   :  { %5041 = vmatpush1.bf16.msra.mxu1 %v5040_v22  ;;  %v1242_v22 = vld [vmem:[%s8609_s5 + $0x298] sm:$0xff] }
 0x26c   :  { %4248 = vmatmul.mubr.msk.f32.gmra.mrb[16].mxu0 %vm538_vm5, %v6532_v7  ;;  %v1209_v7 = vld [vmem:[%s8609_s5 + $0x190] sm:$0xff] }
 0x26d   :  { %v5042_v25 = vpack.c.bf16 %v1212_v23, %v1209_v7  ;;  %v5060_v7 = vpack.c.bf16 %v1188_v61, %v1185_v2  ;;  %v5062_v23 = vpack.c.bf16 %v1242_v22, %v1239_v11  ;;  %v4280_v2 = vld [vmem:[%s8611_s7 + $0x338] sm:$0xff] }
 0x26e   :  { %v6801_v61 = vld [vmem:[%s8610_s6 + $0x18] sm:$0xff] }
 0x26f   :  { %5043 = vmatprep.subr.bf16.mxu1 %v5042_v25  ;;  %v1191_v25 = vld [vmem:[%s8609_s5 + $0x100] sm:$0xff] }
 0x333   :  { %v1100_v34 = vpop.f32.mrb[10].mxu0 }
 0x334   :  { %v6604_v35 = vadd.f32 %v1136_v33, %v1100_v34  ;;  %v1102_v36 = vpop.f32.mrb[11].mxu0  ;;  %v1197_v34 = vld [vmem:[%s8609_s5 + $0x130] sm:$0xff] }
 0x335   :  { %v1144_v40 = vadd.f32 %v1140_v24, %v1102_v36  ;;  %v1200_v36 = vld [vmem:[%s8609_s5 + $0x148] sm:$0xff] }
 0x336   :  { %v1151_v46 = vmax.f32 %v6604_v35, 0.0 }
 0x337   :  { %v1152_v43 = vmax.f32 %v1144_v40, 0.0  ;;  %v1106_v44 = vpop.f32.mrb[12].mxu0  ;;  %v5068_v40 = vpack.c.bf16 %v1200_v36, %v1197_v34 }
 0x338   :  { %v6619_v47 = vadd.f32 %v1136_v33, %v1106_v44  ;;  %v1108_v6 = vpop.f32.mrb[13].mxu0 }
 0x339   :  { %v6627_v52 = vadd.f32 %v1140_v24, %v1108_v6  ;;  %1319 = vmatprep.mubr.f32.mxu1 %v1152_v43 }
 0x33a   :  { %1320 = vmatmul.mubr.f32.vlgmr.msra.gmra.mrb[28].mxu1 %v1151_v46  ;;  %v1153_v58 = vmax.f32 %v6619_v47, 0.0 }
 0x33b   :  { %v1154_v54 = vmax.f32 %v6627_v52, 0.0  ;;  %5045 = vmatpush3.bf16.msra.mxu1 %v5044_v45  ;;  %v1112_v56 = vpop.f32.mrb[14].mxu0  ;;  %v1429_v45 = vld [vmem:[%s8610_s6] sm:$0xff] }
 0x33c   :  { %v6639_v59 = vadd.f32 %v1136_v33, %v1112_v56  ;;  %v1114_v60 = vpop.f32.mrb[15].mxu0  ;;  %5047 = vmatprep.subr.bf16.mxu1 %v5046_v48  ;;  %4799 = vmatprep.mubr.msk.f32.mxu0 %vm1435_vm6, %v1429_v45 }
 0x33d   :  { %v6647_v21 = vadd.f32 %v1140_v24, %v1114_v60  ;;  %1325 = vmatprep.mubr.f32.mxu1 %v1154_v54  ;;  %v4261_v60 = vld [vmem:[%s8611_s7 + $0x2a0] sm:$0xff] }
 0x33e   :  { %1326 = vmatmul.mubr.f32.gmra.mrb[30].mxu1 %v1153_v58  ;;  %v1155_v16 = vmax.f32 %v6639_v59, 0.0  ;;  %v5090_v59 = vpack.c.bf16 %v4264_v29, %v4262_v53 }
 0x33f   :  { %v1156_v5 = vmax.f32 %v6647_v21, 0.0  ;;  %5049 = vmatpush3.bf16.msra.mxu1 %v5048_v57  ;;  %v1118_v8 = vpop.f32.mrb[16].mxu0 }
 0x340   :  { %v1149_v12 = vadd.f32 %v1136_v33, %v1118_v8  ;;  %v1120_v41 = vpop.f32.mrb[17].mxu0  ;;  %5051 = vmatprep.subr.bf16.mxu1 %v5050_v62  ;;  %v5064_v33 = vpack.c.bf16 %v1194_v26, %v1191_v25  ;;  %v4263_v62 = vld [vmem:[%s8611_s7 + $0x2b0] sm:$0xff]  ;;  %v4270_v8 = vld [vmem:[%s8611_s7 + $0x2e8] sm:$0xff]  ;;  %v4284_v26 = vld [vmem:[%s8611_s7 + $0x358] sm:$0xff] }
 0x341   :  { %v1150_v17 = vadd.f32 %v1140_v24, %v1120_v41  ;;  %1331 = vmatprep.mubr.f32.mxu1 %v1156_v5  ;;  %v5066_v24 = vpack.c.bf16 %v1248_v31, %v1245_v27  ;;  %v5092_v21 = vpack.c.bf16 %v4263_v62, %v4261_v60  ;;  %v4282_v25 = vld [vmem:[%s8611_s7 + $0x348] sm:$0xff]  ;;  %v4296_v60 = vld [vmem:[%s8611_s7 + $0x3b8] sm:$0xff] }
 0x342   :  { %1332 = vmatmul.mubr.f32.gmra.mrb[32].mxu1 %v1155_v16  ;;  %v1157_v51 = vmax.f32 %v1149_v12, 0.0  ;;  %v5110_v36 = vpack.c.bf16 %v4284_v26, %v4282_v25 }
 0x343   :  { %v1158_v20 = vmax.f32 %v1150_v17, 0.0  ;;  %5053 = vmatpush3.bf16.msra.mxu1 %v5052_v10  ;;  %v4272_v10 = vld [vmem:[%s8611_s7 + $0x2f8] sm:$0xff] }
 0x344   :  { %5055 = vmatprep.subr.bf16.mxu1 %v5054_v13  ;;  %v5098_v41 = vpack.c.bf16 %v4272_v10, %v4270_v8  ;;  %v4269_v13 = vld [vmem:[%s8611_s7 + $0x2e0] sm:$0xff]  ;;  %v4276_v17 = vld [vmem:[%s8611_s7 + $0x318] sm:$0xff]  ;;  %v4298_v8 = vld [vmem:[%s8611_s7 + $0x3c8] sm:$0xff] }
 0x345   :  { %1337 = vmatprep.mubr.f32.mxu1 %v1158_v20  ;;  %v5100_v39 = vpack.c.bf16 %v4271_v14, %v4269_v13  ;;  %v4300_v10 = vld [vmem:[%s8611_s7 + $0x3d8] sm:$0xff]  ;;  %v4297_v14 = vld [vmem:[%s8611_s7 + $0x3c0] sm:$0xff] }
 0x346   :  { %1338 = vmatmul.mubr.f32.gmra.mrb[34].mxu1 %v1157_v51  ;;  %v5126_v13 = vpack.c.bf16 %v4300_v10, %v4298_v8 }
 0x347   :  { %5057 = vmatpush3.bf16.msra.mxu1 %v5056_v28  ;;  %1408 = vmatprep.mubr.f32.mxu1 %v1152_v43  ;;  %v1206_v43 = vld [vmem:[%s8609_s5 + $0x178] sm:$0xff]  ;;  %v4273_v28 = vld [vmem:[%s8611_s7 + $0x300] sm:$0xff] }
 0x348   :  { %5059 = vmatprep.subr.bf16.mxu1 %v5058_v55  ;;  %v5072_v44 = vpack.c.bf16 %v1206_v43, %v1203_v9  ;;  %v4278_v55 = vld [vmem:[%s8611_s7 + $0x328] sm:$0xff] }
 0x349   :  { %v5106_v22 = vpack.c.bf16 %v4280_v2, %v4278_v55  ;;  %v4303_v55 = vld [vmem:[%s8611_s7 + $0x3f0] sm:$0xff]  ;;  %v4306_v2 = vld [vmem:[%s8611_s7 + $0x408] sm:$0xff] }
 0x34b   :  { %5061 = vmatpush3.bf16.msra.mxu1 %v5060_v7  ;;  %v4277_v7 = vld [vmem:[%s8611_s7 + $0x320] sm:$0xff] }
 0x34c   :  { %5063 = vmatprep.subr.bf16.mxu1 %v5062_v23  ;;  %v4279_v23 = vld [vmem:[%s8611_s7 + $0x330] sm:$0xff] }
 0x34f   :  { %5065 = vmatpush3.bf16.msra.mxu1 %v5064_v33  ;;  %v6821_v33 = vld [vmem:[%s8610_s6 + $0x20] sm:$0xff] }
 0x350   :  { %5067 = vmatprep.subr.bf16.mxu1 %v5066_v24  ;;  %v5108_v24 = vpack.c.bf16 %v4279_v23, %v4277_v7  ;;  %v4305_v7 = vld [vmem:[%s8611_s7 + $0x400] sm:$0xff]  ;;  %v4310_v23 = vld [vmem:[%s8611_s7 + $0x428] sm:$0xff] }
 0x353   :  { %5069 = vmatpush3.bf16.msra.mxu1 %v5068_v40  ;;  %v4286_v40 = vld [vmem:[%s8611_s7 + $0x368] sm:$0xff] }
 0x354   :  { %5071 = vmatprep.subr.bf16.mxu1 %v5070_v42  ;;  %v4288_v42 = vld [vmem:[%s8611_s7 + $0x378] sm:$0xff] }
 0x357   :  { %5073 = vmatpush3.bf16.msra.mxu1 %v5072_v44  ;;  %v5112_v44 = vpack.c.bf16 %v4283_v38, %v4281_v37  ;;  %v4313_v37 = vld [vmem:[%s8611_s7 + $0x440] sm:$0xff]  ;;  %v4315_v38 = vld [vmem:[%s8611_s7 + $0x450] sm:$0xff] }
 0x35a   :  { %1409 = vmatmul.mubr.f32.vlgmr.msra.gmra.mrb[36].mxu1 %v1151_v46 }
 0x35b   :  { %1413 = vmatprep.mubr.f32.mxu1 %v1154_v54 }
 0x35e   :  { %1414 = vmatmul.mubr.f32.gmra.mrb[38].mxu1 %v1153_v58 }
 0x35f   :  { %1418 = vmatprep.mubr.f32.mxu1 %v1156_v5  ;;  %v4267_v5 = vld [vmem:[%s8611_s7 + $0x2d0] sm:$0xff] }
 0x360   :  { %v5096_v12 = vpack.c.bf16 %v4267_v5, %v4265_v4  ;;  %v4293_v4 = vld [vmem:[%s8611_s7 + $0x3a0] sm:$0xff]  ;;  %v4295_v5 = vld [vmem:[%s8611_s7 + $0x3b0] sm:$0xff] }
 0x362   :  { %1419 = vmatmul.mubr.f32.gmra.mrb[40].mxu1 %v1155_v16  ;;  %v6761_v16 = vld [vmem:[%s8610_s6 + $0x8] sm:$0xff] }
 0x363   :  { %1423 = vmatprep.mubr.f32.mxu1 %v1158_v20  ;;  %v5102_v20 = vpack.c.bf16 %v4276_v17, %v4274_v15  ;;  %v4299_v15 = vld [vmem:[%s8611_s7 + $0x3d0] sm:$0xff]  ;;  %v4302_v17 = vld [vmem:[%s8611_s7 + $0x3e8] sm:$0xff] }
 0x366   :  { %1424 = vmatmul.mubr.f32.gmra.mrb[42].mxu1 %v1157_v51  ;;  %v4275_v51 = vld [vmem:[%s8611_s7 + $0x310] sm:$0xff] }
 0x367   :  { %1518 = vmatprep.mubr.f32.mxu1 %v6025_v1  ;;  %v5104_v11 = vpack.c.bf16 %v4275_v51, %v4273_v28  ;;  %v4301_v51 = vld [vmem:[%s8611_s7 + $0x3e0] sm:$0xff] }
 0x40d   :  { %v1321_v35 = vpop.f32.mrb[28].mxu1 }
 0x40e   :  { %v1323_v46 = vpop.f32.mrb[29].mxu1 }
 0x411   :  { %v1327_v6 = vpop.f32.mrb[30].mxu1 }
 0x412   :  { %v5076_v48 = vpack.c.bf16 %v1327_v6, %v1321_v35  ;;  %v1329_v49 = vpop.f32.mrb[31].mxu1  ;;  %v5114_v35 = vpack.c.bf16 %v4288_v42, %v4286_v40  ;;  %v4287_v6 = vld [vmem:[%s8611_s7 + $0x370] sm:$0xff]  ;;  %v5144_v40 = vpack.c.bf16 %v4315_v38, %v4313_v37  ;;  %v4318_v42 = vld [vmem:[%s8611_s7 + $0x468] sm:$0xff]  ;;  %v4337_v38 = vld [vmem:[%s8611_s7 + $0x500] sm:$0xff] }
 0x413   :  { %v5074_v47 = vpack.c.bf16 %v1329_v49, %v1323_v46  ;;  %v4285_v46 = vld [vmem:[%s8611_s7 + $0x360] sm:$0xff]  ;;  %v4290_v49 = vld [vmem:[%s8611_s7 + $0x388] sm:$0xff] }
 0x414   :  { %v5116_v29 = vpack.c.bf16 %v4287_v6, %v4285_v46  ;;  %v4322_v46 = vld [vmem:[%s8611_s7 + $0x488] sm:$0xff]  ;;  %v4324_v6 = vld [vmem:[%s8611_s7 + $0x498] sm:$0xff] }
 0x415   :  { %v1333_v50 = vpop.f32.mrb[32].mxu1  ;;  %5075 = vmatprep.subr.bf16.mxu1 %v5074_v47  ;;  %v4292_v47 = vld [vmem:[%s8611_s7 + $0x398] sm:$0xff] }
 0x416   :  { %v1335_v52 = vpop.f32.mrb[33].mxu1  ;;  %5077 = vmatpush1.bf16.msra.mxu1 %v5076_v48  ;;  %v1434_v48 = vld [vmem:[%s8610_s6 + $0x28] sm:$0x3] }
 0x419   :  { %v1339_v54 = vpop.f32.mrb[34].mxu1 }
 0x41a   :  { %v5080_v56 = vpack.c.bf16 %v1339_v54, %v1333_v50  ;;  %v1341_v57 = vpop.f32.mrb[35].mxu1 }
 0x41b   :  { %v5078_v58 = vpack.c.bf16 %v1341_v57, %v1335_v52  ;;  %v4289_v57 = vld [vmem:[%s8611_s7 + $0x380] sm:$0xff] }
 0x41d   :  { %5079 = vmatprep.subr.bf16.mxu1 %v5078_v58  ;;  %v4291_v58 = vld [vmem:[%s8611_s7 + $0x390] sm:$0xff] }
 0x41e   :  { %5081 = vmatpush1.bf16.msra.mxu1 %v5080_v56  ;;  %v5118_v56 = vpack.c.bf16 %v4292_v47, %v4290_v49  ;;  %v5120_v19 = vpack.c.bf16 %v4291_v58, %v4289_v57  ;;  %v4321_v49 = vld [vmem:[%s8611_s7 + $0x480] sm:$0xff]  ;;  %v4323_v47 = vld [vmem:[%s8611_s7 + $0x490] sm:$0xff] }
 0x41f   :  { %5091 = vmatprep.subr.bf16.mxu1 %v5090_v59  ;;  %v4294_v59 = vld [vmem:[%s8611_s7 + $0x3a8] sm:$0xff] }
 0x421   :  { %4249 = vmatmul.mubr.msk.f32.vlgmr.msra.gmra.mrb[44].mxu1 %vm1435_vm6, %v1429_v45 }
 0x422   :  { %1524 = vmatprep.mubr.f32.mxu1 %v6025_v1  ;;  %5093 = vmatpush1.bf16.msra.mxu1 %v5092_v21 }
 0x423   :  { %5095 = vmatprep.subr.bf16.mxu1 %v5094_v3  ;;  %v5122_v3 = vpack.c.bf16 %v4296_v60, %v4294_v59 }
 0x425   :  { %4250 = vmatmul.mubr.msk.f32.gmra.mrb[46].mxu1 %vm1435_vm6, %v6761_v16 }
 0x426   :  { %1530 = vmatprep.mubr.f32.mxu1 %v6025_v1  ;;  %5097 = vmatpush1.bf16.msra.mxu1 %v5096_v12 }
 0x427   :  { %5099 = vmatprep.subr.bf16.mxu1 %v5098_v41  ;;  %v5124_v41 = vpack.c.bf16 %v4295_v5, %v4293_v4  ;;  %v4330_v4 = vld [vmem:[%s8611_s7 + $0x4c8] sm:$0xff]  ;;  %v4332_v5 = vld [vmem:[%s8611_s7 + $0x4d8] sm:$0xff] }
 0x429   :  { %4251 = vmatmul.mubr.msk.f32.gmra.mrb[48].mxu1 %vm1435_vm6, %v6781_v18 }
 0x42a   :  { %1536 = vmatprep.mubr.f32.mxu1 %v6025_v1  ;;  %5101 = vmatpush1.bf16.msra.mxu1 %v5100_v39  ;;  %v4304_v39 = vld [vmem:[%s8611_s7 + $0x3f8] sm:$0xff] }
 0x42b   :  { %5103 = vmatprep.subr.bf16.mxu1 %v5102_v20  ;;  %v5128_v20 = vpack.c.bf16 %v4299_v15, %v4297_v14  ;;  %v5130_v28 = vpack.c.bf16 %v4304_v39, %v4302_v17  ;;  %v5158_v14 = vpack.c.bf16 %v4332_v5, %v4330_v4  ;;  %v4329_v15 = vld [vmem:[%s8611_s7 + $0x4c0] sm:$0xff]  ;;  %v4331_v17 = vld [vmem:[%s8611_s7 + $0x4d0] sm:$0xff] }
 0x42d   :  { %v4627_v27 = vpop.f32.mrb[36].mxu1  ;;  %4252 = vmatmul.mubr.msk.f32.gmra.mrb[50].mxu1 %vm1435_vm6, %v6801_v61 }
 0x42e   :  { %v4628_v31 = vpop.f32.mrb[37].mxu1  ;;  %1542 = vmatprep.mubr.f32.mxu1 %v6025_v1  ;;  %5105 = vmatpush1.bf16.msra.mxu1 %v5104_v11  ;;  %v5132_v11 = vpack.c.bf16 %v4303_v55, %v4301_v51  ;;  %v4336_v51 = vld [vmem:[%s8611_s7 + $0x4f8] sm:$0xff] }
 0x42f   :  { %v4629_v34 = vadd.f32 %v4628_v31, %v4627_v27  ;;  %5107 = vmatprep.subr.bf16.mxu1 %v5106_v22  ;;  %v4309_v27 = vld [vmem:[%s8611_s7 + $0x420] sm:$0xff]  ;;  %v4311_v31 = vld [vmem:[%s8611_s7 + $0x430] sm:$0xff] }
 0x431   :  { %v4630_v9 = vpop.f32.mrb[38].mxu1  ;;  %4253 = vmatmul.mubr.msk.f32.gmra.mrb[52].mxu1 %vm1435_vm6, %v6821_v33 }
 0x432   :  { %v4631_v43 = vpop.f32.mrb[39].mxu1  ;;  %5109 = vmatpush1.bf16.msra.mxu1 %v5108_v24  ;;  %1548 = vmatprep.mubr.f32.mxu1 %v6025_v1  ;;  %v4316_v24 = vld [vmem:[%s8611_s7 + $0x458] sm:$0xff] }
 0x433   :  { %v4632_v45 = vadd.f32 %v4631_v43, %v4630_v9  ;;  %5111 = vmatprep.subr.bf16.mxu1 %v5110_v36  ;;  %v4320_v9 = vld [vmem:[%s8611_s7 + $0x478] sm:$0xff] }
 0x434   :  { %v5146_v43 = vpack.c.bf16 %v4320_v9, %v4318_v42  ;;  %v4342_v9 = vld [vmem:[%s8611_s7 + $0x528] sm:$0xff] }
 0x435   :  { %v5082_v50 = vpack.c.bf16 %v4632_v45, %v4629_v34  ;;  %v4633_v52 = vpop.f32.mrb[40].mxu1  ;;  %4254 = vmatmul.mubr.msk.f32.gmra.mrb[54].mxu1 %vm1435_vm6, %v1434_v48  ;;  %v5140_v34 = vpack.c.bf16 %v4311_v31, %v4309_v27  ;;  %v4319_v45 = vld [vmem:[%s8611_s7 + $0x470] sm:$0xff]  ;;  %v4338_v31 = vld [vmem:[%s8611_s7 + $0x508] sm:$0xff] }
 0x436   :  { %v4634_v53 = vpop.f32.mrb[41].mxu1  ;;  %5113 = vmatpush1.bf16.msra.mxu1 %v5112_v44  ;;  %v4317_v44 = vld [vmem:[%s8611_s7 + $0x460] sm:$0xff] }
 0x437   :  { %v4635_v54 = vadd.f32 %v4634_v53, %v4633_v52  ;;  %5083 = vmatprep.subr.bf16.mxu0 %v5082_v50  ;;  %5115 = vmatprep.subr.bf16.mxu1 %v5114_v35  ;;  %v5148_v35 = vpack.c.bf16 %v4319_v45, %v4317_v44  ;;  %v4326_v52 = vld [vmem:[%s8611_s7 + $0x4a8] sm:$0xff]  ;;  %v4328_v53 = vld [vmem:[%s8611_s7 + $0x4b8] sm:$0xff] }
 0x438   :  { %5085 = vmatpush3.bf16.msra.mxu0 %v5082_v50  ;;  %v5152_v50 = vpack.c.bf16 %v4323_v47, %v4321_v49 }
 0x439   :  { %v4636_v62 = vpop.f32.mrb[42].mxu1 }
 0x43a   :  { %v4637_v63 = vpop.f32.mrb[43].mxu1  ;;  %5117 = vmatpush1.bf16.msra.mxu1 %v5116_v29  ;;  %v5154_v29 = vpack.c.bf16 %v4328_v53, %v4326_v52  ;;  %v1650_v53 = vld [vmem:[%s8611_s7] sm:$0xff] }
 0x43b   :  { %v4638_v21 = vadd.f32 %v4637_v63, %v4636_v62  ;;  %5119 = vmatprep.subr.bf16.mxu1 %v5118_v56  ;;  %v4325_v63 = vld [vmem:[%s8611_s7 + $0x4a0] sm:$0xff] }
 0x43d   :  { %v5086_v12 = vpack.c.bf16 %v4638_v21, %v4635_v54 }
 0x43e   :  { %5121 = vmatpush1.bf16.msra.mxu1 %v5120_v19  ;;  %v4327_v19 = vld [vmem:[%s8611_s7 + $0x4b0] sm:$0xff] }
 0x43f   :  { %5087 = vmatprep.subr.bf16.mxu0 %v5086_v12  ;;  %5123 = vmatprep.subr.bf16.mxu1 %v5122_v3 }
 0x440   :  { %5089 = vmatpush3.bf16.msra.mxu0 %v5086_v12  ;;  %v5156_v12 = vpack.c.bf16 %v4327_v19, %v4325_v63 }
 0x442   :  { %5125 = vmatpush1.bf16.msra.mxu1 %v5124_v41 }
 0x443   :  { %4800 = vmatmul.mubr.msk.f32.vlgmr.msra.gmra.mrb[18].mxu0 %vm1435_vm6, %v6761_v16  ;;  %5127 = vmatprep.subr.bf16.mxu1 %v5126_v13  ;;  %v4308_v16 = vld [vmem:[%s8611_s7 + $0x418] sm:$0xff] }
 0x444   :  { %4802 = vmatprep.mubr.msk.f32.mxu0 %vm1435_vm6, %v6781_v18  ;;  %v5134_v22 = vpack.c.bf16 %v4308_v16, %v4306_v2  ;;  %v4307_v18 = vld [vmem:[%s8611_s7 + $0x410] sm:$0xff] }
 0x445   :  { %v5136_v25 = vpack.c.bf16 %v4307_v18, %v4305_v7 }
 0x446   :  { %5129 = vmatpush1.bf16.msra.mxu1 %v5128_v20 }
 0x447   :  { %4803 = vmatmul.mubr.msk.f32.gmra.mrb[20].mxu0 %vm1435_vm6, %v6801_v61  ;;  %5131 = vmatprep.subr.bf16.mxu1 %v5130_v28  ;;  %v4312_v61 = vld [vmem:[%s8611_s7 + $0x438] sm:$0xff]  ;;  %v4334_v28 = vld [vmem:[%s8611_s7 + $0x4e8] sm:$0xff] }
 0x448   :  { %4805 = vmatprep.mubr.msk.f32.mxu0 %vm1435_vm6, %v6821_v33  ;;  %v5138_v26 = vpack.c.bf16 %v4312_v61, %v4310_v23  ;;  %v4314_v33 = vld [vmem:[%s8611_s7 + $0x448] sm:$0xff]  ;;  %v5162_v18 = vpack.c.bf16 %v4336_v51, %v4334_v28  ;;  %v4333_v23 = vld [vmem:[%s8611_s7 + $0x4e0] sm:$0xff]  ;;  %v4335_v61 = vld [vmem:[%s8611_s7 + $0x4f0] sm:$0xff] }
 0x449   :  { %v5142_v36 = vpack.c.bf16 %v4316_v24, %v4314_v33  ;;  %v4340_v33 = vld [vmem:[%s8611_s7 + $0x518] sm:$0xff] }
 0x44a   :  { %5133 = vmatpush1.bf16.msra.mxu1 %v5132_v11  ;;  %v5160_v11 = vpack.c.bf16 %v4331_v17, %v4329_v15  ;;  %v5166_v37 = vpack.c.bf16 %v4340_v33, %v4338_v31  ;;  %v1661_v15 = vld [vmem:[%s8611_s7 + $0x58] sm:$0xff]  ;;  %v1667_v31 = vld [vmem:[%s8611_s7 + $0x88] sm:$0xff] }
 0x44b   :  { %4806 = vmatmul.mubr.msk.f32.gmra.mrb[22].mxu0 %vm1435_vm6, %v1434_v48  ;;  %5135 = vmatprep.subr.bf16.mxu1 %v5134_v22  ;;  %v5150_v48 = vpack.c.bf16 %v4324_v6, %v4322_v46  ;;  %v4343_v46 = vld [vmem:[%s8611_s7 + $0x530] sm:$0xff]  ;;  %v1651_v6 = vld [vmem:[%s8611_s7 + $0x8] sm:$0xff]  ;;  %v1669_v33 = vld [vmem:[%s8611_s7 + $0x98] sm:$0xff] }
 0x44e   :  { %5137 = vmatpush1.bf16.msra.mxu1 %v5136_v25 }
 0x44f   :  { %5139 = vmatprep.subr.bf16.mxu1 %v5138_v26 }
 0x452   :  { %5141 = vmatpush1.bf16.msra.mxu1 %v5140_v34  ;;  %v5164_v34 = vpack.c.bf16 %v4335_v61, %v4333_v23  ;;  %v1662_v23 = vld [vmem:[%s8611_s7 + $0x60] sm:$0xff]  ;;  %v1664_v61 = vld [vmem:[%s8611_s7 + $0x70] sm:$0xff] }
 0x453   :  { %5143 = vmatprep.subr.bf16.mxu1 %v5142_v36 }
 0x456   :  { %5145 = vmatpush1.bf16.msra.mxu1 %v5144_v40  ;;  %v4339_v40 = vld [vmem:[%s8611_s7 + $0x510] sm:$0xff] }
 0x457   :  { %5147 = vmatprep.subr.bf16.mxu1 %v5146_v43  ;;  %v4344_v43 = vld [vmem:[%s8611_s7 + $0x538] sm:$0xff]  ;;  %v5168_v44 = vpack.c.bf16 %v4339_v40, %v4337_v38  ;;  %v1668_v38 = vld [vmem:[%s8611_s7 + $0x90] sm:$0xff]  ;;  %v1671_v40 = vld [vmem:[%s8611_s7 + $0xa8] sm:$0xff] }
 0x458   :  { %v5170_v45 = vpack.c.bf16 %v4344_v43, %v4342_v9  ;;  %v1673_v9 = vld [vmem:[%s8611_s7 + $0xb8] sm:$0xff] }
 0x45a   :  { %5149 = vmatpush1.bf16.msra.mxu1 %v5148_v35  ;;  %v4341_v35 = vld [vmem:[%s8611_s7 + $0x520] sm:$0xff] }
 0x45b   :  { %5151 = vmatprep.subr.bf16.mxu1 %v5150_v48  ;;  %v1653_v48 = vld [vmem:[%s8611_s7 + $0x18] sm:$0xff]  ;;  %v5172_v49 = vpack.c.bf16 %v4343_v46, %v4341_v35  ;;  %v1670_v35 = vld [vmem:[%s8611_s7 + $0xa0] sm:$0xff]  ;;  %v1672_v46 = vld [vmem:[%s8611_s7 + $0xb0] sm:$0xff] }
 0x45c   :  { %v5174_v47 = vpack.c.bf16 %v1653_v48, %v1651_v6 }
 0x45e   :  { %5153 = vmatpush1.bf16.msra.mxu1 %v5152_v50 }
 0x45f   :  { %5155 = vmatprep.subr.bf16.mxu1 %v5154_v29  ;;  %v1652_v29 = vld [vmem:[%s8611_s7 + $0x10] sm:$0xff] }
 0x460   :  { %v5176_v4 = vpack.c.bf16 %v1652_v29, %v1650_v53  ;;  %v5196_v29 = vpack.c.bf16 %v1672_v46, %v1670_v35  ;;  %v1705_v35 = vld [vmem:[%s8611_s7 + $0x1b8] sm:$0xff]  ;;  %v1702_v46 = vld [vmem:[%s8611_s7 + $0x1a0] sm:$0xff] }
 0x4f4   :  { %v6971_v54 = vpop.f32.mrb[44].mxu1 }
 0x4f5   :  { %v6973_v56 = vpop.f32.mrb[45].mxu1 }
 0x4f8   :  { %v6975_v57 = vpop.f32.mrb[46].mxu1 }
 0x4f9   :  { %v6977_v58 = vpop.f32.mrb[47].mxu1  ;;  %v1829_v59 = vrot.slane %v6975_v57, 6 }
 0x4fa   :  { %v1832_v60 = vrot.slane %v6977_v58, 6 }
 0x4fc   :  { %v1532_v62 = vpop.f32.mrb[48].mxu1 }
 0x4fd   :  { %v1830_v21 = vrot.slane %v1532_v62, 6  ;;  %v1534_v3 = vpop.f32.mrb[49].mxu1  ;;  %v1657_v62 = vld [vmem:[%s8611_s7 + $0x38] sm:$0xff] }
 0x4fe   :  { %v1833_v8 = vrot.slane %v1534_v3, 6 }
 0x4ff   :  { %v1831_v10 = vsel %vm1828_vm7, %v1829_v59, %v1830_v21 }
 0x500   :  { %v1538_v41 = vpop.f32.mrb[50].mxu1  ;;  %v1834_v13 = vsel %vm1828_vm7, %v1832_v60, %v1833_v8  ;;  %v1655_v60 = vld [vmem:[%s8611_s7 + $0x28] sm:$0xff] }
 0x501   :  { %v1838_v39 = vrot.slane %v1538_v41, 6  ;;  %v1540_v20 = vpop.f32.mrb[51].mxu1  ;;  %1916 = vmatprep.mubr.f32.mxu1 %v1834_v13  ;;  %v2257_v2 = vrot.slane %v1538_v41, 4  ;;  %v5178_v5 = vpack.c.bf16 %v1657_v62, %v1655_v60  ;;  %v1674_v60 = vld [vmem:[%s8611_s7 + $0xc0] sm:$0xff]  ;;  %v1676_v62 = vld [vmem:[%s8611_s7 + $0xd0] sm:$0xff] }
 0x502   :  { %v1840_v55 = vrot.slane %v1540_v20, 6  ;;  %1917 = vmatmul.mubr.f32.vlgmr.msra.gmra.mrb[56].mxu1 %v1831_v10  ;;  %v2260_v22 = vrot.slane %v1540_v20, 4  ;;  %v1656_v10 = vld [vmem:[%s8611_s7 + $0x30] sm:$0xff] }
 0x503   :  { %v1839_v16 = vsel %vm1828_vm7, %v1830_v21, %v1838_v39  ;;  %5157 = vmatpush1.bf16.msra.mxu1 %v5156_v12 }
 0x504   :  { %v1841_v7 = vsel %vm1828_vm7, %v1833_v8, %v1840_v55  ;;  %5159 = vmatprep.subr.bf16.mxu1 %v5158_v14  ;;  %v7015_v25 = vpop.f32.mrb[52].mxu1  ;;  %v1654_v8 = vld [vmem:[%s8611_s7 + $0x20] sm:$0xff]  ;;  %v1659_v14 = vld [vmem:[%s8611_s7 + $0x48] sm:$0xff] }
 0x505   :  { %1922 = vmatprep.mubr.f32.mxu1 %v1841_v7  ;;  %v2258_v26 = vrot.slane %v7015_v25, 4  ;;  %v7018_v27 = vpop.f32.mrb[53].mxu1  ;;  %v5180_v28 = vpack.c.bf16 %v1656_v10, %v1654_v8  ;;  %v5182_v51 = vpack.c.bf16 %v1661_v15, %v1659_v14  ;;  %v1658_v55 = vld [vmem:[%s8611_s7 + $0x40] sm:$0xff]  ;;  %v1680_v25 = vld [vmem:[%s8611_s7 + $0xf0] sm:$0xff]  ;;  %v1687_v14 = vld [vmem:[%s8611_s7 + $0x128] sm:$0xff] }
 0x506   :  { %1923 = vmatmul.mubr.f32.gmra.mrb[58].mxu1 %v1839_v16  ;;  %v2261_v24 = vrot.slane %v7018_v27, 4  ;;  %v1689_v15 = vld [vmem:[%s8611_s7 + $0x138] sm:$0xff] }
 0x507   :  { %5161 = vmatpush1.bf16.msra.mxu1 %v5160_v11  ;;  %v7030_v36 = vsel %vm2256_vm8, %v2257_v2, %v2258_v26  ;;  %1993 = vmatprep.mubr.f32.mxu1 %v6025_v1  ;;  %v1660_v2 = vld [vmem:[%s8611_s7 + $0x50] sm:$0xff]  ;;  %v1663_v11 = vld [vmem:[%s8611_s7 + $0x68] sm:$0xff] }
 0x508   :  { %5163 = vmatprep.subr.bf16.mxu1 %v5162_v18  ;;  %v7042_v42 = vsel %vm2256_vm8, %v2260_v22, %v2261_v24  ;;  %v1665_v22 = vld [vmem:[%s8611_s7 + $0x78] sm:$0xff]  ;;  %v5184_v7 = vpack.c.bf16 %v1660_v2, %v1658_v55  ;;  %v1688_v55 = vld [vmem:[%s8611_s7 + $0x130] sm:$0xff]  ;;  %v1691_v2 = vld [vmem:[%s8611_s7 + $0x148] sm:$0xff] }
 0x509   :  { %v5186_v18 = vpack.c.bf16 %v1665_v22, %v1663_v11  ;;  %v1693_v11 = vld [vmem:[%s8611_s7 + $0x158] sm:$0xff] }
 0x50b   :  { %5165 = vmatpush1.bf16.msra.mxu1 %v5164_v34  ;;  %v5190_v34 = vpack.c.bf16 %v1669_v33, %v1667_v31  ;;  %v1695_v31 = vld [vmem:[%s8611_s7 + $0x168] sm:$0xff]  ;;  %v1697_v33 = vld [vmem:[%s8611_s7 + $0x178] sm:$0xff] }
 0x50c   :  { %5167 = vmatprep.subr.bf16.mxu1 %v5166_v37  ;;  %v1666_v37 = vld [vmem:[%s8611_s7 + $0x80] sm:$0xff] }
 0x50d   :  { %v5192_v43 = vpack.c.bf16 %v1668_v38, %v1666_v37  ;;  %v1696_v37 = vld [vmem:[%s8611_s7 + $0x170] sm:$0xff] }
 0x50f   :  { %5169 = vmatpush1.bf16.msra.mxu1 %v5168_v44  ;;  %v1550_v44 = vpop.f32.mrb[54].mxu1 }
 0x510   :  { %5171 = vmatprep.subr.bf16.mxu1 %v5170_v45  ;;  %v5194_v45 = vpack.c.bf16 %v1673_v9, %v1671_v40  ;;  %v2266_v6 = vrot.slane %v1550_v44, 4  ;;  %v1552_v48 = vpop.f32.mrb[55].mxu1  ;;  %v1699_v40 = vld [vmem:[%s8611_s7 + $0x188] sm:$0xff]  ;;  %v1701_v9 = vld [vmem:[%s8611_s7 + $0x198] sm:$0xff] }
 0x511   :  { %v2268_v53 = vrot.slane %v1552_v48, 4  ;;  %v5222_v44 = vpack.c.bf16 %v1701_v9, %v1699_v40  ;;  %v2459_v48 = vld [vmem:[%s8613_s9 + $0x8] sm:$0xff]  ;;  %v1717_v9 = vld [vmem:[%s8611_s7 + $0x218] sm:$0xff] }
 0x512   :  { %v1715_v40 = vld [vmem:[%s8611_s7 + $0x208] sm:$0xff] }
 0x513   :  { %5173 = vmatpush1.bf16.msra.mxu1 %v5172_v49  ;;  %v1675_v49 = vld [vmem:[%s8611_s7 + $0xc8] sm:$0xff] }
 0x514   :  { %5175 = vmatprep.subr.bf16.mxu1 %v5174_v47  ;;  %v1677_v47 = vld [vmem:[%s8611_s7 + $0xd8] sm:$0xff] }
 0x516   :  { %v7062_v50 = vpop.f32.mrb[18].mxu0 }
 0x517   :  { %v7064_v52 = vpop.f32.mrb[19].mxu0  ;;  %v1835_v21 = vrot.slane %v7062_v50, 6 }
 0x51a   :  { %v4804_v59 = vpop.f32.mrb[20].mxu0 }
 0x51b   :  { %v1842_v63 = vrot.slane %v4804_v59, 6  ;;  %v1631_v19 = vpop.f32.mrb[21].mxu0  ;;  %v2263_v39 = vrot.slane %v4804_v59, 4  ;;  %v5198_v59 = vpack.c.bf16 %v1677_v47, %v1675_v49  ;;  %v2462_v49 = vld [vmem:[%s8613_s9 + $0x20] sm:$0xff] }
 0x51c   :  { %v1836_v3 = vrot.slane %v1631_v19, 6  ;;  %v7169_v19 = vsel %vm2256_vm8, %v2258_v26, %v2266_v6  ;;  %v1683_v26 = vld [vmem:[%s8611_s7 + $0x108] sm:$0xff]  ;;  %v1704_v6 = vld [vmem:[%s8611_s7 + $0x1b0] sm:$0xff]  ;;  %v2458_v47 = vld [vmem:[%s8613_s9] sm:$0xff] }
 0x51e   :  { %v1837_v12 = vsel %vm1828_vm7, %v1835_v21, %v1836_v3  ;;  %v7086_v41 = vpop.f32.mrb[22].mxu0  ;;  %v1843_v13 = vsel %vm1828_vm7, %v1836_v3, %v1842_v63  ;;  %v7164_v63 = vsel %vm2256_vm8, %v2261_v24, %v2268_v53  ;;  %v1679_v21 = vld [vmem:[%s8611_s7 + $0xe8] sm:$0xff]  ;;  %v1681_v3 = vld [vmem:[%s8611_s7 + $0xf8] sm:$0xff]  ;;  %v1678_v24 = vld [vmem:[%s8611_s7 + $0xe0] sm:$0xff] }
 0x51f   :  { %v7095_v17 = vpop.f32.mrb[23].mxu0  ;;  %4345 = vmatmul.mubr.msk.f32.vlgmr.msra.gmra.mrb[56].mxu1 %vm538_vm5, %v1837_v12  ;;  %v5202_v27 = vpack.c.bf16 %v1681_v3, %v1679_v21  ;;  %v5204_v8 = vpack.c.bf16 %v1680_v25, %v1678_v24  ;;  %v1682_v12 = vld [vmem:[%s8611_s7 + $0x100] sm:$0xff]  ;;  %v2467_v24 = vld [vmem:[%s8613_s9 + $0x48] sm:$0xff] }
 0x520   :  { %v2264_v20 = vrot.slane %v7095_v17, 4  ;;  %5177 = vmatpush1.bf16.msra.mxu1 %v5176_v4  ;;  %1999 = vmatprep.mubr.f32.mxu1 %v6025_v1  ;;  %v5200_v4 = vpack.c.bf16 %v1676_v62, %v1674_v60  ;;  %v1700_v17 = vld [vmem:[%s8611_s7 + $0x190] sm:$0xff]  ;;  %v2465_v60 = vld [vmem:[%s8613_s9 + $0x38] sm:$0xff]  ;;  %v2471_v25 = vld [vmem:[%s8613_s9 + $0x68] sm:$0xff] }
 0x521   :  { %5179 = vmatprep.subr.bf16.mxu1 %v5178_v5  ;;  %v1685_v5 = vld [vmem:[%s8611_s7 + $0x118] sm:$0xff]  ;;  %v2468_v62 = vld [vmem:[%s8613_s9 + $0x50] sm:$0xff] }
 0x522   :  { %v7109_v16 = vsel %vm2256_vm8, %v2263_v39, %v2264_v20  ;;  %v5206_v10 = vpack.c.bf16 %v1685_v5, %v1683_v26  ;;  %v1707_v26 = vld [vmem:[%s8611_s7 + $0x1c8] sm:$0xff]  ;;  %v1709_v5 = vld [vmem:[%s8611_s7 + $0x1d8] sm:$0xff] }
 0x523   :  { %4346 = vmatmul.mubr.msk.f32.gmra.mrb[58].mxu1 %vm538_vm5, %v1843_v13  ;;  %v1684_v13 = vld [vmem:[%s8611_s7 + $0x110] sm:$0xff] }
 0x524   :  { %5181 = vmatpush1.bf16.msra.mxu1 %v5180_v28  ;;  %2075 = vmatprep.mubr.f32.mxu1 %v6973_v56  ;;  %v5188_v56 = vpack.c.bf16 %v1664_v61, %v1662_v23  ;;  %v5208_v39 = vpack.c.bf16 %v1684_v13, %v1682_v12  ;;  %v5210_v28 = vpack.c.bf16 %v1689_v15, %v1687_v14  ;;  %v1690_v23 = vld [vmem:[%s8611_s7 + $0x140] sm:$0xff]  ;;  %v1692_v61 = vld [vmem:[%s8611_s7 + $0x150] sm:$0xff] }
 0x525   :  { %5183 = vmatprep.subr.bf16.mxu1 %v5182_v51  ;;  %v1686_v51 = vld [vmem:[%s8611_s7 + $0x120] sm:$0xff]  ;;  %v5228_v12 = vpack.c.bf16 %v1704_v6, %v1702_v46  ;;  %v1716_v6 = vld [vmem:[%s8611_s7 + $0x210] sm:$0xff] }
 0x526   :  { %v5212_v22 = vpack.c.bf16 %v1688_v55, %v1686_v51  ;;  %v1706_v13 = vld [vmem:[%s8611_s7 + $0x1c0] sm:$0xff]  ;;  %v1708_v51 = vld [vmem:[%s8611_s7 + $0x1d0] sm:$0xff]  ;;  %v2477_v55 = vld [vmem:[%s8613_s9 + $0x98] sm:$0xff] }
 0x527   :  { %v2470_v15 = vld [vmem:[%s8613_s9 + $0x60] sm:$0xff] }
 0x528   :  { %5185 = vmatpush1.bf16.msra.mxu1 %v5184_v7  ;;  %v2270_v7 = vrot.slane %v7086_v41, 4  ;;  %v5216_v41 = vpack.c.bf16 %v1692_v61, %v1690_v23  ;;  %v1710_v23 = vld [vmem:[%s8611_s7 + $0x1e0] sm:$0xff] }
 0x529   :  { %5187 = vmatprep.subr.bf16.mxu1 %v5186_v18  ;;  %v5214_v18 = vpack.c.bf16 %v1693_v11, %v1691_v2  ;;  %v2480_v2 = vld [vmem:[%s8613_s9 + $0xb0] sm:$0xff]  ;;  %v1711_v11 = vld [vmem:[%s8611_s7 + $0x1e8] sm:$0xff]  ;;  %v1714_v46 = vld [vmem:[%s8611_s7 + $0x200] sm:$0xff] }
 0x52a   :  { %v7235_v38 = vsel %vm2256_vm8, %v2264_v20, %v2270_v7  ;;  %v1703_v20 = vld [vmem:[%s8611_s7 + $0x1a8] sm:$0xff]  ;;  %v5354_v61 = vpack.c.bf16 %v2480_v2, %v2477_v55  ;;  %v1729_v55 = vld [vmem:[%s8611_s7 + $0x278] sm:$0xff] }
 0x52b   :  { %v5226_v21 = vpack.c.bf16 %v1705_v35, %v1703_v20  ;;  %v2485_v20 = vld [vmem:[%s8613_s9 + $0xd8] sm:$0xff]  ;;  %v5238_v35 = vpack.c.bf16 %v1717_v9, %v1715_v40  ;;  %v1730_v40 = vld [vmem:[%s8611_s7 + $0x280] sm:$0xff] }
 0x52c   :  { %5189 = vmatpush1.bf16.msra.mxu1 %v5188_v56  ;;  %v5218_v56 = vpack.c.bf16 %v1697_v33, %v1695_v31  ;;  %v2476_v31 = vld [vmem:[%s8613_s9 + $0x90] sm:$0xff]  ;;  %v2479_v33 = vld [vmem:[%s8613_s9 + $0xa8] sm:$0xff] }
 0x52d   :  { %5191 = vmatprep.subr.bf16.mxu1 %v5190_v34  ;;  %v1694_v34 = vld [vmem:[%s8611_s7 + $0x160] sm:$0xff] }
 0x530   :  { %5193 = vmatpush1.bf16.msra.mxu1 %v5192_v43  ;;  %v5220_v43 = vpack.c.bf16 %v1696_v37, %v1694_v34  ;;  %v2483_v34 = vld [vmem:[%s8613_s9 + $0xc8] sm:$0xff]  ;;  %v2486_v37 = vld [vmem:[%s8613_s9 + $0xe0] sm:$0xff] }
 0x531   :  { %5195 = vmatprep.subr.bf16.mxu1 %v5194_v45  ;;  %v1698_v45 = vld [vmem:[%s8611_s7 + $0x180] sm:$0xff] }
 0x532   :  { %v5224_v53 = vpack.c.bf16 %v1700_v17, %v1698_v45  ;;  %v5358_v45 = vpack.c.bf16 %v2486_v37, %v2483_v34  ;;  %v2482_v17 = vld [vmem:[%s8613_s9 + $0xc0] sm:$0xff] }
 0x534   :  { %5197 = vmatpush1.bf16.msra.mxu1 %v5196_v29  ;;  %v5342_v29 = vpack.c.bf16 %v2462_v49, %v2459_v48  ;;  %v1719_v48 = vld [vmem:[%s8611_s7 + $0x228] sm:$0xff]  ;;  %v1721_v49 = vld [vmem:[%s8611_s7 + $0x238] sm:$0xff] }
 0x535   :  { %5199 = vmatprep.subr.bf16.mxu1 %v5198_v59  ;;  %v2461_v59 = vld [vmem:[%s8613_s9 + $0x18] sm:$0xff] }
 0x536   :  { %v5344_v3 = vpack.c.bf16 %v2461_v59, %v2458_v47  ;;  %5343 = vmatprep.subr.bf16.mxu0 %v5342_v29  ;;  %v2489_v47 = vld [vmem:[%s8613_s9 + $0xf8] sm:$0xff]  ;;  %v5360_v29 = vpack.c.bf16 %v2485_v20, %v2482_v17  ;;  %v5240_v59 = vpack.c.bf16 %v1716_v6, %v1714_v46  ;;  %v1732_v17 = vld [vmem:[%s8611_s7 + $0x290] sm:$0xff]  ;;  %v4350_v46 = vld [vmem:[%s8611_s7 + $0x548] sm:$0xff] }
 0x537   :  { %v2513_v20 = vld [vmem:[%s8613_s9 + $0x1b8] sm:$0xff] }
 0x538   :  { %5201 = vmatpush1.bf16.msra.mxu1 %v5200_v4  ;;  %v5346_v4 = vpack.c.bf16 %v2468_v62, %v2465_v60  ;;  %5345 = vmatpush1.bf16.msra.mxu0 %v5344_v3  ;;  %v2488_v60 = vld [vmem:[%s8613_s9 + $0xf0] sm:$0xff]  ;;  %v2491_v62 = vld [vmem:[%s8613_s9 + $0x108] sm:$0xff]  ;;  %v1718_v3 = vld [vmem:[%s8611_s7 + $0x220] sm:$0xff] }
 0x539   :  { %5203 = vmatprep.subr.bf16.mxu1 %v5202_v27  ;;  %v2464_v27 = vld [vmem:[%s8613_s9 + $0x30] sm:$0xff]  ;;  %v4352_v6 = vld [vmem:[%s8611_s7 + $0x558] sm:$0xff] }
 0x53a   :  { %5347 = vmatprep.subr.bf16.mxu0 %v5346_v4  ;;  %v1720_v4 = vld [vmem:[%s8611_s7 + $0x230] sm:$0xff] }
 0x53c   :  { %5205 = vmatpush1.bf16.msra.mxu1 %v5204_v8  ;;  %v2474_v8 = vld [vmem:[%s8613_s9 + $0x80] sm:$0xff] }
 0x53d   :  { %5207 = vmatprep.subr.bf16.mxu1 %v5206_v10  ;;  %v5348_v10 = vpack.c.bf16 %v2467_v24, %v2464_v27  ;;  %v5350_v14 = vpack.c.bf16 %v2474_v8, %v2471_v25  ;;  %v1723_v27 = vld [vmem:[%s8611_s7 + $0x248] sm:$0xff]  ;;  %v1725_v25 = vld [vmem:[%s8611_s7 + $0x258] sm:$0xff]  ;;  %v5364_v8 = vpack.c.bf16 %v2491_v62, %v2488_v60  ;;  %v4349_v60 = vld [vmem:[%s8611_s7 + $0x540] sm:$0xff] }
 0x53e   :  { %v4351_v62 = vld [vmem:[%s8611_s7 + $0x550] sm:$0xff] }
 0x53f   :  { %5349 = vmatpush1.bf16.msra.mxu0 %v5348_v10  ;;  %v5244_v10 = vpack.c.bf16 %v1720_v4, %v1718_v3  ;;  %v4356_v3 = vld [vmem:[%s8611_s7 + $0x578] sm:$0xff]  ;;  %v2519_v4 = vld [vmem:[%s8613_s9 + $0x1e8] sm:$0xff] }
 0x540   :  { %5209 = vmatpush1.bf16.msra.mxu1 %v5208_v39  ;;  %v2473_v39 = vld [vmem:[%s8613_s9 + $0x78] sm:$0xff]  ;;  %5351 = vmatprep.subr.bf16.mxu0 %v5350_v14 }
 0x541   :  { %5211 = vmatprep.subr.bf16.mxu1 %v5210_v28  ;;  %v5230_v28 = vpack.c.bf16 %v1709_v5, %v1707_v26  ;;  %v5352_v7 = vpack.c.bf16 %v2473_v39, %v2470_v15  ;;  %v2495_v26 = vld [vmem:[%s8613_s9 + $0x128] sm:$0xff]  ;;  %v2498_v5 = vld [vmem:[%s8613_s9 + $0x140] sm:$0xff]  ;;  %v2497_v14 = vld [vmem:[%s8613_s9 + $0x138] sm:$0xff] }
 0x542   :  { %v5366_v15 = vpack.c.bf16 %v2498_v5, %v2495_v26  ;;  %v2501_v39 = vld [vmem:[%s8613_s9 + $0x158] sm:$0xff]  ;;  %v2518_v26 = vld [vmem:[%s8613_s9 + $0x1e0] sm:$0xff] }
 0x543   :  { %5353 = vmatpush1.bf16.msra.mxu0 %v5352_v7  ;;  %v2521_v5 = vld [vmem:[%s8613_s9 + $0x1f8] sm:$0xff] }
 0x544   :  { %5213 = vmatpush1.bf16.msra.mxu1 %v5212_v22  ;;  %v1713_v22 = vld [vmem:[%s8611_s7 + $0x1f8] sm:$0xff]  ;;  %5355 = vmatprep.subr.bf16.mxu0 %v5354_v61  ;;  %v1728_v61 = vld [vmem:[%s8611_s7 + $0x270] sm:$0xff] }
 0x545   :  { %5215 = vmatprep.subr.bf16.mxu1 %v5214_v18  ;;  %v5232_v18 = vpack.c.bf16 %v1708_v51, %v1706_v13  ;;  %v2494_v13 = vld [vmem:[%s8613_s9 + $0x120] sm:$0xff]  ;;  %v1727_v51 = vld [vmem:[%s8611_s7 + $0x268] sm:$0xff] }
 0x546   :  { %v5368_v2 = vpack.c.bf16 %v2497_v14, %v2494_v13  ;;  %v4358_v13 = vld [vmem:[%s8611_s7 + $0x588] sm:$0xff] }
 0x548   :  { %5217 = vmatpush1.bf16.msra.mxu1 %v5216_v41  ;;  %v5234_v41 = vpack.c.bf16 %v1713_v22, %v1711_v11  ;;  %v1726_v22 = vld [vmem:[%s8611_s7 + $0x260] sm:$0xff] }
 0x549   :  { %5219 = vmatprep.subr.bf16.mxu1 %v5218_v56  ;;  %v1712_v56 = vld [vmem:[%s8611_s7 + $0x1f0] sm:$0xff]  ;;  %v5252_v37 = vpack.c.bf16 %v1728_v61, %v1726_v22 }
 0x54c   :  { %5221 = vmatpush1.bf16.msra.mxu1 %v5220_v43  ;;  %v5356_v43 = vpack.c.bf16 %v2479_v33, %v2476_v31  ;;  %v2507_v31 = vld [vmem:[%s8613_s9 + $0x188] sm:$0xff]  ;;  %v2510_v33 = vld [vmem:[%s8613_s9 + $0x1a0] sm:$0xff] }
 0x54d   :  { %5223 = vmatprep.subr.bf16.mxu1 %v5222_v44  ;;  %v5236_v44 = vpack.c.bf16 %v1712_v56, %v1710_v23  ;;  %v2503_v23 = vld [vmem:[%s8613_s9 + $0x168] sm:$0xff]  ;;  %v1733_v56 = vld [vmem:[%s8611_s7 + $0x298] sm:$0xff]  ;;  %v5374_v9 = vpack.c.bf16 %v2510_v33, %v2507_v31 }
 0x54e   :  { %5357 = vmatpush1.bf16.msra.mxu0 %v5356_v43  ;;  %v2506_v43 = vld [vmem:[%s8613_s9 + $0x180] sm:$0xff] }
 0x54f   :  { %5359 = vmatprep.subr.bf16.mxu0 %v5358_v45 }
 0x550   :  { %5225 = vmatpush1.bf16.msra.mxu1 %v5224_v53  ;;  %v2492_v53 = vld [vmem:[%s8613_s9 + $0x110] sm:$0xff] }
 0x551   :  { %5227 = vmatprep.subr.bf16.mxu1 %v5226_v21  ;;  %v5242_v21 = vpack.c.bf16 %v1721_v49, %v1719_v48  ;;  %v5362_v24 = vpack.c.bf16 %v2492_v53, %v2489_v47  ;;  %v5256_v49 = vpack.c.bf16 %v1732_v17, %v1730_v40  ;;  %v2512_v53 = vld [vmem:[%s8613_s9 + $0x1b0] sm:$0xff]  ;;  %v4368_v40 = vld [vmem:[%s8611_s7 + $0x5d8] sm:$0xff] }
 0x552   :  { %5361 = vmatpush1.bf16.msra.mxu0 %v5360_v29  ;;  %v2515_v29 = vld [vmem:[%s8613_s9 + $0x1c8] sm:$0xff]  ;;  %v4367_v17 = vld [vmem:[%s8611_s7 + $0x5d0] sm:$0xff] }
 0x553   :  { %5363 = vmatprep.subr.bf16.mxu0 %v5362_v24  ;;  %v5380_v24 = vpack.c.bf16 %v2515_v29, %v2512_v53  ;;  %v4376_v53 = vld [vmem:[%s8611_s7 + $0x618] sm:$0xff] }
 0x554   :  { %5229 = vmatpush1.bf16.msra.mxu1 %v5228_v12  ;;  %v1722_v12 = vld [vmem:[%s8611_s7 + $0x240] sm:$0xff] }
 0x555   :  { %5231 = vmatprep.subr.bf16.mxu1 %v5230_v28  ;;  %v2504_v28 = vld [vmem:[%s8613_s9 + $0x170] sm:$0xff] }
 0x556   :  { %5365 = vmatpush1.bf16.msra.mxu0 %v5364_v8  ;;  %v5370_v7 = vpack.c.bf16 %v2504_v28, %v2501_v39  ;;  %v5384_v39 = vpack.c.bf16 %v2521_v5, %v2518_v26  ;;  %v4382_v26 = vld [vmem:[%s8611_s7 + $0x648] sm:$0xff]  ;;  %v4384_v5 = vld [vmem:[%s8611_s7 + $0x658] sm:$0xff] }
 0x557   :  { %5367 = vmatprep.subr.bf16.mxu0 %v5366_v15  ;;  %v2528_v15 = vld [vmem:[%s8613_s9 + $0x230] sm:$0xff] }
 0x558   :  { %5233 = vmatpush1.bf16.msra.mxu1 %v5232_v18  ;;  %v2500_v18 = vld [vmem:[%s8613_s9 + $0x150] sm:$0xff] }
 0x559   :  { %5235 = vmatprep.subr.bf16.mxu1 %v5234_v41  ;;  %v1731_v41 = vld [vmem:[%s8611_s7 + $0x288] sm:$0xff]  ;;  %v5372_v34 = vpack.c.bf16 %v2503_v23, %v2500_v18  ;;  %v2534_v18 = vld [vmem:[%s8613_s9 + $0x260] sm:$0xff] }
 0x55a   :  { %5369 = vmatpush1.bf16.msra.mxu0 %v5368_v2  ;;  %v5254_v45 = vpack.c.bf16 %v1733_v56, %v1731_v41  ;;  %v2527_v2 = vld [vmem:[%s8613_s9 + $0x228] sm:$0xff]  ;;  %v2530_v41 = vld [vmem:[%s8613_s9 + $0x240] sm:$0xff]  ;;  %v2533_v56 = vld [vmem:[%s8613_s9 + $0x258] sm:$0xff] }
 0x55b   :  { %5371 = vmatprep.subr.bf16.mxu0 %v5370_v7  ;;  %v2531_v7 = vld [vmem:[%s8613_s9 + $0x248] sm:$0xff] }
 0x55c   :  { %5237 = vmatpush1.bf16.msra.mxu1 %v5236_v44  ;;  %v2509_v44 = vld [vmem:[%s8613_s9 + $0x198] sm:$0xff]  ;;  %v4362_v23 = vld [vmem:[%s8611_s7 + $0x5a8] sm:$0xff]  ;;  %v5390_v33 = vpack.c.bf16 %v2534_v18, %v2531_v7 }
 0x55d   :  { %5239 = vmatprep.subr.bf16.mxu1 %v5238_v35  ;;  %v2516_v35 = vld [vmem:[%s8613_s9 + $0x1d0] sm:$0xff]  ;;  %v5376_v48 = vpack.c.bf16 %v2509_v44, %v2506_v43  ;;  %v4394_v7 = vld [vmem:[%s8611_s7 + $0x6a8] sm:$0xff]  ;;  %v4396_v18 = vld [vmem:[%s8611_s7 + $0x6b8] sm:$0xff] }
 0x55e   :  { %5373 = vmatpush1.bf16.msra.mxu0 %v5372_v34  ;;  %v5378_v47 = vpack.c.bf16 %v2516_v35, %v2513_v20  ;;  %v4370_v20 = vld [vmem:[%s8611_s7 + $0x5e8] sm:$0xff]  ;;  %v4372_v35 = vld [vmem:[%s8611_s7 + $0x5f8] sm:$0xff] }
 0x55f   :  { %2076 = vmatmul.mubr.f32.vlgmr.msra.gmra.mrb[56].mxu1 %v6971_v54  ;;  %v5246_v54 = vpack.c.bf16 %v1725_v25, %v1723_v27  ;;  %5375 = vmatprep.subr.bf16.mxu0 %v5374_v9  ;;  %v2522_v27 = vld [vmem:[%s8613_s9 + $0x200] sm:$0xff]  ;;  %v5260_v25 = vpack.c.bf16 %v4351_v62, %v4349_v60  ;;  %v5392_v9 = vpack.c.bf16 %v2533_v56, %v2530_v41  ;;  %v4375_v62 = vld [vmem:[%s8611_s7 + $0x610] sm:$0xff]  ;;  %v4400_v41 = vld [vmem:[%s8611_s7 + $0x6d8] sm:$0xff] }
 0x560   :  { %2081 = vmatprep.mubr.f32.mxu1 %v6977_v58  ;;  %5241 = vmatpush1.bf16.msra.mxu1 %v5240_v59  ;;  %v1724_v58 = vld [vmem:[%s8611_s7 + $0x250] sm:$0xff]  ;;  %v5258_v59 = vpack.c.bf16 %v4352_v6, %v4350_v46  ;;  %v5382_v14 = vpack.c.bf16 %v2522_v27, %v2519_v4  ;;  %v5278_v6 = vpack.c.bf16 %v4372_v35, %v4370_v20  ;;  %v4373_v60 = vld [vmem:[%s8611_s7 + $0x600] sm:$0xff]  ;;  %v4408_v20 = vld [vmem:[%s8611_s7 + $0x718] sm:$0xff] }
 0x561   :  { %5243 = vmatprep.subr.bf16.mxu1 %v5242_v21  ;;  %v5248_v11 = vpack.c.bf16 %v1724_v58, %v1722_v12  ;;  %v4354_v21 = vld [vmem:[%s8611_s7 + $0x568] sm:$0xff]  ;;  %v4355_v12 = vld [vmem:[%s8611_s7 + $0x570] sm:$0xff]  ;;  %v2525_v58 = vld [vmem:[%s8613_s9 + $0x218] sm:$0xff]  ;;  %v5284_v4 = vpack.c.bf16 %v4375_v62, %v4373_v60 }
 0x562   :  { %5377 = vmatpush1.bf16.msra.mxu0 %v5376_v48  ;;  %v5262_v8 = vpack.c.bf16 %v4356_v3, %v4354_v21  ;;  %v5386_v22 = vpack.c.bf16 %v2528_v15, %v2525_v58  ;;  %v4369_v48 = vld [vmem:[%s8611_s7 + $0x5e0] sm:$0xff]  ;;  %v4378_v21 = vld [vmem:[%s8611_s7 + $0x628] sm:$0xff]  ;;  %v4380_v3 = vld [vmem:[%s8611_s7 + $0x638] sm:$0xff] }
 0x563   :  { %2082 = vmatmul.mubr.f32.gmra.mrb[58].mxu1 %v6975_v57  ;;  %v5250_v57 = vpack.c.bf16 %v1729_v55, %v1727_v51  ;;  %5379 = vmatprep.subr.bf16.mxu0 %v5378_v47  ;;  %v4357_v51 = vld [vmem:[%s8611_s7 + $0x580] sm:$0xff]  ;;  %v2524_v55 = vld [vmem:[%s8613_s9 + $0x210] sm:$0xff]  ;;  %v4374_v47 = vld [vmem:[%s8611_s7 + $0x608] sm:$0xff]  ;;  %v5286_v27 = vpack.c.bf16 %v4380_v3, %v4378_v21 }
 0x564   :  { %5245 = vmatpush1.bf16.msra.mxu1 %v5244_v10  ;;  %2152 = vmatprep.mubr.f32.mxu1 %v6025_v1  ;;  %v4353_v10 = vld [vmem:[%s8611_s7 + $0x560] sm:$0xff]  ;;  %v5388_v61 = vpack.c.bf16 %v2527_v2, %v2524_v55  ;;  %v4392_v55 = vld [vmem:[%s8611_s7 + $0x698] sm:$0xff]  ;;  %v4411_v60 = vld [vmem:[%s8611_s7 + $0x730] sm:$0xff] }
 0x565   :  { %5247 = vmatprep.subr.bf16.mxu1 %v5246_v54  ;;  %v4360_v54 = vld [vmem:[%s8611_s7 + $0x598] sm:$0xff]  ;;  %v5264_v28 = vpack.c.bf16 %v4355_v12, %v4353_v10  ;;  %v5290_v10 = vpack.c.bf16 %v4384_v5, %v4382_v26  ;;  %v4381_v12 = vld [vmem:[%s8611_s7 + $0x640] sm:$0xff]  ;;  %v4414_v62 = vld [vmem:[%s8611_s7 + $0x748] sm:$0xff] }
 0x566   :  { %5381 = vmatpush1.bf16.msra.mxu0 %v5380_v24  ;;  %v4377_v24 = vld [vmem:[%s8611_s7 + $0x620] sm:$0xff]  ;;  %v4416_v21 = vld [vmem:[%s8611_s7 + $0x758] sm:$0xff] }
 0x567   :  { %5383 = vmatprep.subr.bf16.mxu0 %v5382_v14  ;;  %v4386_v14 = vld [vmem:[%s8611_s7 + $0x668] sm:$0xff]  ;;  %v4420_v26 = vld [vmem:[%s8611_s7 + $0x778] sm:$0xff] }
 0x568   :  { %5249 = vmatpush1.bf16.msra.mxu1 %v5248_v11  ;;  %v4359_v11 = vld [vmem:[%s8611_s7 + $0x590] sm:$0xff] }
 0x569   :  { %5251 = vmatprep.subr.bf16.mxu1 %v5250_v57  ;;  %v4364_v57 = vld [vmem:[%s8611_s7 + $0x5b8] sm:$0xff]  ;;  %v5268_v31 = vpack.c.bf16 %v4359_v11, %v4357_v51  ;;  %v4390_v51 = vld [vmem:[%s8611_s7 + $0x688] sm:$0xff]  ;;  %v4389_v11 = vld [vmem:[%s8611_s7 + $0x680] sm:$0xff] }
 0x56a   :  { %5385 = vmatpush1.bf16.msra.mxu0 %v5384_v39  ;;  %v5270_v34 = vpack.c.bf16 %v4364_v57, %v4362_v23  ;;  %v4385_v39 = vld [vmem:[%s8611_s7 + $0x660] sm:$0xff]  ;;  %v5302_v57 = vpack.c.bf16 %v4396_v18, %v4394_v7  ;;  %v4431_v18 = vld [vmem:[%s8611_s7 + $0x7d0] sm:$0xff] }
 0x56b   :  { %5387 = vmatprep.subr.bf16.mxu0 %v5386_v22  ;;  %v4391_v22 = vld [vmem:[%s8611_s7 + $0x690] sm:$0xff]  ;;  %v4429_v7 = vld [vmem:[%s8611_s7 + $0x7c0] sm:$0xff] }
 0x56c   :  { %5253 = vmatpush1.bf16.msra.mxu1 %v5252_v37  ;;  %v4366_v37 = vld [vmem:[%s8611_s7 + $0x5c8] sm:$0xff]  ;;  %v5300_v23 = vpack.c.bf16 %v4391_v22, %v4389_v11 }
 0x56d   :  { %5255 = vmatprep.subr.bf16.mxu1 %v5254_v45  ;;  %v5274_v44 = vpack.c.bf16 %v4368_v40, %v4366_v37  ;;  %v4365_v45 = vld [vmem:[%s8611_s7 + $0x5c0] sm:$0xff]  ;;  %v4402_v37 = vld [vmem:[%s8611_s7 + $0x6e8] sm:$0xff]  ;;  %v4404_v40 = vld [vmem:[%s8611_s7 + $0x6f8] sm:$0xff] }
 0x56e   :  { %5389 = vmatpush1.bf16.msra.mxu0 %v5388_v61  ;;  %v5276_v46 = vpack.c.bf16 %v4367_v17, %v4365_v45  ;;  %v4393_v61 = vld [vmem:[%s8611_s7 + $0x6a0] sm:$0xff]  ;;  %v4403_v45 = vld [vmem:[%s8611_s7 + $0x6f0] sm:$0xff]  ;;  %v4406_v17 = vld [vmem:[%s8611_s7 + $0x708] sm:$0xff] }
 0x56f   :  { %5391 = vmatprep.subr.bf16.mxu0 %v5390_v33  ;;  %v4398_v33 = vld [vmem:[%s8611_s7 + $0x6c8] sm:$0xff] }
 0x570   :  { %5257 = vmatpush1.bf16.msra.mxu1 %v5256_v49  ;;  %v4371_v49 = vld [vmem:[%s8611_s7 + $0x5f0] sm:$0xff] }
 0x571   :  { %5259 = vmatprep.subr.bf16.mxu1 %v5258_v59  ;;  %v5280_v29 = vpack.c.bf16 %v4371_v49, %v4369_v48  ;;  %v5282_v59 = vpack.c.bf16 %v4376_v53, %v4374_v47  ;;  %v4407_v48 = vld [vmem:[%s8611_s7 + $0x710] sm:$0xff]  ;;  %v4410_v49 = vld [vmem:[%s8611_s7 + $0x728] sm:$0xff]  ;;  %v4412_v47 = vld [vmem:[%s8611_s7 + $0x738] sm:$0xff] }
 0x572   :  { %5393 = vmatpush1.bf16.msra.mxu0 %v5392_v9 }
 0x573   :  { %4347 = vmatmul.mubr.msk.f32.vlgmr.msra.gmra.mrb[56].mxu1 %vm538_vm5, %v7064_v52  ;;  %v5266_v52 = vpack.c.bf16 %v4360_v54, %v4358_v13  ;;  %v4383_v13 = vld [vmem:[%s8611_s7 + $0x650] sm:$0xff]  ;;  %v4388_v54 = vld [vmem:[%s8611_s7 + $0x678] sm:$0xff] }
 0x574   :  { %5261 = vmatpush1.bf16.msra.mxu1 %v5260_v25  ;;  %2158 = vmatprep.mubr.f32.mxu1 %v6025_v1  ;;  %v4379_v25 = vld [vmem:[%s8611_s7 + $0x630] sm:$0xff]  ;;  %v5292_v58 = vpack.c.bf16 %v4383_v13, %v4381_v12  ;;  %v5294_v15 = vpack.c.bf16 %v4388_v54, %v4386_v14  ;;  %v4422_v13 = vld [vmem:[%s8611_s7 + $0x788] sm:$0xff]  ;;  %v4424_v14 = vld [vmem:[%s8611_s7 + $0x798] sm:$0xff] }
 0x575   :  { %5263 = vmatprep.subr.bf16.mxu1 %v5262_v8  ;;  %v5288_v8 = vpack.c.bf16 %v4379_v25, %v4377_v24  ;;  %v4415_v24 = vld [vmem:[%s8611_s7 + $0x750] sm:$0xff]  ;;  %v4418_v25 = vld [vmem:[%s8611_s7 + $0x768] sm:$0xff] }
 0x576   :  { %v4419_v12 = vld [vmem:[%s8611_s7 + $0x770] sm:$0xff] }
 0x577   :  { %4348 = vmatmul.mubr.msk.f32.gmra.mrb[58].mxu1 %vm538_vm5, %v7062_v50  ;;  %v4361_v50 = vld [vmem:[%s8611_s7 + $0x5a0] sm:$0xff] }
 0x578   :  { %5265 = vmatpush1.bf16.msra.mxu1 %v5264_v28  ;;  %2344 = vmatprep.mubr.f32.mxu1 %v7042_v42  ;;  %v4363_v42 = vld [vmem:[%s8611_s7 + $0x5b0] sm:$0xff] }
 0x579   :  { %5267 = vmatprep.subr.bf16.mxu1 %v5266_v52  ;;  %v5272_v43 = vpack.c.bf16 %v4363_v42, %v4361_v50  ;;  %v4387_v28 = vld [vmem:[%s8611_s7 + $0x670] sm:$0xff]  ;;  %v5298_v52 = vpack.c.bf16 %v4392_v55, %v4390_v51  ;;  %v4397_v50 = vld [vmem:[%s8611_s7 + $0x6c0] sm:$0xff] }
 0x57a   :  { %v5296_v2 = vpack.c.bf16 %v4387_v28, %v4385_v39  ;;  %v4399_v42 = vld [vmem:[%s8611_s7 + $0x6d0] sm:$0xff]  ;;  %v4426_v28 = vld [vmem:[%s8611_s7 + $0x7a8] sm:$0xff]  ;;  %v4425_v55 = vld [vmem:[%s8611_s7 + $0x7a0] sm:$0xff] }
 0x57b   :  { %v5308_v9 = vpack.c.bf16 %v4399_v42, %v4397_v50  ;;  %v4423_v39 = vld [vmem:[%s8611_s7 + $0x790] sm:$0xff] }
 0x57c   :  { %5269 = vmatpush1.bf16.msra.mxu1 %v5268_v31  ;;  %v4395_v31 = vld [vmem:[%s8611_s7 + $0x6b0] sm:$0xff] }
 0x57d   :  { %5271 = vmatprep.subr.bf16.mxu1 %v5270_v34  ;;  %v5304_v56 = vpack.c.bf16 %v4395_v31, %v4393_v61  ;;  %v5306_v34 = vpack.c.bf16 %v4400_v41, %v4398_v33  ;;  %v2540_v61 = vld [vmem:[%s8613_s9 + $0x290] sm:$0xff] }
 0x57e   :  { %v2536_v33 = vld [vmem:[%s8613_s9 + $0x270] sm:$0xff] }
 0x580   :  { %5273 = vmatpush1.bf16.msra.mxu1 %v5272_v43  ;;  %v5310_v43 = vpack.c.bf16 %v4404_v40, %v4402_v37  ;;  %v2460_v40 = vld [vmem:[%s8613_s9 + $0x10] sm:$0xff] }
 0x581   :  { %5275 = vmatprep.subr.bf16.mxu1 %v5274_v44  ;;  %v4401_v44 = vld [vmem:[%s8611_s7 + $0x6e0] sm:$0xff] }
 0x582   :  { %v5312_v35 = vpack.c.bf16 %v4403_v45, %v4401_v44 }
 0x584   :  { %5277 = vmatpush1.bf16.msra.mxu1 %v5276_v46  ;;  %v5314_v46 = vpack.c.bf16 %v4408_v20, %v4406_v17 }
 0x585   :  { %5279 = vmatprep.subr.bf16.mxu1 %v5278_v6  ;;  %v4405_v6 = vld [vmem:[%s8611_s7 + $0x700] sm:$0xff] }
 0x586   :  { %v5316_v53 = vpack.c.bf16 %v4407_v48, %v4405_v6  ;;  %v2466_v6 = vld [vmem:[%s8613_s9 + $0x40] sm:$0xff]  ;;  %v2469_v48 = vld [vmem:[%s8613_s9 + $0x58] sm:$0xff] }
 0x588   :  { %5281 = vmatpush1.bf16.msra.mxu1 %v5280_v29  ;;  %v5318_v29 = vpack.c.bf16 %v4412_v47, %v4410_v49 }
 0x589   :  { %5283 = vmatprep.subr.bf16.mxu1 %v5282_v59  ;;  %v4409_v59 = vld [vmem:[%s8611_s7 + $0x720] sm:$0xff] }
 0x58a   :  { %v5320_v3 = vpack.c.bf16 %v4411_v60, %v4409_v59  ;;  %v2472_v59 = vld [vmem:[%s8613_s9 + $0x70] sm:$0xff]  ;;  %v2475_v60 = vld [vmem:[%s8613_s9 + $0x88] sm:$0xff] }
 0x58c   :  { %5285 = vmatpush1.bf16.msra.mxu1 %v5284_v4  ;;  %v5322_v4 = vpack.c.bf16 %v4416_v21, %v4414_v62  ;;  %v5405_v62 = vpack.c.bf16 %v2475_v60, %v2472_v59  ;;  %v2478_v21 = vld [vmem:[%s8613_s9 + $0xa0] sm:$0xff]  ;;  %v2965_v60 = vld [vmem:[#allocation5 + $0x270] sm:$0xff] }
 0x58d   :  { %5287 = vmatprep.subr.bf16.mxu1 %v5286_v27  ;;  %v4413_v27 = vld [vmem:[%s8611_s7 + $0x740] sm:$0xff] }
 0x58e   :  { %v5324_v5 = vpack.c.bf16 %v4415_v24, %v4413_v27  ;;  %v2484_v27 = vld [vmem:[%s8613_s9 + $0xd0] sm:$0xff]  ;;  %v2487_v24 = vld [vmem:[%s8613_s9 + $0xe8] sm:$0xff]  ;;  %v2963_v59 = vld [vmem:[#allocation5 + $0x260] sm:$0xff] }
 0x590   :  { %5289 = vmatpush1.bf16.msra.mxu1 %v5288_v8  ;;  %v5326_v8 = vpack.c.bf16 %v4420_v26, %v4418_v25  ;;  %v5411_v25 = vpack.c.bf16 %v2487_v24, %v2484_v27  ;;  %v2490_v26 = vld [vmem:[%s8613_s9 + $0x100] sm:$0xff]  ;;  %v2969_v24 = vld [vmem:[#allocation5 + $0x290] sm:$0xff] }
 0x591   :  { %5291 = vmatprep.subr.bf16.mxu1 %v5290_v10  ;;  %v4417_v10 = vld [vmem:[%s8611_s7 + $0x760] sm:$0xff] }
 0x592   :  { %v5328_v54 = vpack.c.bf16 %v4419_v12, %v4417_v10  ;;  %v2496_v10 = vld [vmem:[%s8613_s9 + $0x130] sm:$0xff]  ;;  %v2499_v12 = vld [vmem:[%s8613_s9 + $0x148] sm:$0xff]  ;;  %v2967_v27 = vld [vmem:[#allocation5 + $0x280] sm:$0xff] }
 0x594   :  { %5293 = vmatpush1.bf16.msra.mxu1 %v5292_v58  ;;  %v5330_v58 = vpack.c.bf16 %v4424_v14, %v4422_v13  ;;  %v5417_v13 = vpack.c.bf16 %v2499_v12, %v2496_v10  ;;  %v2502_v14 = vld [vmem:[%s8613_s9 + $0x160] sm:$0xff]  ;;  %v2973_v12 = vld [vmem:[#allocation5 + $0x2b0] sm:$0xff] }
 0x595   :  { %5295 = vmatprep.subr.bf16.mxu1 %v5294_v15  ;;  %v4421_v15 = vld [vmem:[%s8611_s7 + $0x780] sm:$0xff] }
 0x596   :  { %v2971_v10 = vld [vmem:[#allocation5 + $0x2a0] sm:$0xff] }
 0x598   :  { %5297 = vmatpush1.bf16.msra.mxu1 %v5296_v2  ;;  %v4427_v2 = vld [vmem:[%s8611_s7 + $0x7b0] sm:$0xff] }
 0x599   :  { %5299 = vmatprep.subr.bf16.mxu1 %v5298_v52  ;;  %v4430_v52 = vld [vmem:[%s8611_s7 + $0x7c8] sm:$0xff]  ;;  %v5336_v11 = vpack.c.bf16 %v4427_v2, %v4425_v55  ;;  %v2520_v55 = vld [vmem:[%s8613_s9 + $0x1f0] sm:$0xff] }
 0x59a   :  { %v2523_v2 = vld [vmem:[%s8613_s9 + $0x208] sm:$0xff] }
 0x59c   :  { %5301 = vmatpush1.bf16.msra.mxu1 %v5300_v23  ;;  %v5340_v23 = vpack.c.bf16 %v4431_v18, %v4429_v7  ;;  %v2532_v7 = vld [vmem:[%s8613_s9 + $0x250] sm:$0xff]  ;;  %v2535_v18 = vld [vmem:[%s8613_s9 + $0x268] sm:$0xff] }
 0x59d   :  { %5303 = vmatprep.subr.bf16.mxu1 %v5302_v57  ;;  %v2537_v57 = vld [vmem:[%s8613_s9 + $0x278] sm:$0xff] }
 0x59e   :  { %v5394_v31 = vpack.c.bf16 %v2540_v61, %v2537_v57  ;;  %v2538_v57 = vld [vmem:[%s8613_s9 + $0x280] sm:$0xff]  ;;  %v2541_v61 = vld [vmem:[%s8613_s9 + $0x298] sm:$0xff] }
 0x5a0   :  { %5305 = vmatpush1.bf16.msra.mxu1 %v5304_v56  ;;  %5395 = vmatprep.subr.bf16.mxu0 %v5394_v31  ;;  %v5438_v31 = vpack.c.bf16 %v2541_v61, %v2538_v57  ;;  %v2990_v57 = vld [vmem:[#allocation5 + $0x338] sm:$0xff] }
 0x5a1   :  { %5307 = vmatprep.subr.bf16.mxu1 %v5306_v34 }
 0x5a4   :  { %5309 = vmatpush1.bf16.msra.mxu1 %v5308_v9  ;;  %v2463_v9 = vld [vmem:[%s8613_s9 + $0x28] sm:$0xff] }
 0x5a5   :  { %5311 = vmatprep.subr.bf16.mxu1 %v5310_v43  ;;  %v5399_v17 = vpack.c.bf16 %v2463_v9, %v2460_v40  ;;  %v2703_v40 = vld [vmem:[%s8614_s10 + $0x10] sm:$0x3] }
 0x5a8   :  { %5313 = vmatpush1.bf16.msra.mxu1 %v5312_v35 }
 0x5a9   :  { %5315 = vmatprep.subr.bf16.mxu1 %v5314_v46 }
 0x5ac   :  { %5317 = vmatpush1.bf16.msra.mxu1 %v5316_v53  ;;  %v5402_v53 = vpack.c.bf16 %v2469_v48, %v2466_v6 }
 0x5ad   :  { %5319 = vmatprep.subr.bf16.mxu1 %v5318_v29 }
 0x5b0   :  { %5321 = vmatpush1.bf16.msra.mxu1 %v5320_v3  ;;  %v2481_v3 = vld [vmem:[%s8613_s9 + $0xb8] sm:$0xff] }
 0x5b1   :  { %5323 = vmatprep.subr.bf16.mxu1 %v5322_v4  ;;  %v5408_v4 = vpack.c.bf16 %v2481_v3, %v2478_v21  ;;  %v2970_v21 = vld [vmem:[#allocation5 + $0x298] sm:$0xff]  ;;  %v5456_v3 = vpack.c.bf16 %v2965_v60, %v2963_v59  ;;  %v3003_v59 = vld [vmem:[#allocation5 + $0x3a0] sm:$0xff]  ;;  %v3005_v60 = vld [vmem:[#allocation5 + $0x3b0] sm:$0xff] }
 0x5b3   :  { %2345 = vmatmul.mubr.f32.vlgmr.msra.gmra.mrb[56].mxu1 %v7030_v36  ;;  %v4428_v36 = vld [vmem:[%s8611_s7 + $0x7b8] sm:$0xff] }
 0x5b4   :  { %2350 = vmatprep.mubr.f32.mxu1 %v7164_v63  ;;  %5325 = vmatpush1.bf16.msra.mxu1 %v5324_v5  ;;  %v5332_v63 = vpack.c.bf16 %v4423_v39, %v4421_v15  ;;  %v5334_v51 = vpack.c.bf16 %v4428_v36, %v4426_v28  ;;  %v2493_v5 = vld [vmem:[%s8613_s9 + $0x118] sm:$0xff]  ;;  %v2508_v15 = vld [vmem:[%s8613_s9 + $0x190] sm:$0xff]  ;;  %v2511_v39 = vld [vmem:[%s8613_s9 + $0x1a8] sm:$0xff] }
 0x5b5   :  { %5327 = vmatprep.subr.bf16.mxu1 %v5326_v8  ;;  %v5414_v8 = vpack.c.bf16 %v2493_v5, %v2490_v26  ;;  %v5423_v28 = vpack.c.bf16 %v2511_v39, %v2508_v15  ;;  %v2514_v36 = vld [vmem:[%s8613_s9 + $0x1c0] sm:$0xff]  ;;  %v2974_v26 = vld [vmem:[#allocation5 + $0x2b8] sm:$0xff]  ;;  %v5460_v5 = vpack.c.bf16 %v2969_v24, %v2967_v27  ;;  %v2977_v39 = vld [vmem:[#allocation5 + $0x2d0] sm:$0xff] }
 0x5b6   :  { %v2975_v15 = vld [vmem:[#allocation5 + $0x2c0] sm:$0xff]  ;;  %v3009_v24 = vld [vmem:[#allocation5 + $0x3d0] sm:$0xff] }
 0x5b7   :  { %2351 = vmatmul.mubr.f32.gmra.mrb[58].mxu1 %v7169_v19  ;;  %v4432_v19 = vld [vmem:[%s8611_s7 + $0x7d8] sm:$0xff]  ;;  %v3007_v27 = vld [vmem:[#allocation5 + $0x3c0] sm:$0xff] }
 0x5b8   :  { %5329 = vmatpush1.bf16.msra.mxu1 %v5328_v54  ;;  %2421 = vmatprep.mubr.f32.mxu1 %v6025_v1  ;;  %v5338_v22 = vpack.c.bf16 %v4432_v19, %v4430_v52  ;;  %v2505_v54 = vld [vmem:[%s8613_s9 + $0x178] sm:$0xff]  ;;  %v5429_v52 = vpack.c.bf16 %v2523_v2, %v2520_v55  ;;  %v2526_v19 = vld [vmem:[%s8613_s9 + $0x220] sm:$0xff]  ;;  %v2981_v2 = vld [vmem:[#allocation5 + $0x2f0] sm:$0xff] }
 0x5b9   :  { %5331 = vmatprep.subr.bf16.mxu1 %v5330_v58  ;;  %v5420_v58 = vpack.c.bf16 %v2505_v54, %v2502_v14  ;;  %v2978_v14 = vld [vmem:[#allocation5 + $0x2d8] sm:$0xff]  ;;  %v5464_v54 = vpack.c.bf16 %v2973_v12, %v2971_v10  ;;  %v2979_v55 = vld [vmem:[#allocation5 + $0x2e0] sm:$0xff]  ;;  %v3013_v12 = vld [vmem:[#allocation5 + $0x3f0] sm:$0xff] }
 0x5ba   :  { %v3011_v10 = vld [vmem:[#allocation5 + $0x3e0] sm:$0xff] }
 0x5bc   :  { %5333 = vmatpush1.bf16.msra.mxu1 %v5332_v63  ;;  %v2517_v63 = vld [vmem:[%s8613_s9 + $0x1d8] sm:$0xff] }
 0x5bd   :  { %5335 = vmatprep.subr.bf16.mxu1 %v5334_v51  ;;  %v5426_v51 = vpack.c.bf16 %v2517_v63, %v2514_v36  ;;  %v2982_v36 = vld [vmem:[#allocation5 + $0x2f8] sm:$0xff]  ;;  %v5468_v63 = vpack.c.bf16 %v2977_v39, %v2975_v15  ;;  %v3015_v15 = vld [vmem:[#allocation5 + $0x400] sm:$0xff]  ;;  %v3017_v39 = vld [vmem:[#allocation5 + $0x410] sm:$0xff] }
 0x5c0   :  { %5337 = vmatpush1.bf16.msra.mxu1 %v5336_v11  ;;  %v2529_v11 = vld [vmem:[%s8613_s9 + $0x238] sm:$0xff] }
 0x5c1   :  { %5339 = vmatprep.subr.bf16.mxu1 %v5338_v22  ;;  %v5432_v22 = vpack.c.bf16 %v2529_v11, %v2526_v19  ;;  %v2986_v19 = vld [vmem:[#allocation5 + $0x318] sm:$0xff]  ;;  %v5472_v11 = vpack.c.bf16 %v2981_v2, %v2979_v55  ;;  %v3019_v55 = vld [vmem:[#allocation5 + $0x420] sm:$0xff]  ;;  %v3021_v2 = vld [vmem:[#allocation5 + $0x430] sm:$0xff] }
 0x5c4   :  { %5341 = vmatpush1.bf16.msra.mxu1 %v5340_v23  ;;  %v5435_v23 = vpack.c.bf16 %v2535_v18, %v2532_v7  ;;  %v2983_v7 = vld [vmem:[#allocation5 + $0x300] sm:$0xff]  ;;  %v2985_v18 = vld [vmem:[#allocation5 + $0x310] sm:$0xff] }
 0x5c5   :  { %v5476_v61 = vpack.c.bf16 %v2985_v18, %v2983_v7 }
 0x5c7   :  { %4433 = vmatmul.mubr.msk.f32.vlgmr.msra.gmra.mrb[56].mxu1 %vm538_vm5, %v7109_v16  ;;  %v2539_v16 = vld [vmem:[%s8613_s9 + $0x288] sm:$0xff] }
 0x5c8   :  { %2427 = vmatprep.mubr.f32.mxu1 %v6025_v1  ;;  %v5396_v41 = vpack.c.bf16 %v2539_v16, %v2536_v33 }
 0x5ca   :  { %5397 = vmatpush1.bf16.msra.mxu0 %v5396_v41 }
 0x5cb   :  { %4434 = vmatmul.mubr.msk.f32.gmra.mrb[58].mxu1 %vm538_vm5, %v7235_v38  ;;  %5398 = vmatprep.subr.bf16.mxu0 %v6023_v0  ;;  %v2438_v38 = vld [vmem:[%s8612_s8] sm:$0x3] }
 0x5cc   :  { %v2443_v56 = vrot.slane %v2438_v38, %v6595_v30  ;;  %v2447_v34 = vrot.slane %v2438_v38, %v6600_v32 }
 0x69a   :  { %v2423_v50 = vpop.f32.mrb[56].mxu1 }
 0x69b   :  { %v7790_v42 = vadd.f32 %v2443_v56, %v2423_v50  ;;  %v2425_v37 = vpop.f32.mrb[57].mxu1 }
 0x69c   :  { %v2451_v43 = vadd.f32 %v2447_v34, %v2425_v37  ;;  %v2702_v37 = vld [vmem:[%s8614_s10 + $0x8] sm:$0xff] }
 0x69d   :  { %v2454_v20 = vmax.f32 %v7790_v42, 0.0  ;;  %v2701_v42 = vld [vmem:[%s8614_s10] sm:$0xff] }
 0x69e   :  { %v2455_v44 = vmax.f32 %v2451_v43, 0.0  ;;  %v2429_v45 = vpop.f32.mrb[58].mxu1 }
 0x69f   :  { %v7799_v35 = vadd.f32 %v2443_v56, %v2429_v45  ;;  %v2431_v46 = vpop.f32.mrb[59].mxu1  ;;  %v2962_v45 = vld [vmem:[#allocation5 + $0x258] sm:$0xff] }
 0x6a0   :  { %v7807_v49 = vadd.f32 %v2447_v34, %v2431_v46  ;;  %4435 = vmatprep.mubr.msk.f32.mxu0 %vm2542_vm9, %v2455_v44  ;;  %v2961_v46 = vld [vmem:[#allocation5 + $0x250] sm:$0xff] }
 0x6a1   :  { %2614 = vmatmul.mubr.f32.vlgmr.msra.gmra.mrb[24].mxu0 %v2454_v20  ;;  %v2456_v29 = vmax.f32 %v7799_v35, 0.0  ;;  %v2959_v35 = vld [vmem:[#allocation5 + $0x240] sm:$0xff] }
 0x6a2   :  { %v2457_v47 = vmax.f32 %v7807_v49, 0.0  ;;  %5400 = vmatpush1.bf16.msra.mxu0 %v5399_v17  ;;  %v2964_v49 = vld [vmem:[#allocation5 + $0x268] sm:$0xff] }
 0x6a3   :  { %5401 = vmatprep.subr.bf16.mxu0 %v6023_v0 }
 0x6a4   :  { %4436 = vmatprep.mubr.msk.f32.mxu0 %vm2542_vm9, %v2457_v47 }
 0x6a5   :  { %2620 = vmatmul.mubr.f32.gmra.mrb[26].mxu0 %v2456_v29 }
 0x6a6   :  { %5403 = vmatpush1.bf16.msra.mxu0 %v5402_v53  ;;  %4437 = vmatprep.mubr.msk.f32.mxu0 %vm2542_vm9, %v2455_v44  ;;  %v2960_v44 = vld [vmem:[#allocation5 + $0x248] sm:$0xff]  ;;  %v5452_v53 = vpack.c.bf16 %v2961_v46, %v2959_v35 }
 0x6a7   :  { %5404 = vmatprep.subr.bf16.mxu0 %v6023_v0 }
 0x6aa   :  { %5406 = vmatpush1.bf16.msra.mxu0 %v5405_v62  ;;  %v2968_v62 = vld [vmem:[#allocation5 + $0x288] sm:$0xff] }
 0x6ab   :  { %5407 = vmatprep.subr.bf16.mxu0 %v6023_v0 }
 0x6ae   :  { %5409 = vmatpush1.bf16.msra.mxu0 %v5408_v4  ;;  %v5458_v4 = vpack.c.bf16 %v2970_v21, %v2968_v62  ;;  %v3008_v62 = vld [vmem:[#allocation5 + $0x3c8] sm:$0xff]  ;;  %v3010_v21 = vld [vmem:[#allocation5 + $0x3d8] sm:$0xff] }
 0x6af   :  { %5410 = vmatprep.subr.bf16.mxu0 %v6023_v0 }
 0x6b2   :  { %5412 = vmatpush1.bf16.msra.mxu0 %v5411_v25  ;;  %v2972_v25 = vld [vmem:[#allocation5 + $0x2a8] sm:$0xff] }
 0x6b3   :  { %5413 = vmatprep.subr.bf16.mxu0 %v6023_v0 }
 0x6b6   :  { %5415 = vmatpush1.bf16.msra.mxu0 %v5414_v8  ;;  %v5462_v8 = vpack.c.bf16 %v2974_v26, %v2972_v25  ;;  %v3012_v25 = vld [vmem:[#allocation5 + $0x3e8] sm:$0xff]  ;;  %v3014_v26 = vld [vmem:[#allocation5 + $0x3f8] sm:$0xff] }
 0x6b7   :  { %5416 = vmatprep.subr.bf16.mxu0 %v6023_v0 }
 0x6ba   :  { %5418 = vmatpush1.bf16.msra.mxu0 %v5417_v13  ;;  %v2976_v13 = vld [vmem:[#allocation5 + $0x2c8] sm:$0xff] }
 0x6bb   :  { %5419 = vmatprep.subr.bf16.mxu0 %v6023_v0 }
 0x6be   :  { %5421 = vmatpush1.bf16.msra.mxu0 %v5420_v58  ;;  %v5466_v58 = vpack.c.bf16 %v2978_v14, %v2976_v13  ;;  %v3016_v13 = vld [vmem:[#allocation5 + $0x408] sm:$0xff]  ;;  %v3018_v14 = vld [vmem:[#allocation5 + $0x418] sm:$0xff] }
 0x6bf   :  { %5422 = vmatprep.subr.bf16.mxu0 %v6023_v0 }
 0x6c2   :  { %5424 = vmatpush1.bf16.msra.mxu0 %v5423_v28  ;;  %v2980_v28 = vld [vmem:[#allocation5 + $0x2e8] sm:$0xff] }
 0x6c3   :  { %5425 = vmatprep.subr.bf16.mxu0 %v6023_v0 }
 0x6c6   :  { %5427 = vmatpush1.bf16.msra.mxu0 %v5426_v51  ;;  %v5470_v51 = vpack.c.bf16 %v2982_v36, %v2980_v28  ;;  %v3020_v28 = vld [vmem:[#allocation5 + $0x428] sm:$0xff]  ;;  %v3022_v36 = vld [vmem:[#allocation5 + $0x438] sm:$0xff] }
 0x6c7   :  { %5428 = vmatprep.subr.bf16.mxu0 %v6023_v0 }
 0x6ca   :  { %5430 = vmatpush1.bf16.msra.mxu0 %v5429_v52  ;;  %v2984_v52 = vld [vmem:[#allocation5 + $0x308] sm:$0xff] }
 0x6cb   :  { %5431 = vmatprep.subr.bf16.mxu0 %v6023_v0 }
 0x6ce   :  { %5433 = vmatpush1.bf16.msra.mxu0 %v5432_v22  ;;  %v5474_v22 = vpack.c.bf16 %v2986_v19, %v2984_v52  ;;  %v3024_v52 = vld [vmem:[#allocation5 + $0x448] sm:$0xff]  ;;  %v3026_v19 = vld [vmem:[#allocation5 + $0x458] sm:$0xff] }
 0x6cf   :  { %5434 = vmatprep.subr.bf16.mxu0 %v6023_v0 }
 0x6d2   :  { %5436 = vmatpush1.bf16.msra.mxu0 %v5435_v23  ;;  %v2988_v23 = vld [vmem:[#allocation5 + $0x328] sm:$0xff] }
 0x6d3   :  { %5437 = vmatprep.subr.bf16.mxu0 %v6023_v0 }
 0x6d6   :  { %5439 = vmatpush1.bf16.msra.mxu0 %v5438_v31  ;;  %v5478_v31 = vpack.c.bf16 %v2990_v57, %v2988_v23 }
 0x6d9   :  { %2691 = vmatmul.mubr.f32.vlgmr.msra.gmra.mrb[28].mxu0 %v2454_v20  ;;  %v5450_v20 = vpack.c.bf16 %v2962_v45, %v2960_v44  ;;  %v2995_v44 = vld [vmem:[#allocation5 + $0x360] sm:$0xff]  ;;  %v2997_v45 = vld [vmem:[#allocation5 + $0x370] sm:$0xff] }
 0x6da   :  { %4438 = vmatprep.mubr.msk.f32.mxu0 %vm2542_vm9, %v2457_v47  ;;  %v2966_v47 = vld [vmem:[#allocation5 + $0x278] sm:$0xff]  ;;  %v5488_v35 = vpack.c.bf16 %v2997_v45, %v2995_v44  ;;  %v3027_v45 = vld [vmem:[#allocation5 + $0x460] sm:$0xff] }
 0x6dd   :  { %2696 = vmatmul.mubr.f32.gmra.mrb[30].mxu0 %v2456_v29  ;;  %v5454_v29 = vpack.c.bf16 %v2966_v47, %v2964_v49  ;;  %v3004_v49 = vld [vmem:[#allocation5 + $0x3a8] sm:$0xff]  ;;  %v3006_v47 = vld [vmem:[#allocation5 + $0x3b8] sm:$0xff] }
 0x6de   :  { %2787 = vmatprep.mubr.f32.mxu0 %v6025_v1 }
 0x774   :  { %v2615_v33 = vpop.f32.mrb[24].mxu0 }
 0x775   :  { %v2617_v16 = vpop.f32.mrb[25].mxu0 }
 0x778   :  { %v2621_v41 = vpop.f32.mrb[26].mxu0 }
 0x779   :  { %v5443_v38 = vpack.c.bf16 %v2621_v41, %v2615_v33  ;;  %v2623_v56 = vpop.f32.mrb[27].mxu0  ;;  %v2987_v33 = vld [vmem:[#allocation5 + $0x320] sm:$0xff]  ;;  %v2992_v41 = vld [vmem:[#allocation5 + $0x348] sm:$0xff] }
 0x77a   :  { %v5440_v50 = vpack.c.bf16 %v2623_v56, %v2617_v16  ;;  %v2989_v16 = vld [vmem:[#allocation5 + $0x330] sm:$0xff] }
 0x77b   :  { %v5480_v56 = vpack.c.bf16 %v2989_v16, %v2987_v33  ;;  %v3025_v33 = vld [vmem:[#allocation5 + $0x450] sm:$0xff] }
 0x77c   :  { %5442 = vmatprep.subr.msk.bf16.mxu0 %vm7914_vm11, %v5440_v50  ;;  %v2991_v50 = vld [vmem:[#allocation5 + $0x340] sm:$0xff] }
 0x77d   :  { %5445 = vmatpush1.bf16.msk.msra.mxu0 %vm7914_vm11, %v5443_v38  ;;  %v2994_v38 = vld [vmem:[#allocation5 + $0x358] sm:$0xff] }
 0x77e   :  { %5446 = vmatprep.subr.bf16.mxu0 %v6023_v0  ;;  %v5482_v34 = vpack.c.bf16 %v2994_v38, %v2992_v41  ;;  %v3028_v38 = vld [vmem:[#allocation5 + $0x468] sm:$0xff] }
 0x780   :  { %4441 = vmatmul.mubr.msk.f32.vlgmr.msra.gmra.mrb[32].mxu0 %vm2704_vm12, %v2701_v42 }
 0x781   :  { %2793 = vmatprep.mubr.f32.mxu0 %v6025_v1 }
 0x784   :  { %4442 = vmatmul.mubr.msk.f32.gmra.mrb[34].mxu0 %vm2704_vm12, %v2702_v37 }
 0x785   :  { %2799 = vmatprep.mubr.f32.mxu0 %v6025_v1 }
 0x788   :  { %4443 = vmatmul.mubr.msk.f32.gmra.mrb[36].mxu0 %vm2704_vm12, %v2703_v40 }
 0x789   :  { %4812 = vmatprep.mubr.msk.f32.mxu0 %vm6024_vm0, %v6025_v1 }
 0x7ac   :  { %v2692_v9 = vpop.f32.mrb[28].mxu0 }
 0x7ad   :  { %v2694_v43 = vpop.f32.mrb[29].mxu0 }
 0x7b0   :  { %v2697_v17 = vpop.f32.mrb[30].mxu0 }
 0x7b1   :  { %v5447_v6 = vpack.c.bf16 %v2697_v17, %v2692_v9  ;;  %v2699_v48 = vpop.f32.mrb[31].mxu0  ;;  %v3000_v17 = vld [vmem:[#allocation5 + $0x388] sm:$0xff] }
 0x7b2   :  { %v3001_v48 = vld [vmem:[#allocation5 + $0x390] sm:$0xff] }
 0x7b3   :  { %5449 = vmatpush3.bf16.msk.msra.mxu0 %vm7914_vm11, %v5447_v6  ;;  %v2999_v6 = vld [vmem:[#allocation5 + $0x380] sm:$0xff] }
 0x7b4   :  { %5451 = vmatprep.subr.bf16.mxu0 %v5450_v20  ;;  %v3002_v20 = vld [vmem:[#allocation5 + $0x398] sm:$0xff] }
 0x7b5   :  { %v5490_v46 = vpack.c.bf16 %v3002_v20, %v3000_v17  ;;  %v3029_v17 = vld [vmem:[#allocation5 + $0x470] sm:$0xff] }
 0x7b6   :  { %4813 = vmatmul.mubr.msk.f32.vlgmr.msra.gmra.mrb[38].mxu0 %vm2704_vm12, %v2701_v42  ;;  %v2993_v42 = vld [vmem:[#allocation5 + $0x350] sm:$0xff] }
 0x7b7   :  { %4815 = vmatprep.mubr.msk.f32.mxu0 %vm6024_vm0, %v6025_v1  ;;  %5453 = vmatpush1.bf16.msra.mxu0 %v5452_v53  ;;  %v5484_v9 = vpack.c.bf16 %v2993_v42, %v2991_v50  ;;  %v5492_v53 = vpack.c.bf16 %v3001_v48, %v2999_v6  ;;  %v2889_v6 = vld [vmem:[#allocation5 + $0x18] sm:$0xff] }
 0x7b8   :  { %5455 = vmatprep.subr.bf16.mxu0 %v5454_v29  ;;  %v5494_v29 = vpack.c.bf16 %v3006_v47, %v3004_v49  ;;  %v5520_v49 = vpack.c.bf16 %v3029_v17, %v3027_v45  ;;  %v4452_v45 = vld [vmem:[%s8617_s13 + $0x188] sm:$0xff]  ;;  %v4454_v17 = vld [vmem:[%s8617_s13 + $0x198] sm:$0xff] }
 0x7ba   :  { %4816 = vmatmul.mubr.msk.f32.gmra.mrb[40].mxu0 %vm2704_vm12, %v2702_v37  ;;  %v2996_v37 = vld [vmem:[#allocation5 + $0x368] sm:$0xff] }
 0x7bb   :  { %4818 = vmatprep.mubr.msk.f32.mxu0 %vm6024_vm0, %v6025_v1  ;;  %5457 = vmatpush1.bf16.msra.mxu0 %v5456_v3  ;;  %v5496_v3 = vpack.c.bf16 %v3005_v60, %v3003_v59 }
 0x7bc   :  { %5459 = vmatprep.subr.bf16.mxu0 %v5458_v4  ;;  %v5498_v4 = vpack.c.bf16 %v3010_v21, %v3008_v62  ;;  %v2886_v62 = vld [vmem:[#allocation5] sm:$0xff]  ;;  %v2888_v21 = vld [vmem:[#allocation5 + $0x10] sm:$0xff] }
 0x7be   :  { %4819 = vmatmul.mubr.msk.f32.gmra.mrb[42].mxu0 %vm2704_vm12, %v2703_v40  ;;  %v2998_v40 = vld [vmem:[#allocation5 + $0x378] sm:$0xff] }
 0x7bf   :  { %5461 = vmatpush1.bf16.msra.mxu0 %v5460_v5  ;;  %v5486_v43 = vpack.c.bf16 %v2998_v40, %v2996_v37  ;;  %v5500_v5 = vpack.c.bf16 %v3009_v24, %v3007_v27 }
 0x7c0   :  { %5463 = vmatprep.subr.bf16.mxu0 %v5462_v8  ;;  %v5502_v8 = vpack.c.bf16 %v3014_v26, %v3012_v25  ;;  %v5524_v26 = vpack.c.bf16 %v2888_v21, %v2886_v62  ;;  %v4455_v21 = vld [vmem:[%s8617_s13 + $0x1a0] sm:$0xff] }
 0x7c3   :  { %5465 = vmatpush1.bf16.msra.mxu0 %v5464_v54  ;;  %v5504_v54 = vpack.c.bf16 %v3013_v12, %v3011_v10  ;;  %v2890_v10 = vld [vmem:[#allocation5 + $0x20] sm:$0xff]  ;;  %v2892_v12 = vld [vmem:[#allocation5 + $0x30] sm:$0xff] }
 0x7c4   :  { %5467 = vmatprep.subr.bf16.mxu0 %v5466_v58  ;;  %v5506_v58 = vpack.c.bf16 %v3018_v14, %v3016_v13  ;;  %v2895_v14 = vld [vmem:[#allocation5 + $0x48] sm:$0xff] }
 0x7c7   :  { %5469 = vmatpush1.bf16.msra.mxu0 %v5468_v63  ;;  %v5508_v63 = vpack.c.bf16 %v3017_v39, %v3015_v15 }
 0x7c8   :  { %5471 = vmatprep.subr.bf16.mxu0 %v5470_v51  ;;  %v5510_v51 = vpack.c.bf16 %v3022_v36, %v3020_v28  ;;  %v5528_v28 = vpack.c.bf16 %v2892_v12, %v2890_v10  ;;  %v4459_v12 = vld [vmem:[%s8617_s13 + $0x1c0] sm:$0xff] }
 0x7cb   :  { %5473 = vmatpush1.bf16.msra.mxu0 %v5472_v11  ;;  %v5512_v11 = vpack.c.bf16 %v3021_v2, %v3019_v55  ;;  %v2896_v55 = vld [vmem:[#allocation5 + $0x50] sm:$0xff] }
 0x7cc   :  { %5475 = vmatprep.subr.bf16.mxu0 %v5474_v22  ;;  %v5514_v22 = vpack.c.bf16 %v3026_v19, %v3024_v52  ;;  %v2899_v52 = vld [vmem:[#allocation5 + $0x68] sm:$0xff]  ;;  %v2901_v19 = vld [vmem:[#allocation5 + $0x78] sm:$0xff] }
 0x7cf   :  { %5477 = vmatpush1.bf16.msra.mxu0 %v5476_v61 }
 0x7d0   :  { %5479 = vmatprep.subr.bf16.mxu0 %v5478_v31  ;;  %v3023_v31 = vld [vmem:[#allocation5 + $0x440] sm:$0xff] }
 0x7d1   :  { %v5516_v37 = vpack.c.bf16 %v3025_v33, %v3023_v31 }
 0x7d3   :  { %5481 = vmatpush1.bf16.msra.mxu0 %v5480_v56  ;;  %v3030_v56 = vld [vmem:[#allocation5 + $0x478] sm:$0xff] }
 0x7d4   :  { %5483 = vmatprep.subr.bf16.mxu0 %v5482_v34  ;;  %v5518_v44 = vpack.c.bf16 %v3030_v56, %v3028_v38  ;;  %v2907_v38 = vld [vmem:[#allocation5 + $0xa8] sm:$0xff]  ;;  %v2909_v56 = vld [vmem:[#allocation5 + $0xb8] sm:$0xff] }
 0x7d7   :  { %5485 = vmatpush1.bf16.msra.mxu0 %v5484_v9 }
 0x7d8   :  { %5487 = vmatprep.subr.bf16.mxu0 %v5486_v43 }
 0x7db   :  { %5489 = vmatpush1.bf16.msra.mxu0 %v5488_v35 }
 0x7dc   :  { %5491 = vmatprep.subr.bf16.mxu0 %v5490_v46  ;;  %v2887_v46 = vld [vmem:[#allocation5 + $0x8] sm:$0xff] }
 0x7df   :  { %5493 = vmatpush1.bf16.msra.mxu0 %v5492_v53  ;;  %v5522_v53 = vpack.c.bf16 %v2889_v6, %v2887_v46  ;;  %v5666_v46 = vpack.c.bf16 %v4454_v17, %v4452_v45  ;;  %v4453_v6 = vld [vmem:[%s8617_s13 + $0x190] sm:$0xff]  ;;  %v2926_v45 = vld [vmem:[#allocation5 + $0x140] sm:$0xff] }
 0x7e0   :  { %5495 = vmatprep.subr.bf16.mxu0 %v5494_v29 }
 0x7e1   :  { %5667 = vmatprep.subr.bf16.mxu1 %v5666_v46 }
 0x7e3   :  { %5497 = vmatpush1.bf16.msra.mxu0 %v5496_v3  ;;  %v2891_v3 = vld [vmem:[#allocation5 + $0x28] sm:$0xff] }
 0x7e4   :  { %5499 = vmatprep.subr.bf16.mxu0 %v5498_v4  ;;  %v2893_v4 = vld [vmem:[#allocation5 + $0x38] sm:$0xff] }
 0x7e7   :  { %5501 = vmatpush1.bf16.msra.mxu0 %v5500_v5 }
 0x7e8   :  { %5503 = vmatprep.subr.bf16.mxu0 %v5502_v8  ;;  %v5526_v8 = vpack.c.bf16 %v2893_v4, %v2891_v3  ;;  %v4457_v3 = vld [vmem:[%s8617_s13 + $0x1b0] sm:$0xff]  ;;  %v4460_v4 = vld [vmem:[%s8617_s13 + $0x1c8] sm:$0xff] }
 0x7eb   :  { %5505 = vmatpush1.bf16.msra.mxu0 %v5504_v54  ;;  %v2897_v54 = vld [vmem:[#allocation5 + $0x58] sm:$0xff] }
 0x7ec   :  { %5507 = vmatprep.subr.bf16.mxu0 %v5506_v58 }
 0x7ef   :  { %5509 = vmatpush1.bf16.msra.mxu0 %v5508_v63  ;;  %v5530_v63 = vpack.c.bf16 %v2897_v54, %v2895_v14  ;;  %v2916_v54 = vld [vmem:[#allocation5 + $0xf0] sm:$0xff] }
 0x7f0   :  { %5511 = vmatprep.subr.bf16.mxu0 %v5510_v51  ;;  %v2894_v51 = vld [vmem:[#allocation5 + $0x40] sm:$0xff] }
 0x7f3   :  { %5513 = vmatpush1.bf16.msra.mxu0 %v5512_v11  ;;  %v5532_v11 = vpack.c.bf16 %v2896_v55, %v2894_v51  ;;  %v2918_v51 = vld [vmem:[#allocation5 + $0x100] sm:$0xff] }
 0x7f4   :  { %5515 = vmatprep.subr.bf16.mxu0 %v5514_v22  ;;  %v5534_v22 = vpack.c.bf16 %v2901_v19, %v2899_v52  ;;  %v4463_v52 = vld [vmem:[%s8617_s13 + $0x1e0] sm:$0xff]  ;;  %v4465_v19 = vld [vmem:[%s8617_s13 + $0x1f0] sm:$0xff] }
 0x853   :  { %v7948_v7 = vpop.f32.mrb[32].mxu0 }
 0x854   :  { %v2791_v18 = vpop.f32.mrb[33].mxu0  ;;  %v3037_v23 = vrot.slane %v7948_v7, 6 }
 0x855   :  { %v3040_v57 = vrot.slane %v2791_v18, 6 }
 0x857   :  { %v2795_v61 = vpop.f32.mrb[34].mxu0 }
 0x858   :  { %v3038_v16 = vrot.slane %v2795_v61, 6  ;;  %v2797_v41 = vpop.f32.mrb[35].mxu0  ;;  %v3412_v50 = vrot.slane %v2795_v61, 4  ;;  %v2903_v61 = vld [vmem:[#allocation5 + $0x88] sm:$0xff] }
 0x859   :  { %v3041_v34 = vrot.slane %v2797_v41, 6  ;;  %v3415_v40 = vrot.slane %v2797_v41, 4  ;;  %v2904_v41 = vld [vmem:[#allocation5 + $0x90] sm:$0xff] }
 0x85a   :  { %v3039_v42 = vsel %vm1828_vm7, %v3037_v23, %v3038_v16  ;;  %v2898_v23 = vld [vmem:[#allocation5 + $0x60] sm:$0xff] }
 0x85b   :  { %v2801_v9 = vpop.f32.mrb[36].mxu0  ;;  %v3042_v43 = vsel %vm1828_vm7, %v3040_v57, %v3041_v34  ;;  %v2900_v57 = vld [vmem:[#allocation5 + $0x70] sm:$0xff]  ;;  %v2902_v16 = vld [vmem:[#allocation5 + $0x80] sm:$0xff] }
 0x85c   :  { %v3413_v20 = vrot.slane %v2801_v9, 4  ;;  %3114 = vmatprep.mubr.f32.mxu0 %v3042_v43  ;;  %v2803_v35 = vpop.f32.mrb[37].mxu0  ;;  %v5536_v31 = vpack.c.bf16 %v2900_v57, %v2898_v23  ;;  %v5540_v34 = vpack.c.bf16 %v2904_v41, %v2902_v16  ;;  %v2913_v9 = vld [vmem:[#allocation5 + $0xd8] sm:$0xff]  ;;  %v2910_v43 = vld [vmem:[#allocation5 + $0xc0] sm:$0xff]  ;;  %v4468_v23 = vld [vmem:[%s8617_s13 + $0x208] sm:$0xff] }
 0x85d   :  { %v3416_v48 = vrot.slane %v2803_v35, 4  ;;  %3115 = vmatmul.mubr.f32.vlgmr.msra.gmra.mrb[44].mxu0 %v3039_v42  ;;  %v2906_v42 = vld [vmem:[#allocation5 + $0xa0] sm:$0xff]  ;;  %v4470_v57 = vld [vmem:[%s8617_s13 + $0x218] sm:$0xff] }
 0x85e   :  { %5517 = vmatpush1.bf16.msra.mxu0 %v5516_v37  ;;  %3185 = vmatprep.mubr.f32.mxu0 %v6025_v1  ;;  %v7955_v47 = vsel %vm2256_vm8, %v3412_v50, %v3413_v20  ;;  %v5542_v50 = vpack.c.bf16 %v2909_v56, %v2907_v38  ;;  %v2908_v37 = vld [vmem:[#allocation5 + $0xb0] sm:$0xff]  ;;  %v4451_v20 = vld [vmem:[%s8617_s13 + $0x180] sm:$0xff]  ;;  %v5682_v41 = vpack.c.bf16 %v4470_v57, %v4468_v23 }
 0x85f   :  { %5519 = vmatprep.subr.bf16.mxu0 %v5518_v44  ;;  %v7958_v29 = vsel %vm2256_vm8, %v3415_v40, %v3416_v48  ;;  %v2911_v40 = vld [vmem:[#allocation5 + $0xc8] sm:$0xff]  ;;  %v2912_v44 = vld [vmem:[#allocation5 + $0xd0] sm:$0xff]  ;;  %v5544_v35 = vpack.c.bf16 %v2908_v37, %v2906_v42  ;;  %v2922_v16 = vld [vmem:[#allocation5 + $0x120] sm:$0xff] }
 0x860   :  { %v4456_v48 = vld [vmem:[%s8617_s13 + $0x1a8] sm:$0xff]  ;;  %v4467_v38 = vld [vmem:[%s8617_s13 + $0x200] sm:$0xff]  ;;  %v4469_v56 = vld [vmem:[%s8617_s13 + $0x210] sm:$0xff] }
 0x861   :  { %v4472_v42 = vld [vmem:[%s8617_s13 + $0x228] sm:$0xff]  ;;  %v4474_v37 = vld [vmem:[%s8617_s13 + $0x238] sm:$0xff]  ;;  %v4483_v57 = vld [vmem:[%s8617_s13 + $0x280] sm:$0xff] }
 0x862   :  { %5521 = vmatpush1.bf16.msra.mxu0 %v5520_v49  ;;  %v4458_v49 = vld [vmem:[%s8617_s13 + $0x1b8] sm:$0xff]  ;;  %v5686_v17 = vpack.c.bf16 %v4474_v37, %v4472_v42  ;;  %v4487_v42 = vld [vmem:[%s8617_s13 + $0x2a0] sm:$0xff]  ;;  %v4489_v37 = vld [vmem:[%s8617_s13 + $0x2b0] sm:$0xff] }
 0x863   :  { %5523 = vmatprep.subr.bf16.mxu0 %v5522_v53  ;;  %v5546_v53 = vpack.c.bf16 %v2913_v9, %v2911_v40  ;;  %v5670_v62 = vpack.c.bf16 %v4458_v49, %v4456_v48  ;;  %v2927_v40 = vld [vmem:[#allocation5 + $0x148] sm:$0xff]  ;;  %v2929_v9 = vld [vmem:[#allocation5 + $0x158] sm:$0xff] }
 0x864   :  { %v5562_v46 = vpack.c.bf16 %v2929_v9, %v2927_v40  ;;  %v4476_v48 = vld [vmem:[%s8617_s13 + $0x248] sm:$0xff]  ;;  %v4478_v49 = vld [vmem:[%s8617_s13 + $0x258] sm:$0xff]  ;;  %v2942_v9 = vld [vmem:[#allocation5 + $0x1c0] sm:$0xff] }
 0x889   :  { %v7960_v59 = vpop.f32.mrb[38].mxu0 }
 0x88a   :  { %v4814_v60 = vpop.f32.mrb[39].mxu0  ;;  %v3043_v24 = vrot.slane %v7960_v59, 6 }
 0x88b   :  { %v5668_v60 = vpack.c.bf16 %v4453_v6, %v4451_v20  ;;  %v4471_v20 = vld [vmem:[%s8617_s13 + $0x220] sm:$0xff]  ;;  %v2928_v6 = vld [vmem:[#allocation5 + $0x150] sm:$0xff] }
 0x88d   :  { %v2877_v27 = vpop.f32.mrb[40].mxu0  ;;  %5669 = vmatpush1.bf16.msra.mxu1 %v5668_v60  ;;  %v2933_v60 = vld [vmem:[#allocation5 + $0x178] sm:$0xff] }
 0x88e   :  { %v3044_v25 = vrot.slane %v2877_v27, 6  ;;  %v4817_v5 = vpop.f32.mrb[41].mxu0  ;;  %v3418_v15 = vrot.slane %v2877_v27, 4  ;;  %v2915_v27 = vld [vmem:[#allocation5 + $0xe8] sm:$0xff]  ;;  %5671 = vmatprep.subr.bf16.mxu1 %v5670_v62 }
 0x88f   :  { %v5548_v5 = vpack.c.bf16 %v2912_v44, %v2910_v43  ;;  %v5684_v43 = vpack.c.bf16 %v4469_v56, %v4467_v38  ;;  %v2945_v38 = vld [vmem:[#allocation5 + $0x1d8] sm:$0xff] }
 0x890   :  { %v3045_v13 = vsel %vm1828_vm7, %v3043_v24, %v3044_v25  ;;  %v2917_v24 = vld [vmem:[#allocation5 + $0xf8] sm:$0xff] }
 0x891   :  { %4448 = vmatmul.mubr.msk.f32.vlgmr.msra.gmra.mrb[44].mxu0 %vm1435_vm6, %v3045_v13  ;;  %v2882_v58 = vpop.f32.mrb[42].mxu0  ;;  %v4462_v25 = vld [vmem:[%s8617_s13 + $0x1d8] sm:$0xff]  ;;  %v4461_v13 = vld [vmem:[%s8617_s13 + $0x1d0] sm:$0xff]  ;;  %v5550_v14 = vpack.c.bf16 %v2917_v24, %v2915_v27  ;;  %v4475_v27 = vld [vmem:[%s8617_s13 + $0x240] sm:$0xff] }
 0x892   :  { %5525 = vmatpush1.bf16.msra.mxu0 %v5524_v26  ;;  %3258 = vmatprep.mubr.f32.mxu0 %v2791_v18  ;;  %v3419_v39 = vrot.slane %v2882_v58, 4  ;;  %v4820_v36 = vpop.f32.mrb[43].mxu0  ;;  %v2905_v18 = vld [vmem:[#allocation5 + $0x98] sm:$0xff]  ;;  %v5672_v26 = vpack.c.bf16 %v4457_v3, %v4455_v21  ;;  %v5674_v10 = vpack.c.bf16 %v4462_v25, %v4460_v4  ;;  %v4464_v58 = vld [vmem:[%s8617_s13 + $0x1e8] sm:$0xff]  ;;  %v5564_v21 = vpack.c.bf16 %v2928_v6, %v2926_v45  ;;  %v2930_v3 = vld [vmem:[#allocation5 + $0x160] sm:$0xff] }
 0x893   :  { %5527 = vmatprep.subr.bf16.mxu0 %v5526_v8  ;;  %v5538_v33 = vpack.c.bf16 %v2905_v18, %v2903_v61  ;;  %v2914_v8 = vld [vmem:[#allocation5 + $0xe0] sm:$0xff]  ;;  %v5676_v36 = vpack.c.bf16 %v4461_v13, %v4459_v12  ;;  %v2923_v61 = vld [vmem:[#allocation5 + $0x128] sm:$0xff]  ;;  %v2925_v18 = vld [vmem:[#allocation5 + $0x138] sm:$0xff]  ;;  %v5690_v4 = vpack.c.bf16 %v4478_v49, %v4476_v48 }
 0x894   :  { %v7966_v2 = vsel %vm2256_vm8, %v3418_v15, %v3419_v39  ;;  %v4466_v15 = vld [vmem:[%s8617_s13 + $0x1f8] sm:$0xff]  ;;  %v2919_v39 = vld [vmem:[#allocation5 + $0x108] sm:$0xff]  ;;  %5673 = vmatpush1.bf16.msra.mxu1 %v5672_v26  ;;  %v4477_v24 = vld [vmem:[%s8617_s13 + $0x250] sm:$0xff] }
 0x895   :  { %5675 = vmatprep.subr.bf16.mxu1 %v5674_v10  ;;  %v5678_v55 = vpack.c.bf16 %v4466_v15, %v4464_v58  ;;  %v2932_v26 = vld [vmem:[#allocation5 + $0x170] sm:$0xff]  ;;  %v2935_v10 = vld [vmem:[#allocation5 + $0x188] sm:$0xff]  ;;  %v2937_v12 = vld [vmem:[#allocation5 + $0x198] sm:$0xff]  ;;  %v5692_v13 = vpack.c.bf16 %v4477_v24, %v4475_v27 }
 0x896   :  { %5529 = vmatpush1.bf16.msra.mxu0 %v5528_v28  ;;  %v2921_v28 = vld [vmem:[#allocation5 + $0x118] sm:$0xff]  ;;  %v4479_v15 = vld [vmem:[%s8617_s13 + $0x260] sm:$0xff]  ;;  %v2948_v6 = vld [vmem:[#allocation5 + $0x1f0] sm:$0xff] }
 0x897   :  { %5531 = vmatprep.subr.bf16.mxu0 %v5530_v63  ;;  %v5552_v63 = vpack.c.bf16 %v2916_v54, %v2914_v8  ;;  %v4482_v8 = vld [vmem:[%s8617_s13 + $0x278] sm:$0xff]  ;;  %v2934_v54 = vld [vmem:[#allocation5 + $0x180] sm:$0xff]  ;;  %v2951_v48 = vld [vmem:[#allocation5 + $0x208] sm:$0xff] }
 0x898   :  { %5677 = vmatpush1.bf16.msra.mxu1 %v5676_v36  ;;  %v2936_v36 = vld [vmem:[#allocation5 + $0x190] sm:$0xff]  ;;  %v2949_v45 = vld [vmem:[#allocation5 + $0x1f8] sm:$0xff] }
 0x899   :  { %5679 = vmatprep.subr.bf16.mxu1 %v5678_v55  ;;  %v2939_v55 = vld [vmem:[#allocation5 + $0x1a8] sm:$0xff]  ;;  %v2953_v49 = vld [vmem:[#allocation5 + $0x218] sm:$0xff] }
 0x89a   :  { %5533 = vmatpush1.bf16.msra.mxu0 %v5532_v11  ;;  %v5554_v11 = vpack.c.bf16 %v2921_v28, %v2919_v39  ;;  %v4481_v39 = vld [vmem:[%s8617_s13 + $0x270] sm:$0xff]  ;;  %v5570_v28 = vpack.c.bf16 %v2937_v12, %v2935_v10 }
 0x89b   :  { %5535 = vmatprep.subr.bf16.mxu0 %v5534_v22  ;;  %v2920_v22 = vld [vmem:[#allocation5 + $0x110] sm:$0xff] }
 0x89e   :  { %5537 = vmatpush1.bf16.msra.mxu0 %v5536_v31  ;;  %v5680_v31 = vpack.c.bf16 %v4465_v19, %v4463_v52  ;;  %v2941_v52 = vld [vmem:[#allocation5 + $0x1b8] sm:$0xff]  ;;  %v5696_v19 = vpack.c.bf16 %v4481_v39, %v4479_v15 }
 0x89f   :  { %5539 = vmatprep.subr.bf16.mxu0 %v5538_v33  ;;  %v5556_v33 = vpack.c.bf16 %v2920_v22, %v2918_v51  ;;  %v4486_v51 = vld [vmem:[%s8617_s13 + $0x298] sm:$0xff]  ;;  %v2938_v22 = vld [vmem:[#allocation5 + $0x1a0] sm:$0xff] }
 0x8a0   :  { %5681 = vmatpush1.bf16.msra.mxu1 %v5680_v31  ;;  %v2940_v31 = vld [vmem:[#allocation5 + $0x1b0] sm:$0xff] }
 0x8a1   :  { %5683 = vmatprep.subr.bf16.mxu1 %v5682_v41  ;;  %v2943_v41 = vld [vmem:[#allocation5 + $0x1c8] sm:$0xff] }
 0x8a2   :  { %5541 = vmatpush1.bf16.msra.mxu0 %v5540_v34  ;;  %v5558_v34 = vpack.c.bf16 %v2925_v18, %v2923_v61  ;;  %v4485_v61 = vld [vmem:[%s8617_s13 + $0x290] sm:$0xff]  ;;  %v5574_v18 = vpack.c.bf16 %v2941_v52, %v2939_v55  ;;  %v5578_v40 = vpack.c.bf16 %v2945_v38, %v2943_v41  ;;  %v3345_v52 = vld [vmem:[#allocation5 + $0x4c0] sm:$0xff]  ;;  %v3358_v38 = vld [vmem:[#allocation5 + $0x528] sm:$0xff] }
 0x8a3   :  { %5543 = vmatprep.subr.bf16.mxu0 %v5542_v50  ;;  %v2924_v50 = vld [vmem:[#allocation5 + $0x130] sm:$0xff]  ;;  %v5700_v56 = vpack.c.bf16 %v4485_v61, %v4483_v57  ;;  %v3349_v61 = vld [vmem:[#allocation5 + $0x4e0] sm:$0xff] }
 0x8a4   :  { %v5560_v44 = vpack.c.bf16 %v2924_v50, %v2922_v16  ;;  %5685 = vmatpush1.bf16.msra.mxu1 %v5684_v43  ;;  %v4490_v16 = vld [vmem:[%s8617_s13 + $0x2b8] sm:$0xff]  ;;  %v2944_v43 = vld [vmem:[#allocation5 + $0x1d0] sm:$0xff] }
 0x8a5   :  { %5687 = vmatprep.subr.bf16.mxu1 %v5686_v17  ;;  %v5704_v17 = vpack.c.bf16 %v4489_v37, %v4487_v42  ;;  %v3355_v41 = vld [vmem:[#allocation5 + $0x510] sm:$0xff]  ;;  %v3357_v42 = vld [vmem:[#allocation5 + $0x520] sm:$0xff] }
 0x8a6   :  { %5545 = vmatpush1.bf16.msra.mxu0 %v5544_v35  ;;  %v4473_v35 = vld [vmem:[%s8617_s13 + $0x230] sm:$0xff] }
 0x8a7   :  { %5547 = vmatprep.subr.bf16.mxu0 %v5546_v53  ;;  %v2931_v53 = vld [vmem:[#allocation5 + $0x168] sm:$0xff]  ;;  %v5688_v62 = vpack.c.bf16 %v4473_v35, %v4471_v20  ;;  %v5580_v20 = vpack.c.bf16 %v2944_v43, %v2942_v9  ;;  %v3359_v37 = vld [vmem:[#allocation5 + $0x530] sm:$0xff]  ;;  %v3364_v9 = vld [vmem:[#allocation5 + $0x558] sm:$0xff] }
 0x8a8   :  { %v5566_v25 = vpack.c.bf16 %v2933_v60, %v2931_v53  ;;  %v5586_v60 = vpack.c.bf16 %v2953_v49, %v2951_v48  ;;  %v5616_v43 = vpack.c.bf16 %v3359_v37, %v3357_v42  ;;  %v3365_v48 = vld [vmem:[#allocation5 + $0x560] sm:$0xff]  ;;  %v3367_v49 = vld [vmem:[#allocation5 + $0x570] sm:$0xff] }
 0x8a9   :  { %5689 = vmatpush1.bf16.msra.mxu1 %v5688_v62  ;;  %v2950_v62 = vld [vmem:[#allocation5 + $0x200] sm:$0xff] }
 0x8aa   :  { %5549 = vmatpush1.bf16.msra.mxu0 %v5548_v5  ;;  %v4480_v5 = vld [vmem:[%s8617_s13 + $0x268] sm:$0xff]  ;;  %5691 = vmatprep.subr.bf16.mxu1 %v5690_v4  ;;  %v2957_v4 = vld [vmem:[#allocation5 + $0x238] sm:$0xff] }
 0x8ab   :  { %5551 = vmatprep.subr.bf16.mxu0 %v5550_v14  ;;  %v5568_v14 = vpack.c.bf16 %v2932_v26, %v2930_v3  ;;  %v5694_v58 = vpack.c.bf16 %v4482_v8, %v4480_v5  ;;  %v2955_v3 = vld [vmem:[#allocation5 + $0x228] sm:$0xff]  ;;  %v2956_v26 = vld [vmem:[#allocation5 + $0x230] sm:$0xff]  ;;  %v3340_v8 = vld [vmem:[#allocation5 + $0x498] sm:$0xff] }
 0x8ac   :  { %v5590_v24 = vpack.c.bf16 %v2957_v4, %v2955_v3  ;;  %v3338_v5 = vld [vmem:[#allocation5 + $0x488] sm:$0xff]  ;;  %v3369_v3 = vld [vmem:[#allocation5 + $0x580] sm:$0xff]  ;;  %v3371_v4 = vld [vmem:[#allocation5 + $0x590] sm:$0xff] }
 0x8ad   :  { %5693 = vmatpush1.bf16.msra.mxu1 %v5692_v13  ;;  %v5594_v12 = vpack.c.bf16 %v3340_v8, %v3338_v5  ;;  %v3337_v13 = vld [vmem:[#allocation5 + $0x480] sm:$0xff]  ;;  %v3375_v8 = vld [vmem:[#allocation5 + $0x5b0] sm:$0xff] }
 0x8ae   :  { %5553 = vmatpush1.bf16.msra.mxu0 %v5552_v63  ;;  %v4484_v63 = vld [vmem:[%s8617_s13 + $0x288] sm:$0xff]  ;;  %5695 = vmatprep.subr.bf16.mxu1 %v5694_v58  ;;  %v3344_v58 = vld [vmem:[#allocation5 + $0x4b8] sm:$0xff]  ;;  %v3373_v5 = vld [vmem:[#allocation5 + $0x5a0] sm:$0xff] }
 0x8af   :  { %5555 = vmatprep.subr.bf16.mxu0 %v5554_v11  ;;  %v5572_v11 = vpack.c.bf16 %v2936_v36, %v2934_v54  ;;  %v5698_v23 = vpack.c.bf16 %v4486_v51, %v4484_v63  ;;  %v3342_v54 = vld [vmem:[#allocation5 + $0x4a8] sm:$0xff]  ;;  %v3343_v36 = vld [vmem:[#allocation5 + $0x4b0] sm:$0xff]  ;;  %v3348_v51 = vld [vmem:[#allocation5 + $0x4d8] sm:$0xff] }
 0x8b0   :  { %v5598_v39 = vpack.c.bf16 %v3344_v58, %v3342_v54  ;;  %v3346_v63 = vld [vmem:[#allocation5 + $0x4c8] sm:$0xff]  ;;  %v3377_v54 = vld [vmem:[#allocation5 + $0x5c0] sm:$0xff]  ;;  %v3379_v58 = vld [vmem:[#allocation5 + $0x5d0] sm:$0xff] }
 0x8b1   :  { %5697 = vmatpush1.bf16.msra.mxu1 %v5696_v19  ;;  %v5602_v55 = vpack.c.bf16 %v3348_v51, %v3346_v63  ;;  %v3347_v19 = vld [vmem:[#allocation5 + $0x4d0] sm:$0xff]  ;;  %v3381_v63 = vld [vmem:[#allocation5 + $0x5e0] sm:$0xff] }
 0x8b2   :  { %5557 = vmatpush1.bf16.msra.mxu0 %v5556_v33  ;;  %v4488_v33 = vld [vmem:[%s8617_s13 + $0x2a8] sm:$0xff]  ;;  %5699 = vmatprep.subr.bf16.mxu1 %v5698_v23  ;;  %v5604_v23 = vpack.c.bf16 %v3347_v19, %v3345_v52  ;;  %v3383_v51 = vld [vmem:[#allocation5 + $0x5f0] sm:$0xff] }
 0x8b3   :  { %5559 = vmatprep.subr.bf16.mxu0 %v5558_v34  ;;  %v5576_v34 = vpack.c.bf16 %v2940_v31, %v2938_v22  ;;  %v5702_v50 = vpack.c.bf16 %v4490_v16, %v4488_v33  ;;  %v3352_v22 = vld [vmem:[#allocation5 + $0x4f8] sm:$0xff]  ;;  %v3354_v31 = vld [vmem:[#allocation5 + $0x508] sm:$0xff]  ;;  %v5640_v52 = vpack.c.bf16 %v3383_v51, %v3381_v63 }
 0x8b4   :  { %v3356_v33 = vld [vmem:[#allocation5 + $0x518] sm:$0xff] }
 0x8b5   :  { %5701 = vmatpush1.bf16.msra.mxu1 %v5700_v56  ;;  %v5610_v16 = vpack.c.bf16 %v3356_v33, %v3354_v31  ;;  %v3360_v56 = vld [vmem:[#allocation5 + $0x538] sm:$0xff]  ;;  %v3389_v31 = vld [vmem:[#allocation5 + $0x620] sm:$0xff]  ;;  %v3391_v33 = vld [vmem:[#allocation5 + $0x630] sm:$0xff] }
 0x8b6   :  { %5561 = vmatpush1.bf16.msra.mxu0 %v5560_v44  ;;  %v2947_v44 = vld [vmem:[#allocation5 + $0x1e8] sm:$0xff]  ;;  %5703 = vmatprep.subr.bf16.mxu1 %v5702_v50  ;;  %v5614_v50 = vpack.c.bf16 %v3360_v56, %v3358_v38  ;;  %v3393_v38 = vld [vmem:[#allocation5 + $0x640] sm:$0xff]  ;;  %v3395_v56 = vld [vmem:[#allocation5 + $0x650] sm:$0xff] }
 0x8b7   :  { %5563 = vmatprep.subr.bf16.mxu0 %v5562_v46  ;;  %v5582_v35 = vpack.c.bf16 %v2949_v45, %v2947_v44  ;;  %v2946_v46 = vld [vmem:[#allocation5 + $0x1e0] sm:$0xff]  ;;  %v5652_v42 = vpack.c.bf16 %v3395_v56, %v3393_v38  ;;  %v3996_v63 = vld [vmem:[%s8619_s15 + $0x98] sm:$0xff]  ;;  %v4002_v38 = vld [vmem:[%s8619_s15 + $0xc8] sm:$0xff] }
 0x8b8   :  { %v5584_v53 = vpack.c.bf16 %v2948_v6, %v2946_v46  ;;  %v3361_v45 = vld [vmem:[#allocation5 + $0x540] sm:$0xff] }
 0x8b9   :  { %5705 = vmatpush1.bf16.msra.mxu1 %v5704_v17  ;;  %v3363_v17 = vld [vmem:[#allocation5 + $0x550] sm:$0xff] }
 0x8ba   :  { %5565 = vmatpush1.bf16.msra.mxu0 %v5564_v21  ;;  %v2952_v21 = vld [vmem:[#allocation5 + $0x210] sm:$0xff]  ;;  %v5620_v46 = vpack.c.bf16 %v3363_v17, %v3361_v45 }
 0x8bb   :  { %5567 = vmatprep.subr.bf16.mxu0 %v5566_v25  ;;  %v5588_v27 = vpack.c.bf16 %v2952_v21, %v2950_v62  ;;  %v2954_v25 = vld [vmem:[#allocation5 + $0x220] sm:$0xff]  ;;  %v5624_v62 = vpack.c.bf16 %v3367_v49, %v3365_v48 }
 0x8bc   :  { %v5592_v10 = vpack.c.bf16 %v2956_v26, %v2954_v25  ;;  %v5628_v25 = vpack.c.bf16 %v3371_v4, %v3369_v3  ;;  %v4494_v3 = vld [vmem:[%s8617_s13 + $0x2d8] sm:$0xff] }
 0x8be   :  { %5569 = vmatpush1.bf16.msra.mxu0 %v5568_v14  ;;  %v3339_v14 = vld [vmem:[#allocation5 + $0x490] sm:$0xff] }
 0x8bf   :  { %5571 = vmatprep.subr.bf16.mxu0 %v5570_v28  ;;  %v5596_v15 = vpack.c.bf16 %v3339_v14, %v3337_v13  ;;  %v3341_v28 = vld [vmem:[#allocation5 + $0x4a0] sm:$0xff]  ;;  %v5632_v13 = vpack.c.bf16 %v3375_v8, %v3373_v5  ;;  %v4497_v8 = vld [vmem:[%s8617_s13 + $0x2f0] sm:$0xff] }
 0x8c0   :  { %v4495_v5 = vld [vmem:[%s8617_s13 + $0x2e0] sm:$0xff] }
 0x8c2   :  { %5573 = vmatpush1.bf16.msra.mxu0 %v5572_v11  ;;  %v3350_v11 = vld [vmem:[#allocation5 + $0x4e8] sm:$0xff] }
 0x8c3   :  { %5575 = vmatprep.subr.bf16.mxu0 %v5574_v18  ;;  %v5606_v57 = vpack.c.bf16 %v3352_v22, %v3350_v11  ;;  %v3351_v18 = vld [vmem:[#allocation5 + $0x4f0] sm:$0xff]  ;;  %v3385_v11 = vld [vmem:[#allocation5 + $0x600] sm:$0xff] }
 0x8c4   :  { %v3387_v22 = vld [vmem:[#allocation5 + $0x610] sm:$0xff] }
 0x8c6   :  { %5577 = vmatpush1.bf16.msra.mxu0 %v5576_v34 }
 0x8c7   :  { %5579 = vmatprep.subr.bf16.mxu0 %v5578_v40  ;;  %v3362_v40 = vld [vmem:[#allocation5 + $0x548] sm:$0xff] }
 0x8c8   :  { %v5618_v44 = vpack.c.bf16 %v3364_v9, %v3362_v40  ;;  %v3397_v40 = vld [vmem:[#allocation5 + $0x660] sm:$0xff]  ;;  %v3399_v9 = vld [vmem:[#allocation5 + $0x670] sm:$0xff] }
 0x8c9   :  { %v5656_v45 = vpack.c.bf16 %v3399_v9, %v3397_v40  ;;  %v4004_v40 = vld [vmem:[%s8619_s15 + $0xd8] sm:$0xff] }
 0x8ca   :  { %5581 = vmatpush1.bf16.msra.mxu0 %v5580_v20  ;;  %v3366_v20 = vld [vmem:[#allocation5 + $0x568] sm:$0xff] }
 0x8cb   :  { %5583 = vmatprep.subr.bf16.mxu0 %v5582_v35  ;;  %v3368_v35 = vld [vmem:[#allocation5 + $0x578] sm:$0xff] }
 0x8cc   :  { %v5622_v6 = vpack.c.bf16 %v3368_v35, %v3366_v20  ;;  %v3401_v20 = vld [vmem:[#allocation5 + $0x680] sm:$0xff]  ;;  %v3403_v35 = vld [vmem:[#allocation5 + $0x690] sm:$0xff] }
 0x8cd   :  { %v5660_v48 = vpack.c.bf16 %v3403_v35, %v3401_v20  ;;  %v4005_v20 = vld [vmem:[%s8619_s15 + $0xe0] sm:$0xff]  ;;  %v4006_v35 = vld [vmem:[%s8619_s15 + $0xe8] sm:$0xff] }
 0x8ce   :  { %5585 = vmatpush1.bf16.msra.mxu0 %v5584_v53  ;;  %v3370_v53 = vld [vmem:[#allocation5 + $0x588] sm:$0xff] }
 0x8cf   :  { %5587 = vmatprep.subr.bf16.mxu0 %v5586_v60  ;;  %v3372_v60 = vld [vmem:[#allocation5 + $0x598] sm:$0xff] }
 0x8d0   :  { %v5626_v21 = vpack.c.bf16 %v3372_v60, %v3370_v53  ;;  %v3405_v53 = vld [vmem:[#allocation5 + $0x6a0] sm:$0xff]  ;;  %v3407_v60 = vld [vmem:[#allocation5 + $0x6b0] sm:$0xff] }
 0x8d1   :  { %3259 = vmatmul.mubr.f32.vlgmr.msra.gmra.mrb[44].mxu0 %v7948_v7  ;;  %v5600_v7 = vpack.c.bf16 %v3343_v36, %v3341_v28  ;;  %v5636_v28 = vpack.c.bf16 %v3379_v58, %v3377_v54  ;;  %v3993_v54 = vld [vmem:[%s8619_s15 + $0x80] sm:$0xff]  ;;  %v3994_v58 = vld [vmem:[%s8619_s15 + $0x88] sm:$0xff] }
 0x8d2   :  { %5589 = vmatpush1.bf16.msra.mxu0 %v5588_v27  ;;  %3329 = vmatprep.mubr.f32.mxu0 %v6025_v1  ;;  %v3374_v27 = vld [vmem:[#allocation5 + $0x5a8] sm:$0xff] }
 0x8d3   :  { %5591 = vmatprep.subr.bf16.mxu0 %v5590_v24  ;;  %v3376_v24 = vld [vmem:[#allocation5 + $0x5b8] sm:$0xff] }
 0x8d4   :  { %v5630_v26 = vpack.c.bf16 %v3376_v24, %v3374_v27  ;;  %v4493_v27 = vld [vmem:[%s8617_s13 + $0x2d0] sm:$0xff] }
 0x8d6   :  { %5593 = vmatpush1.bf16.msra.mxu0 %v5592_v10  ;;  %v3378_v10 = vld [vmem:[#allocation5 + $0x5c8] sm:$0xff] }
 0x8d7   :  { %5595 = vmatprep.subr.bf16.mxu0 %v5594_v12  ;;  %v3380_v12 = vld [vmem:[#allocation5 + $0x5d8] sm:$0xff] }
 0x8d8   :  { %v5634_v14 = vpack.c.bf16 %v3380_v12, %v3378_v10  ;;  %v5712_v10 = vpack.c.bf16 %v4497_v8, %v4495_v5  ;;  %v3586_v12 = vld [vmem:[%s8617_s13 + $0x8] sm:$0xff] }
 0x8d9   :  { %4449 = vmatmul.mubr.msk.f32.vlgmr.msra.gmra.mrb[44].mxu0 %vm1435_vm6, %v7960_v59  ;;  %v5608_v59 = vpack.c.bf16 %v3351_v18, %v3349_v61  ;;  %v5644_v61 = vpack.c.bf16 %v3387_v22, %v3385_v11  ;;  %v3998_v11 = vld [vmem:[%s8619_s15 + $0xa8] sm:$0xff] }
 0x8da   :  { %5597 = vmatpush1.bf16.msra.mxu0 %v5596_v15  ;;  %3489 = vmatprep.mubr.f32.mxu0 %v7958_v29  ;;  %v3353_v29 = vld [vmem:[#allocation5 + $0x500] sm:$0xff]  ;;  %v3382_v15 = vld [vmem:[#allocation5 + $0x5e8] sm:$0xff] }
 0x8db   :  { %5599 = vmatprep.subr.bf16.mxu0 %v5598_v39  ;;  %v5612_v34 = vpack.c.bf16 %v3355_v41, %v3353_v29  ;;  %v3384_v39 = vld [vmem:[#allocation5 + $0x5f8] sm:$0xff]  ;;  %v5648_v29 = vpack.c.bf16 %v3391_v33, %v3389_v31 }
 0x8dc   :  { %v5638_v36 = vpack.c.bf16 %v3384_v39, %v3382_v15  ;;  %v3977_v15 = vld [vmem:[%s8619_s15] sm:$0xff]  ;;  %v5810_v39 = vpack.c.bf16 %v3994_v58, %v3993_v54  ;;  %v4000_v31 = vld [vmem:[%s8619_s15 + $0xb8] sm:$0xff] }
 0x8de   :  { %5601 = vmatpush1.bf16.msra.mxu0 %v5600_v7  ;;  %v3386_v7 = vld [vmem:[#allocation5 + $0x608] sm:$0xff] }
 0x8df   :  { %5603 = vmatprep.subr.bf16.mxu0 %v5602_v55  ;;  %v3388_v55 = vld [vmem:[#allocation5 + $0x618] sm:$0xff] }
 0x8e0   :  { %v5642_v19 = vpack.c.bf16 %v3388_v55, %v3386_v7  ;;  %v3979_v55 = vld [vmem:[%s8619_s15 + $0x10] sm:$0xff] }
 0x8e2   :  { %5605 = vmatpush1.bf16.msra.mxu0 %v5604_v23  ;;  %v3390_v23 = vld [vmem:[#allocation5 + $0x628] sm:$0xff] }
 0x8e3   :  { %5607 = vmatprep.subr.bf16.mxu0 %v5606_v57  ;;  %v3392_v57 = vld [vmem:[#allocation5 + $0x638] sm:$0xff] }
 0x8e4   :  { %v5646_v18 = vpack.c.bf16 %v3392_v57, %v3390_v23  ;;  %v3981_v57 = vld [vmem:[%s8619_s15 + $0x20] sm:$0xff] }
 0x8e6   :  { %5609 = vmatpush1.bf16.msra.mxu0 %v5608_v59  ;;  %v3394_v59 = vld [vmem:[#allocation5 + $0x648] sm:$0xff] }
 0x8e7   :  { %5611 = vmatprep.subr.bf16.mxu0 %v5610_v16  ;;  %v3396_v16 = vld [vmem:[#allocation5 + $0x658] sm:$0xff] }
 0x8e8   :  { %v5650_v41 = vpack.c.bf16 %v3396_v16, %v3394_v59  ;;  %v3983_v16 = vld [vmem:[%s8619_s15 + $0x30] sm:$0xff] }
 0x8ea   :  { %5613 = vmatpush1.bf16.msra.mxu0 %v5612_v34  ;;  %v3398_v34 = vld [vmem:[#allocation5 + $0x668] sm:$0xff] }
 0x8eb   :  { %5615 = vmatprep.subr.bf16.mxu0 %v5614_v50  ;;  %v3400_v50 = vld [vmem:[#allocation5 + $0x678] sm:$0xff] }
 0x8ec   :  { %v5654_v37 = vpack.c.bf16 %v3400_v50, %v3398_v34  ;;  %v3985_v50 = vld [vmem:[%s8619_s15 + $0x40] sm:$0xff] }
 0x8ee   :  { %5617 = vmatpush1.bf16.msra.mxu0 %v5616_v43  ;;  %v3402_v43 = vld [vmem:[#allocation5 + $0x688] sm:$0xff] }
 0x8ef   :  { %5619 = vmatprep.subr.bf16.mxu0 %v5618_v44  ;;  %v3404_v44 = vld [vmem:[#allocation5 + $0x698] sm:$0xff] }
 0x8f0   :  { %v5658_v17 = vpack.c.bf16 %v3404_v44, %v3402_v43  ;;  %v3569_v43 = vld [vmem:[%s8616_s12] sm:$0x3] }
 0x8f2   :  { %5621 = vmatpush1.bf16.msra.mxu0 %v5620_v46  ;;  %v3406_v46 = vld [vmem:[#allocation5 + $0x6a8] sm:$0xff] }
 0x8f3   :  { %5623 = vmatprep.subr.bf16.mxu0 %v5622_v6  ;;  %v3408_v6 = vld [vmem:[#allocation5 + $0x6b8] sm:$0xff] }
 0x8f4   :  { %v5662_v49 = vpack.c.bf16 %v3408_v6, %v3406_v46  ;;  %v3574_v46 = vrot.slane %v3569_v43, %v6595_v30 }
 0x8f6   :  { %5625 = vmatpush1.bf16.msra.mxu0 %v5624_v62  ;;  %v5664_v62 = vpack.c.bf16 %v3407_v60, %v3405_v53 }
 0x8f7   :  { %5627 = vmatprep.subr.bf16.mxu0 %v5626_v21  ;;  %v4492_v21 = vld [vmem:[%s8617_s13 + $0x2c8] sm:$0xff] }
 0x8f8   :  { %v5706_v4 = vpack.c.bf16 %v4494_v3, %v4492_v21 }
 0x8fa   :  { %5629 = vmatpush1.bf16.msra.mxu0 %v5628_v25  ;;  %5707 = vmatprep.subr.bf16.mxu1 %v5706_v4  ;;  %v4498_v25 = vld [vmem:[%s8617_s13 + $0x2f8] sm:$0xff]  ;;  %v3585_v4 = vld [vmem:[%s8617_s13] sm:$0xff] }
 0x8fb   :  { %5631 = vmatprep.subr.bf16.mxu0 %v5630_v26 }
 0x8fe   :  { %5633 = vmatpush1.bf16.msra.mxu0 %v5632_v13  ;;  %v3588_v13 = vld [vmem:[%s8617_s13 + $0x18] sm:$0xff] }
 0x8ff   :  { %5635 = vmatprep.subr.bf16.mxu0 %v5634_v14  ;;  %v5714_v14 = vpack.c.bf16 %v3588_v13, %v3586_v12  ;;  %v3591_v12 = vld [vmem:[%s8617_s13 + $0x30] sm:$0xff]  ;;  %v3594_v13 = vld [vmem:[%s8617_s13 + $0x48] sm:$0xff] }
 0x902   :  { %5637 = vmatpush1.bf16.msra.mxu0 %v5636_v28  ;;  %v3978_v28 = vld [vmem:[%s8619_s15 + $0x8] sm:$0xff] }
 0x903   :  { %5639 = vmatprep.subr.bf16.mxu0 %v5638_v36  ;;  %v3995_v36 = vld [vmem:[%s8619_s15 + $0x90] sm:$0xff]  ;;  %v5812_v51 = vpack.c.bf16 %v3978_v28, %v3977_v15  ;;  %v3593_v15 = vld [vmem:[%s8617_s13 + $0x40] sm:$0xff]  ;;  %v3598_v28 = vld [vmem:[%s8617_s13 + $0x68] sm:$0xff] }
 0x904   :  { %v5814_v7 = vpack.c.bf16 %v3996_v63, %v3995_v36  ;;  %v3600_v36 = vld [vmem:[%s8617_s13 + $0x78] sm:$0xff] }
 0x906   :  { %5641 = vmatpush1.bf16.msra.mxu0 %v5640_v52  ;;  %v3980_v52 = vld [vmem:[%s8619_s15 + $0x18] sm:$0xff] }
 0x907   :  { %5643 = vmatprep.subr.bf16.mxu0 %v5642_v19  ;;  %v3997_v19 = vld [vmem:[%s8619_s15 + $0xa0] sm:$0xff]  ;;  %v5816_v22 = vpack.c.bf16 %v3980_v52, %v3979_v55  ;;  %v3599_v55 = vld [vmem:[%s8617_s13 + $0x70] sm:$0xff]  ;;  %v3602_v52 = vld [vmem:[%s8617_s13 + $0x88] sm:$0xff] }
 0x908   :  { %v5818_v23 = vpack.c.bf16 %v3998_v11, %v3997_v19  ;;  %v3604_v19 = vld [vmem:[%s8617_s13 + $0x98] sm:$0xff] }
 0x90a   :  { %5645 = vmatpush1.bf16.msra.mxu0 %v5644_v61  ;;  %v3982_v61 = vld [vmem:[%s8619_s15 + $0x28] sm:$0xff] }
 0x90b   :  { %5647 = vmatprep.subr.bf16.mxu0 %v5646_v18  ;;  %v3999_v18 = vld [vmem:[%s8619_s15 + $0xb0] sm:$0xff]  ;;  %v5820_v33 = vpack.c.bf16 %v3982_v61, %v3981_v57  ;;  %v3606_v61 = vld [vmem:[%s8617_s13 + $0xa8] sm:$0xff] }
 0x90c   :  { %v5822_v59 = vpack.c.bf16 %v4000_v31, %v3999_v18  ;;  %v3603_v57 = vld [vmem:[%s8617_s13 + $0x90] sm:$0xff]  ;;  %v3608_v18 = vld [vmem:[%s8617_s13 + $0xb8] sm:$0xff] }
 0x90e   :  { %5649 = vmatpush1.bf16.msra.mxu0 %v5648_v29  ;;  %v3984_v29 = vld [vmem:[%s8619_s15 + $0x38] sm:$0xff] }
 0x90f   :  { %5651 = vmatprep.subr.bf16.mxu0 %v5650_v41  ;;  %v4001_v41 = vld [vmem:[%s8619_s15 + $0xc0] sm:$0xff]  ;;  %v5824_v56 = vpack.c.bf16 %v3984_v29, %v3983_v16  ;;  %v3607_v16 = vld [vmem:[%s8617_s13 + $0xb0] sm:$0xff]  ;;  %v3610_v29 = vld [vmem:[%s8617_s13 + $0xc8] sm:$0xff] }
 0x910   :  { %v5826_v34 = vpack.c.bf16 %v4002_v38, %v4001_v41  ;;  %v3612_v41 = vld [vmem:[%s8617_s13 + $0xd8] sm:$0xff] }
 0x912   :  { %5653 = vmatpush1.bf16.msra.mxu0 %v5652_v42  ;;  %v3986_v42 = vld [vmem:[%s8619_s15 + $0x48] sm:$0xff] }
 0x913   :  { %5655 = vmatprep.subr.bf16.mxu0 %v5654_v37  ;;  %v4003_v37 = vld [vmem:[%s8619_s15 + $0xd0] sm:$0xff]  ;;  %v5828_v9 = vpack.c.bf16 %v3986_v42, %v3985_v50  ;;  %v3614_v42 = vld [vmem:[%s8617_s13 + $0xe8] sm:$0xff] }
 0x914   :  { %v5830_v44 = vpack.c.bf16 %v4004_v40, %v4003_v37  ;;  %v3611_v50 = vld [vmem:[%s8617_s13 + $0xd0] sm:$0xff]  ;;  %v3616_v37 = vld [vmem:[%s8617_s13 + $0xf8] sm:$0xff] }
 0x916   :  { %5657 = vmatpush1.bf16.msra.mxu0 %v5656_v45  ;;  %v3987_v45 = vld [vmem:[%s8619_s15 + $0x50] sm:$0xff] }
 0x917   :  { %5659 = vmatprep.subr.bf16.mxu0 %v5658_v17  ;;  %v3988_v17 = vld [vmem:[%s8619_s15 + $0x58] sm:$0xff] }
 0x918   :  { %v5832_v6 = vpack.c.bf16 %v3988_v17, %v3987_v45  ;;  %v3618_v45 = vld [vmem:[%s8617_s13 + $0x108] sm:$0xff]  ;;  %v3620_v17 = vld [vmem:[%s8617_s13 + $0x118] sm:$0xff] }
 0x919   :  { %3490 = vmatmul.mubr.f32.vlgmr.msra.gmra.mrb[44].mxu0 %v7955_v47  ;;  %v4491_v47 = vld [vmem:[%s8617_s13 + $0x2c0] sm:$0xff] }
 0x91a   :  { %5661 = vmatpush1.bf16.msra.mxu0 %v5660_v48  ;;  %3560 = vmatprep.mubr.f32.mxu0 %v6025_v1  ;;  %v5708_v24 = vpack.c.bf16 %v4493_v27, %v4491_v47  ;;  %v3578_v48 = vrot.slane %v3569_v43, %v6600_v32  ;;  %v3587_v47 = vld [vmem:[%s8617_s13 + $0x10] sm:$0xff]  ;;  %v3613_v43 = vld [vmem:[%s8617_s13 + $0xe0] sm:$0xff] }
 0x91b   :  { %5663 = vmatprep.subr.bf16.mxu0 %v5662_v49  ;;  %v5834_v49 = vpack.c.bf16 %v4006_v35, %v4005_v20  ;;  %v5746_v35 = vpack.c.bf16 %v3620_v17, %v3618_v45  ;;  %v4521_v45 = vld [vmem:[%s8617_s13 + $0x3a0] sm:$0xff]  ;;  %v4523_v17 = vld [vmem:[%s8617_s13 + $0x3b0] sm:$0xff] }
 0x91c   :  { %5709 = vmatpush1.bf16.msra.mxu1 %v5708_v24  ;;  %v3590_v24 = vld [vmem:[%s8617_s13 + $0x28] sm:$0xff] }
 0x91e   :  { %5665 = vmatpush1.bf16.msra.mxu0 %v5664_v62 }
 0x91f   :  { %5811 = vmatprep.subr.bf16.mxu0 %v5810_v39  ;;  %v3595_v39 = vld [vmem:[%s8617_s13 + $0x50] sm:$0xff] }
 0x920   :  { %v5724_v63 = vpack.c.bf16 %v3595_v39, %v3593_v15 }
 0x921   :  { %4450 = vmatmul.mubr.msk.f32.vlgmr.msra.gmra.mrb[44].mxu0 %vm1435_vm6, %v7966_v2  ;;  %v4496_v2 = vld [vmem:[%s8617_s13 + $0x2e8] sm:$0xff] }
 0x922   :  { %v5710_v26 = vpack.c.bf16 %v4498_v25, %v4496_v2  ;;  %5813 = vmatpush3.bf16.msra.mxu0 %v5812_v51  ;;  %v3592_v2 = vld [vmem:[%s8617_s13 + $0x38] sm:$0xff]  ;;  %v5726_v51 = vpack.c.bf16 %v3600_v36, %v3598_v28  ;;  %v4501_v28 = vld [vmem:[%s8617_s13 + $0x300] sm:$0xff]  ;;  %v4503_v36 = vld [vmem:[%s8617_s13 + $0x310] sm:$0xff] }
 0x923   :  { %5815 = vmatprep.subr.bf16.mxu0 %v5814_v7  ;;  %v5718_v8 = vpack.c.bf16 %v3592_v2, %v3590_v24  ;;  %v3597_v7 = vld [vmem:[%s8617_s13 + $0x60] sm:$0xff] }
 0x924   :  { %5711 = vmatprep.subr.bf16.mxu1 %v5710_v26  ;;  %v5716_v26 = vpack.c.bf16 %v3587_v47, %v3585_v4  ;;  %v5728_v11 = vpack.c.bf16 %v3599_v55, %v3597_v7  ;;  %v3626_v4 = vld [vmem:[%s8617_s13 + $0x148] sm:$0xff]  ;;  %v3628_v47 = vld [vmem:[%s8617_s13 + $0x158] sm:$0xff]  ;;  %v5764_v7 = vpack.c.bf16 %v4503_v36, %v4501_v28 }
 0x925   :  { %5713 = vmatpush1.bf16.msra.mxu1 %v5712_v10  ;;  %v3589_v10 = vld [vmem:[%s8617_s13 + $0x20] sm:$0xff]  ;;  %v5754_v2 = vpack.c.bf16 %v3628_v47, %v3626_v4  ;;  %v4531_v47 = vld [vmem:[%s8617_s13 + $0x3f0] sm:$0xff] }
 0x926   :  { %5715 = vmatprep.subr.bf16.mxu1 %v5714_v14  ;;  %5817 = vmatpush3.bf16.msra.mxu0 %v5816_v22  ;;  %v3596_v14 = vld [vmem:[%s8617_s13 + $0x58] sm:$0xff]  ;;  %v5720_v54 = vpack.c.bf16 %v3591_v12, %v3589_v10  ;;  %v5730_v22 = vpack.c.bf16 %v3604_v19, %v3602_v52  ;;  %v4505_v52 = vld [vmem:[%s8617_s13 + $0x320] sm:$0xff]  ;;  %v4507_v19 = vld [vmem:[%s8617_s13 + $0x330] sm:$0xff] }
 0x927   :  { %5819 = vmatprep.subr.bf16.mxu0 %v5818_v23  ;;  %v5722_v58 = vpack.c.bf16 %v3596_v14, %v3594_v13  ;;  %v3601_v23 = vld [vmem:[%s8617_s13 + $0x80] sm:$0xff]  ;;  %v3631_v14 = vld [vmem:[%s8617_s13 + $0x170] sm:$0xff] }
 0x928   :  { %v5732_v31 = vpack.c.bf16 %v3603_v57, %v3601_v23  ;;  %v3629_v13 = vld [vmem:[%s8617_s13 + $0x160] sm:$0xff]  ;;  %v4512_v23 = vld [vmem:[%s8617_s13 + $0x358] sm:$0xff]  ;;  %v5768_v57 = vpack.c.bf16 %v4507_v19, %v4505_v52 }
 0x929   :  { %v5760_v15 = vpack.c.bf16 %v3631_v14, %v3629_v13  ;;  %v4529_v4 = vld [vmem:[%s8617_s13 + $0x3e0] sm:$0xff] }
 0x92a   :  { %5821 = vmatpush3.bf16.msra.mxu0 %v5820_v33  ;;  %v5734_v33 = vpack.c.bf16 %v3608_v18, %v3606_v61  ;;  %v4511_v18 = vld [vmem:[%s8617_s13 + $0x350] sm:$0xff] }
 0x92b   :  { %5823 = vmatprep.subr.bf16.mxu0 %v5822_v59  ;;  %v3605_v59 = vld [vmem:[%s8617_s13 + $0xa0] sm:$0xff] }
 0x92c   :  { %v5736_v38 = vpack.c.bf16 %v3607_v16, %v3605_v59 }
 0x92e   :  { %5825 = vmatpush3.bf16.msra.mxu0 %v5824_v56  ;;  %v5738_v56 = vpack.c.bf16 %v3612_v41, %v3610_v29  ;;  %v4513_v29 = vld [vmem:[%s8617_s13 + $0x360] sm:$0xff]  ;;  %v4515_v41 = vld [vmem:[%s8617_s13 + $0x370] sm:$0xff] }
 0x92f   :  { %5827 = vmatprep.subr.bf16.mxu0 %v5826_v34  ;;  %v3609_v34 = vld [vmem:[%s8617_s13 + $0xc0] sm:$0xff] }
 0x930   :  { %v5740_v40 = vpack.c.bf16 %v3611_v50, %v3609_v34  ;;  %v5776_v34 = vpack.c.bf16 %v4515_v41, %v4513_v29  ;;  %v3961_v41 = vld [vmem:[%s8618_s14] sm:$0x3] }
 0x932   :  { %5829 = vmatpush3.bf16.msra.mxu0 %v5828_v9  ;;  %v5742_v9 = vpack.c.bf16 %v3616_v37, %v3614_v42  ;;  %v4517_v42 = vld [vmem:[%s8617_s13 + $0x380] sm:$0xff]  ;;  %v4519_v37 = vld [vmem:[%s8617_s13 + $0x390] sm:$0xff] }
 0x933   :  { %5831 = vmatprep.subr.bf16.mxu0 %v5830_v44  ;;  %v3615_v44 = vld [vmem:[%s8617_s13 + $0xf0] sm:$0xff] }
 0x934   :  { %v5744_v20 = vpack.c.bf16 %v3615_v44, %v3613_v43  ;;  %v5780_v43 = vpack.c.bf16 %v4519_v37, %v4517_v42  ;;  %v4087_v37 = vld [vmem:[%s8621_s17] sm:$0xff] }
 0x936   :  { %5833 = vmatpush3.bf16.msra.mxu0 %v5832_v6  ;;  %v3619_v6 = vld [vmem:[%s8617_s13 + $0x110] sm:$0xff] }
 0x937   :  { %5835 = vmatprep.subr.bf16.mxu0 %v5834_v49  ;;  %v3624_v49 = vld [vmem:[%s8617_s13 + $0x138] sm:$0xff] }
 0x9f4   :  { %v3562_v53 = vpop.f32.mrb[44].mxu0 }
 0x9f5   :  { %v3581_v60 = vadd.f32 %v3574_v46, %v3562_v53  ;;  %v3564_v62 = vpop.f32.mrb[45].mxu0  ;;  %v3617_v46 = vld [vmem:[%s8617_s13 + $0x100] sm:$0xff] }
 0x9f6   :  { %v3582_v21 = vadd.f32 %v3578_v48, %v3564_v62  ;;  %v3622_v48 = vld [vmem:[%s8617_s13 + $0x128] sm:$0xff]  ;;  %v5748_v53 = vpack.c.bf16 %v3619_v6, %v3617_v46  ;;  %v3621_v62 = vld [vmem:[%s8617_s13 + $0x120] sm:$0xff]  ;;  %v5784_v46 = vpack.c.bf16 %v4523_v17, %v4521_v45 }
 0x9f7   :  { %v8210_v3 = vmax.f32 %v3581_v60, 0.0  ;;  %v5750_v60 = vpack.c.bf16 %v3624_v49, %v3622_v48  ;;  %v4525_v48 = vld [vmem:[%s8617_s13 + $0x3c0] sm:$0xff]  ;;  %v4527_v49 = vld [vmem:[%s8617_s13 + $0x3d0] sm:$0xff] }
 0x9f8   :  { %v8218_v27 = vmax.f32 %v3582_v21, 0.0  ;;  %v3623_v21 = vld [vmem:[%s8617_s13 + $0x130] sm:$0xff] }
 0x9f9   :  { %v3684_v5 = vrot.slane %v8210_v3, 2  ;;  %v5752_v24 = vpack.c.bf16 %v3623_v21, %v3621_v62  ;;  %v5788_v62 = vpack.c.bf16 %v4527_v49, %v4525_v48  ;;  %v4095_v49 = vld [vmem:[%s8621_s17 + $0x40] sm:$0xff] }
 0x9fa   :  { %v3685_v25 = vrot.slane %v8218_v27, 2 }
 0x9fc   :  { %4499 = vmatprep.mubr.msk.f32.mxu1 %vm3687_vm13, %v3685_v25  ;;  %v3625_v25 = vld [vmem:[%s8617_s13 + $0x140] sm:$0xff] }
 0x9fd   :  { %3755 = vmatmul.mubr.f32.vlgmr.msra.gmra.mrb[60].mxu1 %v3684_v5  ;;  %v3630_v5 = vld [vmem:[%s8617_s13 + $0x168] sm:$0xff] }
 0x9fe   :  { %5717 = vmatpush1.bf16.msra.mxu1 %v5716_v26  ;;  %4500 = vmatprep.mubr.msk.f32.mxu1 %vm3687_vm13, %v8218_v27  ;;  %v3627_v26 = vld [vmem:[%s8617_s13 + $0x150] sm:$0xff] }
 0x9ff   :  { %5719 = vmatprep.subr.bf16.mxu1 %v5718_v8  ;;  %v3632_v8 = vld [vmem:[%s8617_s13 + $0x178] sm:$0xff]  ;;  %v5756_v10 = vpack.c.bf16 %v3627_v26, %v3625_v25  ;;  %v5792_v25 = vpack.c.bf16 %v4531_v47, %v4529_v4  ;;  %v4099_v47 = vld [vmem:[%s8621_s17 + $0x60] sm:$0xff] }
 0xa00   :  { %v5758_v12 = vpack.c.bf16 %v3632_v8, %v3630_v5  ;;  %v4533_v5 = vld [vmem:[%s8617_s13 + $0x400] sm:$0xff]  ;;  %v4535_v8 = vld [vmem:[%s8617_s13 + $0x410] sm:$0xff] }
 0xa01   :  { %v5796_v13 = vpack.c.bf16 %v4535_v8, %v4533_v5 }
 0xa02   :  { %5721 = vmatpush1.bf16.msra.mxu1 %v5720_v54  ;;  %v4502_v54 = vld [vmem:[%s8617_s13 + $0x308] sm:$0xff] }
 0xa03   :  { %5723 = vmatprep.subr.bf16.mxu1 %v5722_v58  ;;  %v4504_v58 = vld [vmem:[%s8617_s13 + $0x318] sm:$0xff] }
 0xa04   :  { %v5762_v39 = vpack.c.bf16 %v4504_v58, %v4502_v54  ;;  %v4537_v54 = vld [vmem:[%s8617_s13 + $0x420] sm:$0xff]  ;;  %v4539_v58 = vld [vmem:[%s8617_s13 + $0x430] sm:$0xff] }
 0xa05   :  { %v5800_v28 = vpack.c.bf16 %v4539_v58, %v4537_v54 }
 0xa06   :  { %5725 = vmatpush1.bf16.msra.mxu1 %v5724_v63  ;;  %v4506_v63 = vld [vmem:[%s8617_s13 + $0x328] sm:$0xff] }
 0xa07   :  { %5727 = vmatprep.subr.bf16.mxu1 %v5726_v51  ;;  %v4508_v51 = vld [vmem:[%s8617_s13 + $0x338] sm:$0xff] }
 0xa08   :  { %v5766_v55 = vpack.c.bf16 %v4508_v51, %v4506_v63  ;;  %v4541_v63 = vld [vmem:[%s8617_s13 + $0x440] sm:$0xff]  ;;  %v4543_v51 = vld [vmem:[%s8617_s13 + $0x450] sm:$0xff] }
 0xa09   :  { %v5804_v52 = vpack.c.bf16 %v4543_v51, %v4541_v63 }
 0xa0a   :  { %5729 = vmatpush1.bf16.msra.mxu1 %v5728_v11  ;;  %v3884_v11 = vrot.slane %v8218_v27, 4  ;;  %v4509_v27 = vld [vmem:[%s8617_s13 + $0x340] sm:$0xff] }
 0xa0b   :  { %5731 = vmatprep.subr.bf16.mxu1 %v5730_v22  ;;  %v4510_v22 = vld [vmem:[%s8617_s13 + $0x348] sm:$0xff]  ;;  %v5772_v59 = vpack.c.bf16 %v4511_v18, %v4509_v27 }
 0xa0c   :  { %v5770_v61 = vpack.c.bf16 %v4512_v23, %v4510_v22  ;;  %v4547_v22 = vld [vmem:[%s8617_s13 + $0x470] sm:$0xff]  ;;  %v3990_v27 = vld [vmem:[%s8619_s15 + $0x68] sm:$0xff] }
 0xa0e   :  { %5733 = vmatpush1.bf16.msra.mxu1 %v5732_v31  ;;  %v4514_v31 = vld [vmem:[%s8617_s13 + $0x368] sm:$0xff] }
 0xa0f   :  { %5735 = vmatprep.subr.bf16.mxu1 %v5734_v33  ;;  %v4516_v33 = vld [vmem:[%s8617_s13 + $0x378] sm:$0xff] }
 0xa10   :  { %v5774_v16 = vpack.c.bf16 %v4516_v33, %v4514_v31  ;;  %v4007_v31 = vld [vmem:[%s8619_s15 + $0xf0] sm:$0xff]  ;;  %v4008_v33 = vld [vmem:[%s8619_s15 + $0xf8] sm:$0xff] }
 0xa12   :  { %5737 = vmatpush1.bf16.msra.mxu1 %v5736_v38  ;;  %v4518_v38 = vld [vmem:[%s8617_s13 + $0x388] sm:$0xff] }
 0xa13   :  { %5739 = vmatprep.subr.bf16.mxu1 %v5738_v56  ;;  %v4520_v56 = vld [vmem:[%s8617_s13 + $0x398] sm:$0xff] }
 0xa14   :  { %v5778_v50 = vpack.c.bf16 %v4520_v56, %v4518_v38  ;;  %v3966_v38 = vrot.slane %v3961_v41, %v6595_v30  ;;  %v3970_v56 = vrot.slane %v3961_v41, %v6600_v32  ;;  %v4089_v30 = vld [vmem:[%s8621_s17 + $0x10] sm:$0xff]  ;;  %v4090_v32 = vld [vmem:[%s8621_s17 + $0x18] sm:$0xff] }
 0xa15   :  { %v5846_v17 = vpack.c.bf16 %v4090_v32, %v4089_v30 }
 0xa16   :  { %5741 = vmatpush1.bf16.msra.mxu1 %v5740_v40  ;;  %v4522_v40 = vld [vmem:[%s8617_s13 + $0x3a8] sm:$0xff] }
 0xa17   :  { %5743 = vmatprep.subr.bf16.mxu1 %v5742_v9  ;;  %v4524_v9 = vld [vmem:[%s8617_s13 + $0x3b8] sm:$0xff] }
 0xa18   :  { %v5782_v44 = vpack.c.bf16 %v4524_v9, %v4522_v40  ;;  %v4088_v40 = vld [vmem:[%s8621_s17 + $0x8] sm:$0xff] }
 0xa1a   :  { %5745 = vmatpush1.bf16.msra.mxu1 %v5744_v20  ;;  %v4526_v20 = vld [vmem:[%s8617_s13 + $0x3c8] sm:$0xff] }
 0xa1b   :  { %5747 = vmatprep.subr.bf16.mxu1 %v5746_v35  ;;  %v4528_v35 = vld [vmem:[%s8617_s13 + $0x3d8] sm:$0xff] }
 0xa1c   :  { %v5786_v6 = vpack.c.bf16 %v4528_v35, %v4526_v20  ;;  %v4091_v20 = vld [vmem:[%s8621_s17 + $0x20] sm:$0xff]  ;;  %v4092_v35 = vld [vmem:[%s8621_s17 + $0x28] sm:$0xff] }
 0xa1e   :  { %5749 = vmatpush1.bf16.msra.mxu1 %v5748_v53  ;;  %v4530_v53 = vld [vmem:[%s8617_s13 + $0x3e8] sm:$0xff] }
 0xa1f   :  { %5751 = vmatprep.subr.bf16.mxu1 %v5750_v60  ;;  %v4532_v60 = vld [vmem:[%s8617_s13 + $0x3f8] sm:$0xff] }
 0xa20   :  { %v5790_v21 = vpack.c.bf16 %v4532_v60, %v4530_v53  ;;  %v4096_v53 = vld [vmem:[%s8621_s17 + $0x48] sm:$0xff] }
 0xa21   :  { %v5855_v60 = vpack.c.bf16 %v4096_v53, %v4095_v49 }
 0xa22   :  { %5753 = vmatpush1.bf16.msra.mxu1 %v5752_v24  ;;  %v4534_v24 = vld [vmem:[%s8617_s13 + $0x408] sm:$0xff] }
 0xa23   :  { %5755 = vmatprep.subr.bf16.mxu1 %v5754_v2  ;;  %v4536_v2 = vld [vmem:[%s8617_s13 + $0x418] sm:$0xff] }
 0xa24   :  { %v5794_v26 = vpack.c.bf16 %v4536_v2, %v4534_v24  ;;  %v4100_v24 = vld [vmem:[%s8621_s17 + $0x68] sm:$0xff] }
 0xa25   :  { %v5861_v2 = vpack.c.bf16 %v4100_v24, %v4099_v47 }
 0xa26   :  { %5757 = vmatpush1.bf16.msra.mxu1 %v5756_v10  ;;  %v4538_v10 = vld [vmem:[%s8617_s13 + $0x428] sm:$0xff] }
 0xa27   :  { %5759 = vmatprep.subr.bf16.mxu1 %v5758_v12  ;;  %v4540_v12 = vld [vmem:[%s8617_s13 + $0x438] sm:$0xff] }
 0xa28   :  { %v5798_v14 = vpack.c.bf16 %v4540_v12, %v4538_v10  ;;  %v4550_v10 = vld [vmem:[%s8620_s16] ss:$0 sm:$0xff] }
 0xa2a   :  { %5761 = vmatpush1.bf16.msra.mxu1 %v5760_v15  ;;  %v4542_v15 = vld [vmem:[%s8617_s13 + $0x448] sm:$0xff] }
 0xa2b   :  { %5763 = vmatprep.subr.bf16.mxu1 %v5762_v39  ;;  %v4544_v39 = vld [vmem:[%s8617_s13 + $0x458] sm:$0xff] }
 0xa2c   :  { %v5802_v36 = vpack.c.bf16 %v4544_v39, %v4542_v15 }
 0xa2d   :  { %3828 = vmatmul.mubr.f32.vlgmr.msra.gmra.mrb[60].mxu1 %v8210_v3 }
 0xa2e   :  { %5765 = vmatpush1.bf16.msra.mxu1 %v5764_v7  ;;  %4549 = vmatprep.mubr.msk.f32.mxu1 %vm3687_vm13, %v3884_v11  ;;  %v4546_v7 = vld [vmem:[%s8617_s13 + $0x468] sm:$0xff]  ;;  %v4545_v11 = vld [vmem:[%s8617_s13 + $0x460] sm:$0xff] }
 0xa2f   :  { %5767 = vmatprep.subr.bf16.mxu1 %v5766_v55  ;;  %v4548_v55 = vld [vmem:[%s8617_s13 + $0x478] sm:$0xff]  ;;  %v5808_v23 = vpack.c.bf16 %v4547_v22, %v4545_v11 }
 0xa30   :  { %v5806_v19 = vpack.c.bf16 %v4548_v55, %v4546_v7 }
 0xa32   :  { %5769 = vmatpush1.bf16.msra.mxu1 %v5768_v57  ;;  %v3883_v57 = vrot.slane %v8210_v3, 4  ;;  %v5838_v3 = vpack.c.bf16 %v4008_v33, %v4007_v31 }
 0xa33   :  { %5771 = vmatprep.subr.bf16.mxu1 %v5770_v61  ;;  %v3989_v61 = vld [vmem:[%s8619_s15 + $0x60] sm:$0xff] }
 0xa34   :  { %v5836_v18 = vpack.c.bf16 %v3990_v27, %v3989_v61 }
 0xa36   :  { %5773 = vmatpush1.bf16.msra.mxu1 %v5772_v59  ;;  %5837 = vmatpush3.bf16.msra.mxu0 %v5836_v18  ;;  %v3991_v59 = vld [vmem:[%s8619_s15 + $0x70] sm:$0xff] }
 0xa37   :  { %5775 = vmatprep.subr.bf16.mxu1 %v5774_v16  ;;  %v3992_v16 = vld [vmem:[%s8619_s15 + $0x78] sm:$0xff]  ;;  %5839 = vmatprep.subr.bf16.mxu0 %v5838_v3 }
 0xa38   :  { %v5840_v29 = vpack.c.bf16 %v3992_v16, %v3991_v59 }
 0xa3a   :  { %5777 = vmatpush1.bf16.msra.mxu1 %v5776_v34  ;;  %5841 = vmatpush3.bf16.msra.mxu0 %v5840_v29 }
 0xa3b   :  { %5779 = vmatprep.subr.bf16.mxu1 %v5778_v50  ;;  %5842 = vmatprep.subr.bf16.mxu0 %v6023_v0 }
 0xa3e   :  { %5781 = vmatpush1.bf16.msra.mxu1 %v5780_v43 }
 0xa3f   :  { %5783 = vmatprep.subr.bf16.mxu1 %v5782_v44  ;;  %v5843_v44 = vpack.c.bf16 %v4088_v40, %v4087_v37 }
 0xa42   :  { %5785 = vmatpush1.bf16.msra.mxu1 %v5784_v46  ;;  %v5849_v46 = vpack.c.bf16 %v4092_v35, %v4091_v20 }
 0xa43   :  { %5787 = vmatprep.subr.bf16.mxu1 %v5786_v6  ;;  %v4093_v6 = vld [vmem:[%s8621_s17 + $0x30] sm:$0xff] }
 0xa46   :  { %5789 = vmatpush1.bf16.msra.mxu1 %v5788_v62  ;;  %v4097_v62 = vld [vmem:[%s8621_s17 + $0x50] sm:$0xff] }
 0xa47   :  { %5791 = vmatprep.subr.bf16.mxu1 %v5790_v21  ;;  %v4098_v21 = vld [vmem:[%s8621_s17 + $0x58] sm:$0xff] }
 0xa48   :  { %v5858_v4 = vpack.c.bf16 %v4098_v21, %v4097_v62 }
 0xa4a   :  { %5793 = vmatpush1.bf16.msra.mxu1 %v5792_v25  ;;  %v4101_v25 = vld [vmem:[%s8621_s17 + $0x70] sm:$0xff] }
 0xa4b   :  { %5795 = vmatprep.subr.bf16.mxu1 %v5794_v26  ;;  %v4102_v26 = vld [vmem:[%s8621_s17 + $0x78] sm:$0xff] }
 0xa4c   :  { %v5864_v5 = vpack.c.bf16 %v4102_v26, %v4101_v25 }
 0xa4e   :  { %5797 = vmatpush1.bf16.msra.mxu1 %v5796_v13 }
 0xa4f   :  { %5799 = vmatprep.subr.bf16.mxu1 %v5798_v14 }
 0xa52   :  { %5801 = vmatpush1.bf16.msra.mxu1 %v5800_v28 }
 0xa53   :  { %5803 = vmatprep.subr.bf16.mxu1 %v5802_v36 }
 0xa56   :  { %5805 = vmatpush1.bf16.msra.mxu1 %v5804_v52 }
 0xa57   :  { %5807 = vmatprep.subr.bf16.mxu1 %v5806_v19 }
 0xa5a   :  { %5809 = vmatpush1.bf16.msra.mxu1 %v5808_v23 }
 0xa5d   :  { %3953 = vmatmul.mubr.f32.vlgmr.msra.gmra.mrb[60].mxu1 %v3883_v57 }
 0xb30   :  { %v3954_v34 = vpop.f32.mrb[60].mxu1 }
 0xb31   :  { %v3973_v50 = vadd.f32 %v3966_v38, %v3954_v34  ;;  %v3956_v42 = vpop.f32.mrb[61].mxu1 }
 0xb32   :  { %v3974_v9 = vadd.f32 %v3970_v56, %v3956_v42 }
 0xb33   :  { %v3975_v45 = vmax.f32 %v3973_v50, 0.0 }
 0xb34   :  { %v3976_v43 = vmax.f32 %v3974_v9, 0.0 }
 0xb36   :  { %4080 = vmatprep.mubr.f32.mxu0 %v3976_v43 }
 0xb37   :  { %4081 = vmatmul.mubr.f32.vlgmr.msra.gmra.mrb[46].mxu0 %v3975_v45 }
 0xb38   :  { %5844 = vmatpush3.bf16.msra.mxu0 %v5843_v44  ;;  %4853 = vmatprep.mubr.msk.f32.mxu0 %vm6024_vm0, %v6025_v1  ;;  %v4094_v1 = vld [vmem:[%s8621_s17 + $0x38] sm:$0xff]  ;;  %s5991_s17 = scalar_lea.vmem %s4189_s21, 32 }
 0xb39   :  { %5845 = vmatprep.subr.bf16.mxu0 %v6023_v0  ;;  %v5852_v48 = vpack.c.bf16 %v4094_v1, %v4093_v6  ;;  %p5992_p2 = scmp.ne.s32.totalorder %s4189_s21, %s5991_s17  ;;  %p5997_p4 = scmp.lt.s32.totalorder %s5991_s17, %s5991_s17 }
 0xb3b   :  { %p5998_p5 = por %p5997_p4, %p5996_p3 }
 0xb3c   :  { %5847 = vmatpush3.bf16.msra.mxu0 %v5846_v17 }
 0xb3d   :  { %5848 = vmatprep.subr.bf16.mxu0 %v6023_v0  ;;  %p5999_p6 = pnand %p5998_p5, %p5992_p2 }
 0xb40   :  { %5850 = vmatpush3.bf16.msra.mxu0 %v5849_v46 }
 0xb41   :  { %5851 = vmatprep.subr.bf16.mxu0 %v6023_v0 }
 0xb44   :  { %5853 = vmatpush3.bf16.msra.mxu0 %v5852_v48 }
 0xb45   :  { %5854 = vmatprep.subr.bf16.mxu0 %v6023_v0 }
 0xb48   :  { %5856 = vmatpush3.bf16.msra.mxu0 %v5855_v60 }
 0xb49   :  { %5857 = vmatprep.subr.bf16.mxu0 %v6023_v0 }
 0xb4c   :  { %5859 = vmatpush3.bf16.msra.mxu0 %v5858_v4 }
 0xb4d   :  { %5860 = vmatprep.subr.bf16.mxu0 %v6023_v0 }
 0xb50   :  { %5862 = vmatpush3.bf16.msra.mxu0 %v5861_v2 }
 0xb51   :  { %5863 = vmatprep.subr.bf16.mxu0 %v6023_v0  ;;  %v4551_v0 = vld [vmem:[%s8622_s18] ss:$0 sm:$0xff] }
 0xb54   :  { %5865 = vmatpush3.bf16.msra.mxu0 %v5864_v5 }
 0xc0a   :  { %v4686_v8 = vpop.f32.mrb[46].mxu0 }
 0xc0b   :  { %v4687_v12 = vpop.f32.mrb[47].mxu0 }
 0xc0c   :  { %v4688_v13 = vadd.f32 %v4687_v12, %v4686_v8 }
 0xc0e   :  { %v4083_v14 = vadd.f32 %v4688_v13, %v4550_v10 }
 0xc10   :  { %v4086_v54 = vmax.f32 %v4083_v14, 0.0 }
 0xc12   :  { %4854 = vmatmul.mubr.f32.vlgmr.msra.gmra.mrb[48].mxu0 %v4086_v54 }
 0xce5   :  { %v4176_v58 = vpop.f32.mrb[48].mxu0 }
 0xce6   :  { %v4177_v15 = vadd.f32 %v4551_v0, %v4176_v58  ;;  %v4855_v39 = vpop.f32.mrb[49].mxu0 }
 0xce8   :  { %4181 = vst.msk [vmem:[#allocation7] sm:$0x3] %vm4180_vm14, %v4177_v15 }
 0xce9   :  { %6002 = shalt.err (!%p5999_p6)
}
 0xcea   :  { %s8640_s22 = sld [smem:[#allocation15_spill]] }
 0xcf0   :  { %s6003_s2 = scalar_lea.hbm %s8640_s22, 32 }
 0xcf1   :  { %p6004_p7 = scmp.ne.s32.totalorder %s8640_s22, %s6003_s2  ;;  %p6007_p8 = scmp.lt.u32.totalorder %s6003_s2, %s8640_s22 }
 0xcf3   :  { %p6009_p9 = pnand %p6007_p8, %p6004_p7 }
 0xcf5   :  { %6012 = shalt.err (!%p6009_p9)
}
 0xcf6   :  { %4191 = dma.vmem_to_hbm [thread:$0]  %s4189_s21, 32, %s8640_s22, [#allocation4]  }
 0xcf7   :  { %6017 = dma.done.wait [#allocation4], 32  }
 0xcf8   :  { %6018 = vsyncadd [#allocation4], 4294967264 }
 0xcf9   :  { %4195 = vsyncpa [#allocation3], 1 }
 0xcfa   :  { %4196 = vsyncpa [#allocation6], 1 }
 0xcfb   :  { %4197 = vsyncpa [#allocation4], 1 }

</bundles_post_ra>
